<compile_context>
chip_gen: v7x
topology: tpu7x:2x2x1
jax: 0.10.0
libtpu: 0.0.40
codegen_flags: <defaults>
</compile_context>

<pallas_src>
import numpy as np
import jax
import jax.numpy as jnp
from jax.experimental import pallas as pl
from jax.experimental.pallas import tpu as pltpu

# (input spatial size, Cin, Cout) for each conv block; spatial halves after each pool.
_LAYERS = ((32, 3, 8), (16, 8, 16), (8, 16, 32), (4, 32, 64), (2, 64, 128))
_EPS = 1e-5


# --------------------------- host-side weight preparation ---------------------------

def _make_banded_weight(w, W, k_slab):
    """Banded, pool-permuted conv weight for the lane-aligned padded-slab layout.

    w: (3, 3, Cin, Cout) numpy float32 (HWIO).
    Padded-slab column layout (width k_slab):
        interior pixel x (0..W-1)  -> lanes [x*Cin, (x+1)*Cin)
        left  SAME-pad pixel       -> lanes [W*Cin, (W+1)*Cin)
        right SAME-pad pixel       -> lanes [(W+1)*Cin, (W+2)*Cin)
        remaining lanes            -> unused (zero weight rows)
    Output columns are pool-permuted: perm(x) = (x%2)*(W//2) + x//2, so the W-direction
    2x2 max-pool is a single full-128-lane max of the two column halves.
    Returns wb: (3, k_slab, W*Cout) with  sum_dy LHS_dy @ wb[dy]  ==  conv output.
    """
    Cin, Cout = w.shape[2], w.shape[3]
    Wo = W // 2
    wb = np.zeros((3, k_slab, W * Cout), np.float32)
    for dy in range(3):
        for x in range(W):
            col0 = ((x % 2) * Wo + x // 2) * Cout
            for dx in range(3):
                px = x + dx                      # padded pixel index in 0..W+1
                if px == 0:
                    row0 = W * Cin               # left pad pixel
                elif px == W + 1:
                    row0 = (W + 1) * Cin         # right pad pixel
                else:
                    row0 = (px - 1) * Cin        # interior pixel px-1
                wb[dy, row0:row0 + Cin, col0:col0 + Cout] = w[dy, dx]
    return wb


def init_params(key):
    """Raw (unfolded) parameters, equivalent to the PyTorch module in eval mode."""
    blocks = []
    for (_, cin, cout) in _LAYERS:
        key, k1, k2, k3, k4, k5, k6 = jax.random.split(key, 7)
        w = jax.random.normal(k1, (3, 3, cin, cout), jnp.float32) / jnp.sqrt(9.0 * cin)
        b = 0.01 * jax.random.normal(k2, (cout,), jnp.float32)
        gamma = 1.0 + 0.1 * jax.random.normal(k3, (cout,), jnp.float32)
        beta = 0.1 * jax.random.normal(k4, (cout,), jnp.float32)
        mean = 0.1 * jax.random.normal(k5, (cout,), jnp.float32)
        var = 1.0 + 0.1 * jax.random.uniform(k6, (cout,), jnp.float32)
        blocks.append((w, b, gamma, beta, mean, var))
    key, kw, kb = jax.random.split(key, 3)
    hw = jax.random.normal(kw, (128, 10), jnp.float32) / jnp.sqrt(128.0)
    hb = 0.01 * jax.random.normal(kb, (10,), jnp.float32)
    return {"blocks": blocks, "head_w": hw, "head_b": hb}


def pack_params(raw):
    """Fold BN(eval)+bias into scale/shift, build bf16 banded weights, pad the head to 128 lanes."""
    wbs, scales, shifts = [], [], []
    for i, ((W, _, _), (w, b, gamma, beta, mean, var)) in enumerate(zip(_LAYERS, raw["blocks"])):
        scale = gamma / jnp.sqrt(var + _EPS)            # BN eval fold
        shift = beta + scale * (b - mean)               # includes conv bias
        k_slab = 128 if i == 0 else 256                 # padded-slab lane width (>= (W+2)*Cin)
        wb = _make_banded_weight(np.asarray(w), W, k_slab)
        wbs.append(jnp.asarray(wb).astype(jnp.bfloat16))
        scales.append(jnp.tile(scale, W))               # (W*Cout,) == (256,); col % Cout == channel
        shifts.append(jnp.tile(shift, W))
    hw_pad = jnp.zeros((128, 128), jnp.float32).at[:, :10].set(raw["head_w"])
    hb_pad = jnp.zeros((1, 128), jnp.float32).at[:, :10].set(raw["head_b"].reshape(1, 10))
    return tuple(wbs), jnp.stack(scales), jnp.stack(shifts), hw_pad, hb_pad


# ------------------------------------ fused kernel -----------------------------------

def network2_forward(x_nchw, params, batch_block=64):
    wbs, scale_all, shift_all, hw_pad, hb_pad = params
    N = x_nchw.shape[0]
    assert x_nchw.shape[1:] == (3, 32, 32), "kernel assumes 3x32x32 input (five 2x pools -> 1x1)"
    B = int(batch_block)
    assert B % 8 == 0, "batch_block must be a multiple of 8 (sublane tile alignment)"
    G = -(-N // B)                                      # grid steps
    Npad = G * B

    # NCHW -> NHWC row-flattened (y, x*C), lane-padded 96->128 (zero lanes double as layer-1
    # SAME-pad columns), batch-interleaved per block: row index inside a block = y*B + b.
    x = jnp.transpose(x_nchw, (0, 2, 3, 1)).reshape(N, 32, 96).astype(jnp.float32)
    x = jnp.pad(x, ((0, Npad - N), (0, 0), (0, 32)))                    # (Npad, 32, 128)
    x = x.reshape(G, B, 32, 128).transpose(0, 2, 1, 3).reshape(G, 32 * B, 128)
    x = x.astype(jnp.bfloat16)

    def kernel(x_ref, wb0, wb1, wb2, wb3, wb4,
               scale_ref, shift_ref, hw_ref, hb_ref, o_ref,
               pad0, pad1, pad2, pad3, pad4):
        wrefs = (wb0, wb1, wb2, wb3, wb4)
        pads = (pad0, pad1, pad2, pad3, pad4)
        a = x_ref[0]                                    # (32*B, 128) bf16, lanes 96..127 zero
        for i, (H, Cin, Cout) in enumerate(_LAYERS):
            pad = pads[i]
            kw = pad.shape[1]                           # 128 (layer 1) or 256 (layers 2..5)
            # --- SAME padding ring (zeroed every step; megacore-safe, interior never zeroed)
            pad[0:B, :] = jnp.zeros((B, kw), jnp.bfloat16)                        # top pad rows
            pad[(H + 1) * B:(H + 2) * B, :] = jnp.zeros((B, kw), jnp.bfloat16)    # bottom pad rows
            # --- interior rows (lane-0-aligned stores)
            if i == 0:
                pad[B:(H + 1) * B, :] = a               # input's zero lanes cover the pad pixels
            else:
                pad[B:(H + 1) * B, 0:128] = a.astype(jnp.bfloat16)
                pad[B:(H + 1) * B, 128:256] = jnp.zeros((H * B, 128), jnp.bfloat16)
            # --- 3x3 conv as three bf16 MXU matmuls over dy-shifted contiguous row slabs,
            #     f32 accumulation, output directly in the lane-dense (H*B, 256) layout.
            acc = jnp.dot(pad[0:H * B, :], wrefs[i][0], preferred_element_type=jnp.float32)
            acc = acc + jnp.dot(pad[B:(H + 1) * B, :], wrefs[i][1],
                                preferred_element_type=jnp.float32)
            acc = acc + jnp.dot(pad[2 * B:(H + 2) * B, :], wrefs[i][2],
                                preferred_element_type=jnp.float32)
            # --- folded conv-bias + BatchNorm(eval) affine, then ReLU (full 256-lane rows)
            acc = jnp.maximum(acc * scale_ref[i:i + 1, :] + shift_ref[i:i + 1, :], 0.0)
            # --- 2x2 max-pool:
            #     W-direction: pool-permuted columns -> full-128-lane max of the two halves.
            acc = jnp.maximum(acc[:, :128], acc[:, 128:])                # (H*B, 128)
            #     H-direction: batch-interleaved rows -> sublane-block max (B multiple of 8,
            #     so the leading-dim split/merge reshapes are tile-aligned, no lane relayout).
            acc = acc.reshape(H // 2, 2 * B, 128)
            a = jnp.maximum(acc[:, :B, :], acc[:, B:, :]).reshape((H // 2) * B, 128)
        # After five pools the map is 1x1x128 per image: GAP == identity, a is (B, 128).
        z = jnp.dot(a, hw_ref[...], preferred_element_type=jnp.float32) + hb_ref[...]
        o_ref[...] = jax.nn.sigmoid(z)                  # lane-dense (B, 128) store

    in_specs = [pl.BlockSpec((1, 32 * B, 128), lambda n: (n, 0, 0))]
    for wb in wbs:
        in_specs.append(pl.BlockSpec(wb.shape, lambda n: (0, 0, 0)))
    in_specs += [
        pl.BlockSpec(scale_all.shape, lambda n: (0, 0)),
        pl.BlockSpec(shift_all.shape, lambda n: (0, 0)),
        pl.BlockSpec(hw_pad.shape, lambda n: (0, 0)),
        pl.BlockSpec(hb_pad.shape, lambda n: (0, 0)),
    ]
    scratch = [pltpu.VMEM(((H + 2) * B, 128 if i == 0 else 256), jnp.bfloat16)
               for i, (H, _, _) in enumerate(_LAYERS)]

    out = pl.pallas_call(
        kernel,
        out_shape=jax.ShapeDtypeStruct((Npad, 128), jnp.float32),
        grid_spec=pltpu.PrefetchScalarGridSpec(
            num_scalar_prefetch=0,
            grid=(G,),                                  # one batch-block per step; both TCs share
            in_specs=in_specs,
            out_specs=pl.BlockSpec((B, 128), lambda n: (n, 0)),
            scratch_shapes=scratch,
        ),
        compiler_params=pltpu.CompilerParams(
            dimension_semantics=("parallel",),
            vmem_limit_bytes=48 * 1024 * 1024,
        ),
    )(x, *wbs, scale_all, shift_all, hw_pad, hb_pad)
    return out[:N, :10]


# ------------------------------- pure-JAX reference ----------------------------------

def reference_forward(x_nchw, raw):
    x = jnp.transpose(x_nchw, (0, 2, 3, 1)).astype(jnp.float32)
    for (w, b, gamma, beta, mean, var) in raw["blocks"]:
        x = jax.lax.conv_general_dilated(
            x, w, (1, 1), "SAME", dimension_numbers=("NHWC", "HWIO", "NHWC"))
        x = (x + b - mean) / jnp.sqrt(var + _EPS) * gamma + beta
        x = jnp.maximum(x, 0.0)
        N, H, W, C = x.shape
        x = x.reshape(N, H // 2, 2, W // 2, 2, C).max(axis=(2, 4))
    feat = x.mean(axis=(1, 2))
    return jax.nn.sigmoid(feat @ raw["head_w"] + raw["head_b"])


if __name__ == "__main__":
    key = jax.random.PRNGKey(0)
    kx, kp = jax.random.split(key)
    x = jax.random.normal(kx, (6, 3, 32, 32), jnp.float32)   # small batch; exercises N-padding
    raw = init_params(kp)
    params = pack_params(raw)

    fwd = jax.jit(lambda xx: network2_forward(xx, params, batch_block=8))
    out = jax.block_until_ready(fwd(x))

    assert out.shape == (6, 10), out.shape
    assert bool(jnp.all(jnp.isfinite(out)))
    assert bool(jnp.all((out >= 0.0) & (out <= 1.0)))        # sigmoid range

    ref = reference_forward(x, raw)
    max_err = float(jnp.max(jnp.abs(out - ref)))
    assert max_err < 3e-2, f"kernel vs reference mismatch: max abs err {max_err}"

    print("KERNEL_OK")
</pallas_src>

<mosaic_0001>
module attributes {stable_mosaic.version = 11 : i64} {
  func.func @kernel(%arg0: i32, %arg1: memref<1x256x128xbf16, #tpu.memory_space<vmem>>, %arg2: memref<3x128x256xbf16, #tpu.memory_space<vmem>>, %arg3: memref<3x256x256xbf16, #tpu.memory_space<vmem>>, %arg4: memref<3x256x256xbf16, #tpu.memory_space<vmem>>, %arg5: memref<3x256x256xbf16, #tpu.memory_space<vmem>>, %arg6: memref<3x256x256xbf16, #tpu.memory_space<vmem>>, %arg7: memref<5x256xf32, #tpu.memory_space<vmem>>, %arg8: memref<5x256xf32, #tpu.memory_space<vmem>>, %arg9: memref<128x128xf32, #tpu.memory_space<vmem>>, %arg10: memref<1x128xf32, #tpu.memory_space<vmem>>, %arg11: memref<8x128xf32, #tpu.memory_space<vmem>>, %arg12: memref<272x128xbf16, #tpu.memory_space<vmem>>, %arg13: memref<144x256xbf16, #tpu.memory_space<vmem>>, %arg14: memref<80x256xbf16, #tpu.memory_space<vmem>>, %arg15: memref<48x256xbf16, #tpu.memory_space<vmem>>, %arg16: memref<32x256xbf16, #tpu.memory_space<vmem>>) attributes {dimension_semantics = [#tpu.dimension_semantics<parallel>], iteration_bounds = array<i64: 1>, scalar_prefetch = 0 : i64, scratch_operands = 5 : i64, tpu.core_type = #tpu.core_type<tc>, window_params = [{transform_indices = @transform_0, window_bounds = array<i64: 1, 256, 128>}, {pipeline_mode = #tpu.pipeline_mode<synchronous>, transform_indices = @transform_1, window_bounds = array<i64: 3, 128, 256>}, {pipeline_mode = #tpu.pipeline_mode<synchronous>, transform_indices = @transform_2, window_bounds = array<i64: 3, 256, 256>}, {pipeline_mode = #tpu.pipeline_mode<synchronous>, transform_indices = @transform_3, window_bounds = array<i64: 3, 256, 256>}, {pipeline_mode = #tpu.pipeline_mode<synchronous>, transform_indices = @transform_4, window_bounds = array<i64: 3, 256, 256>}, {pipeline_mode = #tpu.pipeline_mode<synchronous>, transform_indices = @transform_5, window_bounds = array<i64: 3, 256, 256>}, {pipeline_mode = #tpu.pipeline_mode<synchronous>, transform_indices = @transform_6, window_bounds = array<i64: 5, 256>}, {pipeline_mode = #tpu.pipeline_mode<synchronous>, transform_indices = @transform_7, window_bounds = array<i64: 5, 256>}, {pipeline_mode = #tpu.pipeline_mode<synchronous>, transform_indices = @transform_8, window_bounds = array<i64: 128, 128>}, {pipeline_mode = #tpu.pipeline_mode<synchronous>, transform_indices = @transform_9, window_bounds = array<i64: 1, 128>}, {transform_indices = @transform_10, window_bounds = array<i64: 8, 128>}]} {
    %c0 = arith.constant 0 : index
    %c0_0 = arith.constant 0 : index
    %c0_1 = arith.constant 0 : index
    %0 = vector.load %arg1[%c0, %c0_0, %c0_1] : memref<1x256x128xbf16, #tpu.memory_space<vmem>>, vector<1x256x128xbf16>
    %1 = vector.shape_cast %0 : vector<1x256x128xbf16> to vector<256x128xbf16>
    %cst = arith.constant 0.000000e+00 : bf16
    %2 = vector.broadcast %cst : bf16 to vector<8x128xbf16>
    %c0_2 = arith.constant 0 : index
    %c0_3 = arith.constant 0 : index
    %3 = vector.load %arg12[%c0_2, %c0_3] : memref<272x128xbf16, #tpu.memory_space<vmem>>, vector<8x128xbf16>
    tpu.vector_store %arg12[%c0_2, %c0_3], %2 {strides = array<i32>} : memref<272x128xbf16, #tpu.memory_space<vmem>>, vector<8x128xbf16>,
    %cst_4 = arith.constant 0.000000e+00 : bf16
    %4 = vector.broadcast %cst_4 : bf16 to vector<8x128xbf16>
    %c264 = arith.constant 264 : index
    %c0_5 = arith.constant 0 : index
    %5 = vector.load %arg12[%c264, %c0_5] : memref<272x128xbf16, #tpu.memory_space<vmem>>, vector<8x128xbf16>
    tpu.vector_store %arg12[%c264, %c0_5], %4 {strides = array<i32>} : memref<272x128xbf16, #tpu.memory_space<vmem>>, vector<8x128xbf16>,
    %c8 = arith.constant 8 : index
    %c0_6 = arith.constant 0 : index
    %6 = vector.load %arg12[%c8, %c0_6] : memref<272x128xbf16, #tpu.memory_space<vmem>>, vector<256x128xbf16>
    tpu.vector_store %arg12[%c8, %c0_6], %1 {strides = array<i32>} : memref<272x128xbf16, #tpu.memory_space<vmem>>, vector<256x128xbf16>,
    %c0_7 = arith.constant 0 : index
    %c0_8 = arith.constant 0 : index
    %7 = vector.load %arg12[%c0_7, %c0_8] : memref<272x128xbf16, #tpu.memory_space<vmem>>, vector<256x128xbf16>
    %c0_9 = arith.constant 0 : index
    %c0_10 = arith.constant 0 : index
    %c0_11 = arith.constant 0 : index
    %8 = vector.load %arg2[%c0_9, %c0_10, %c0_11] : memref<3x128x256xbf16, #tpu.memory_space<vmem>>, vector<1x128x256xbf16>
    %9 = vector.shape_cast %8 : vector<1x128x256xbf16> to vector<128x256xbf16>
    %cst_12 = arith.constant dense<0.000000e+00> : vector<256x256xf32>
    %10 = tpu.matmul %7, %9, %cst_12 {dimension_numbers = #tpu.dot_dimension_numbers<[1], [0], [0], [1], [0, 0, 1, 1], [], []>} : vector<256x128xbf16>, vector<128x256xbf16>, vector<256x256xf32> -> vector<256x256xf32>
    %c8_13 = arith.constant 8 : index
    %c0_14 = arith.constant 0 : index
    %11 = vector.load %arg12[%c8_13, %c0_14] : memref<272x128xbf16, #tpu.memory_space<vmem>>, vector<256x128xbf16>
    %c1 = arith.constant 1 : index
    %c0_15 = arith.constant 0 : index
    %c0_16 = arith.constant 0 : index
    %12 = vector.load %arg2[%c1, %c0_15, %c0_16] : memref<3x128x256xbf16, #tpu.memory_space<vmem>>, vector<1x128x256xbf16>
    %13 = vector.shape_cast %12 : vector<1x128x256xbf16> to vector<128x256xbf16>
    %cst_17 = arith.constant dense<0.000000e+00> : vector<256x256xf32>
    %14 = tpu.matmul %11, %13, %cst_17 {dimension_numbers = #tpu.dot_dimension_numbers<[1], [0], [0], [1], [0, 0, 1, 1], [], []>} : vector<256x128xbf16>, vector<128x256xbf16>, vector<256x256xf32> -> vector<256x256xf32>
    %15 = arith.addf %10, %14 : vector<256x256xf32>
    %c16 = arith.constant 16 : index
    %c0_18 = arith.constant 0 : index
    %16 = vector.load %arg12[%c16, %c0_18] : memref<272x128xbf16, #tpu.memory_space<vmem>>, vector<256x128xbf16>
    %c2 = arith.constant 2 : index
    %c0_19 = arith.constant 0 : index
    %c0_20 = arith.constant 0 : index
    %17 = vector.load %arg2[%c2, %c0_19, %c0_20] : memref<3x128x256xbf16, #tpu.memory_space<vmem>>, vector<1x128x256xbf16>
    %18 = vector.shape_cast %17 : vector<1x128x256xbf16> to vector<128x256xbf16>
    %cst_21 = arith.constant dense<0.000000e+00> : vector<256x256xf32>
    %19 = tpu.matmul %16, %18, %cst_21 {dimension_numbers = #tpu.dot_dimension_numbers<[1], [0], [0], [1], [0, 0, 1, 1], [], []>} : vector<256x128xbf16>, vector<128x256xbf16>, vector<256x256xf32> -> vector<256x256xf32>
    %20 = arith.addf %15, %19 : vector<256x256xf32>
    %c0_22 = arith.constant 0 : index
    %c0_23 = arith.constant 0 : index
    %21 = vector.load %arg7[%c0_22, %c0_23] : memref<5x256xf32, #tpu.memory_space<vmem>>, vector<1x256xf32>
    %22 = vector.broadcast %21 : vector<1x256xf32> to vector<256x256xf32>
    %23 = arith.mulf %20, %22 : vector<256x256xf32>
    %c0_24 = arith.constant 0 : index
    %c0_25 = arith.constant 0 : index
    %24 = vector.load %arg8[%c0_24, %c0_25] : memref<5x256xf32, #tpu.memory_space<vmem>>, vector<1x256xf32>
    %25 = vector.broadcast %24 : vector<1x256xf32> to vector<256x256xf32>
    %26 = arith.addf %23, %25 : vector<256x256xf32>
    %cst_26 = arith.constant 0.000000e+00 : f32
    %27 = vector.broadcast %cst_26 : f32 to vector<256x256xf32>
    %28 = arith.maximumf %26, %27 : vector<256x256xf32>
    %29 = vector.extract_strided_slice %28 {offsets = [0, 0], sizes = [256, 128], strides = [1, 1]} : vector<256x256xf32> to vector<256x128xf32>
    %30 = vector.extract_strided_slice %28 {offsets = [0, 128], sizes = [256, 128], strides = [1, 1]} : vector<256x256xf32> to vector<256x128xf32>
    %31 = arith.maximumf %29, %30 : vector<256x128xf32>
    %32 = vector.shape_cast %31 : vector<256x128xf32> to vector<16x16x128xf32>
    %33 = vector.extract_strided_slice %32 {offsets = [0, 0, 0], sizes = [16, 8, 128], strides = [1, 1, 1]} : vector<16x16x128xf32> to vector<16x8x128xf32>
    %34 = vector.extract_strided_slice %32 {offsets = [0, 8, 0], sizes = [16, 8, 128], strides = [1, 1, 1]} : vector<16x16x128xf32> to vector<16x8x128xf32>
    %35 = arith.maximumf %33, %34 : vector<16x8x128xf32>
    %36 = vector.shape_cast %35 : vector<16x8x128xf32> to vector<128x128xf32>
    %cst_27 = arith.constant 0.000000e+00 : bf16
    %37 = vector.broadcast %cst_27 : bf16 to vector<8x256xbf16>
    %c0_28 = arith.constant 0 : index
    %c0_29 = arith.constant 0 : index
    %38 = vector.load %arg13[%c0_28, %c0_29] : memref<144x256xbf16, #tpu.memory_space<vmem>>, vector<8x256xbf16>
    tpu.vector_store %arg13[%c0_28, %c0_29], %37 {strides = array<i32>} : memref<144x256xbf16, #tpu.memory_space<vmem>>, vector<8x256xbf16>,
    %cst_30 = arith.constant 0.000000e+00 : bf16
    %39 = vector.broadcast %cst_30 : bf16 to vector<8x256xbf16>
    %c136 = arith.constant 136 : index
    %c0_31 = arith.constant 0 : index
    %40 = vector.load %arg13[%c136, %c0_31] : memref<144x256xbf16, #tpu.memory_space<vmem>>, vector<8x256xbf16>
    tpu.vector_store %arg13[%c136, %c0_31], %39 {strides = array<i32>} : memref<144x256xbf16, #tpu.memory_space<vmem>>, vector<8x256xbf16>,
    %41 = arith.truncf %36 : vector<128x128xf32> to vector<128x128xbf16>
    %c8_32 = arith.constant 8 : index
    %c0_33 = arith.constant 0 : index
    %42 = vector.load %arg13[%c8_32, %c0_33] : memref<144x256xbf16, #tpu.memory_space<vmem>>, vector<128x128xbf16>
    tpu.vector_store %arg13[%c8_32, %c0_33], %41 {strides = array<i32>} : memref<144x256xbf16, #tpu.memory_space<vmem>>, vector<128x128xbf16>,
    %cst_34 = arith.constant 0.000000e+00 : bf16
    %43 = vector.broadcast %cst_34 : bf16 to vector<128x128xbf16>
    %c8_35 = arith.constant 8 : index
    %c128 = arith.constant 128 : index
    %44 = vector.load %arg13[%c8_35, %c128] : memref<144x256xbf16, #tpu.memory_space<vmem>>, vector<128x128xbf16>
    tpu.vector_store %arg13[%c8_35, %c128], %43 {strides = array<i32>} : memref<144x256xbf16, #tpu.memory_space<vmem>>, vector<128x128xbf16>,
    %c0_36 = arith.constant 0 : index
    %c0_37 = arith.constant 0 : index
    %45 = vector.load %arg13[%c0_36, %c0_37] : memref<144x256xbf16, #tpu.memory_space<vmem>>, vector<128x256xbf16>
    %c0_38 = arith.constant 0 : index
    %c0_39 = arith.constant 0 : index
    %c0_40 = arith.constant 0 : index
    %46 = vector.load %arg3[%c0_38, %c0_39, %c0_40] : memref<3x256x256xbf16, #tpu.memory_space<vmem>>, vector<1x256x256xbf16>
    %47 = vector.shape_cast %46 : vector<1x256x256xbf16> to vector<256x256xbf16>
    %cst_41 = arith.constant dense<0.000000e+00> : vector<128x256xf32>
    %48 = tpu.matmul %45, %47, %cst_41 {dimension_numbers = #tpu.dot_dimension_numbers<[1], [0], [0], [1], [0, 0, 1, 1], [], []>} : vector<128x256xbf16>, vector<256x256xbf16>, vector<128x256xf32> -> vector<128x256xf32>
    %c8_42 = arith.constant 8 : index
    %c0_43 = arith.constant 0 : index
    %49 = vector.load %arg13[%c8_42, %c0_43] : memref<144x256xbf16, #tpu.memory_space<vmem>>, vector<128x256xbf16>
    %c1_44 = arith.constant 1 : index
    %c0_45 = arith.constant 0 : index
    %c0_46 = arith.constant 0 : index
    %50 = vector.load %arg3[%c1_44, %c0_45, %c0_46] : memref<3x256x256xbf16, #tpu.memory_space<vmem>>, vector<1x256x256xbf16>
    %51 = vector.shape_cast %50 : vector<1x256x256xbf16> to vector<256x256xbf16>
    %cst_47 = arith.constant dense<0.000000e+00> : vector<128x256xf32>
    %52 = tpu.matmul %49, %51, %cst_47 {dimension_numbers = #tpu.dot_dimension_numbers<[1], [0], [0], [1], [0, 0, 1, 1], [], []>} : vector<128x256xbf16>, vector<256x256xbf16>, vector<128x256xf32> -> vector<128x256xf32>
    %53 = arith.addf %48, %52 : vector<128x256xf32>
    %c16_48 = arith.constant 16 : index
    %c0_49 = arith.constant 0 : index
    %54 = vector.load %arg13[%c16_48, %c0_49] : memref<144x256xbf16, #tpu.memory_space<vmem>>, vector<128x256xbf16>
    %c2_50 = arith.constant 2 : index
    %c0_51 = arith.constant 0 : index
    %c0_52 = arith.constant 0 : index
    %55 = vector.load %arg3[%c2_50, %c0_51, %c0_52] : memref<3x256x256xbf16, #tpu.memory_space<vmem>>, vector<1x256x256xbf16>
    %56 = vector.shape_cast %55 : vector<1x256x256xbf16> to vector<256x256xbf16>
    %cst_53 = arith.constant dense<0.000000e+00> : vector<128x256xf32>
    %57 = tpu.matmul %54, %56, %cst_53 {dimension_numbers = #tpu.dot_dimension_numbers<[1], [0], [0], [1], [0, 0, 1, 1], [], []>} : vector<128x256xbf16>, vector<256x256xbf16>, vector<128x256xf32> -> vector<128x256xf32>
    %58 = arith.addf %53, %57 : vector<128x256xf32>
    %c1_54 = arith.constant 1 : index
    %c0_55 = arith.constant 0 : index
    %59 = vector.load %arg7[%c1_54, %c0_55] : memref<5x256xf32, #tpu.memory_space<vmem>>, vector<1x256xf32>
    %60 = vector.broadcast %59 : vector<1x256xf32> to vector<128x256xf32>
    %61 = arith.mulf %58, %60 : vector<128x256xf32>
    %c1_56 = arith.constant 1 : index
    %c0_57 = arith.constant 0 : index
    %62 = vector.load %arg8[%c1_56, %c0_57] : memref<5x256xf32, #tpu.memory_space<vmem>>, vector<1x256xf32>
    %63 = vector.broadcast %62 : vector<1x256xf32> to vector<128x256xf32>
    %64 = arith.addf %61, %63 : vector<128x256xf32>
    %cst_58 = arith.constant 0.000000e+00 : f32
    %65 = vector.broadcast %cst_58 : f32 to vector<128x256xf32>
    %66 = arith.maximumf %64, %65 : vector<128x256xf32>
    %67 = vector.extract_strided_slice %66 {offsets = [0, 0], sizes = [128, 128], strides = [1, 1]} : vector<128x256xf32> to vector<128x128xf32>
    %68 = vector.extract_strided_slice %66 {offsets = [0, 128], sizes = [128, 128], strides = [1, 1]} : vector<128x256xf32> to vector<128x128xf32>
    %69 = arith.maximumf %67, %68 : vector<128x128xf32>
    %70 = vector.shape_cast %69 : vector<128x128xf32> to vector<8x16x128xf32>
    %71 = vector.extract_strided_slice %70 {offsets = [0, 0, 0], sizes = [8, 8, 128], strides = [1, 1, 1]} : vector<8x16x128xf32> to vector<8x8x128xf32>
    %72 = vector.extract_strided_slice %70 {offsets = [0, 8, 0], sizes = [8, 8, 128], strides = [1, 1, 1]} : vector<8x16x128xf32> to vector<8x8x128xf32>
    %73 = arith.maximumf %71, %72 : vector<8x8x128xf32>
    %74 = vector.shape_cast %73 : vector<8x8x128xf32> to vector<64x128xf32>
    %cst_59 = arith.constant 0.000000e+00 : bf16
    %75 = vector.broadcast %cst_59 : bf16 to vector<8x256xbf16>
    %c0_60 = arith.constant 0 : index
    %c0_61 = arith.constant 0 : index
    %76 = vector.load %arg14[%c0_60, %c0_61] : memref<80x256xbf16, #tpu.memory_space<vmem>>, vector<8x256xbf16>
    tpu.vector_store %arg14[%c0_60, %c0_61], %75 {strides = array<i32>} : memref<80x256xbf16, #tpu.memory_space<vmem>>, vector<8x256xbf16>,
    %cst_62 = arith.constant 0.000000e+00 : bf16
    %77 = vector.broadcast %cst_62 : bf16 to vector<8x256xbf16>
    %c72 = arith.constant 72 : index
    %c0_63 = arith.constant 0 : index
    %78 = vector.load %arg14[%c72, %c0_63] : memref<80x256xbf16, #tpu.memory_space<vmem>>, vector<8x256xbf16>
    tpu.vector_store %arg14[%c72, %c0_63], %77 {strides = array<i32>} : memref<80x256xbf16, #tpu.memory_space<vmem>>, vector<8x256xbf16>,
    %79 = arith.truncf %74 : vector<64x128xf32> to vector<64x128xbf16>
    %c8_64 = arith.constant 8 : index
    %c0_65 = arith.constant 0 : index
    %80 = vector.load %arg14[%c8_64, %c0_65] : memref<80x256xbf16, #tpu.memory_space<vmem>>, vector<64x128xbf16>
    tpu.vector_store %arg14[%c8_64, %c0_65], %79 {strides = array<i32>} : memref<80x256xbf16, #tpu.memory_space<vmem>>, vector<64x128xbf16>,
    %cst_66 = arith.constant 0.000000e+00 : bf16
    %81 = vector.broadcast %cst_66 : bf16 to vector<64x128xbf16>
    %c8_67 = arith.constant 8 : index
    %c128_68 = arith.constant 128 : index
    %82 = vector.load %arg14[%c8_67, %c128_68] : memref<80x256xbf16, #tpu.memory_space<vmem>>, vector<64x128xbf16>
    tpu.vector_store %arg14[%c8_67, %c128_68], %81 {strides = array<i32>} : memref<80x256xbf16, #tpu.memory_space<vmem>>, vector<64x128xbf16>,
    %c0_69 = arith.constant 0 : index
    %c0_70 = arith.constant 0 : index
    %83 = vector.load %arg14[%c0_69, %c0_70] : memref<80x256xbf16, #tpu.memory_space<vmem>>, vector<64x256xbf16>
    %c0_71 = arith.constant 0 : index
    %c0_72 = arith.constant 0 : index
    %c0_73 = arith.constant 0 : index
    %84 = vector.load %arg4[%c0_71, %c0_72, %c0_73] : memref<3x256x256xbf16, #tpu.memory_space<vmem>>, vector<1x256x256xbf16>
    %85 = vector.shape_cast %84 : vector<1x256x256xbf16> to vector<256x256xbf16>
    %cst_74 = arith.constant dense<0.000000e+00> : vector<64x256xf32>
    %86 = tpu.matmul %83, %85, %cst_74 {dimension_numbers = #tpu.dot_dimension_numbers<[1], [0], [0], [1], [0, 0, 1, 1], [], []>} : vector<64x256xbf16>, vector<256x256xbf16>, vector<64x256xf32> -> vector<64x256xf32>
    %c8_75 = arith.constant 8 : index
    %c0_76 = arith.constant 0 : index
    %87 = vector.load %arg14[%c8_75, %c0_76] : memref<80x256xbf16, #tpu.memory_space<vmem>>, vector<64x256xbf16>
    %c1_77 = arith.constant 1 : index
    %c0_78 = arith.constant 0 : index
    %c0_79 = arith.constant 0 : index
    %88 = vector.load %arg4[%c1_77, %c0_78, %c0_79] : memref<3x256x256xbf16, #tpu.memory_space<vmem>>, vector<1x256x256xbf16>
    %89 = vector.shape_cast %88 : vector<1x256x256xbf16> to vector<256x256xbf16>
    %cst_80 = arith.constant dense<0.000000e+00> : vector<64x256xf32>
    %90 = tpu.matmul %87, %89, %cst_80 {dimension_numbers = #tpu.dot_dimension_numbers<[1], [0], [0], [1], [0, 0, 1, 1], [], []>} : vector<64x256xbf16>, vector<256x256xbf16>, vector<64x256xf32> -> vector<64x256xf32>
    %91 = arith.addf %86, %90 : vector<64x256xf32>
    %c16_81 = arith.constant 16 : index
    %c0_82 = arith.constant 0 : index
    %92 = vector.load %arg14[%c16_81, %c0_82] : memref<80x256xbf16, #tpu.memory_space<vmem>>, vector<64x256xbf16>
    %c2_83 = arith.constant 2 : index
    %c0_84 = arith.constant 0 : index
    %c0_85 = arith.constant 0 : index
    %93 = vector.load %arg4[%c2_83, %c0_84, %c0_85] : memref<3x256x256xbf16, #tpu.memory_space<vmem>>, vector<1x256x256xbf16>
    %94 = vector.shape_cast %93 : vector<1x256x256xbf16> to vector<256x256xbf16>
    %cst_86 = arith.constant dense<0.000000e+00> : vector<64x256xf32>
    %95 = tpu.matmul %92, %94, %cst_86 {dimension_numbers = #tpu.dot_dimension_numbers<[1], [0], [0], [1], [0, 0, 1, 1], [], []>} : vector<64x256xbf16>, vector<256x256xbf16>, vector<64x256xf32> -> vector<64x256xf32>
    %96 = arith.addf %91, %95 : vector<64x256xf32>
    %c2_87 = arith.constant 2 : index
    %c0_88 = arith.constant 0 : index
    %97 = vector.load %arg7[%c2_87, %c0_88] : memref<5x256xf32, #tpu.memory_space<vmem>>, vector<1x256xf32>
    %98 = vector.broadcast %97 : vector<1x256xf32> to vector<64x256xf32>
    %99 = arith.mulf %96, %98 : vector<64x256xf32>
    %c2_89 = arith.constant 2 : index
    %c0_90 = arith.constant 0 : index
    %100 = vector.load %arg8[%c2_89, %c0_90] : memref<5x256xf32, #tpu.memory_space<vmem>>, vector<1x256xf32>
    %101 = vector.broadcast %100 : vector<1x256xf32> to vector<64x256xf32>
    %102 = arith.addf %99, %101 : vector<64x256xf32>
    %cst_91 = arith.constant 0.000000e+00 : f32
    %103 = vector.broadcast %cst_91 : f32 to vector<64x256xf32>
    %104 = arith.maximumf %102, %103 : vector<64x256xf32>
    %105 = vector.extract_strided_slice %104 {offsets = [0, 0], sizes = [64, 128], strides = [1, 1]} : vector<64x256xf32> to vector<64x128xf32>
    %106 = vector.extract_strided_slice %104 {offsets = [0, 128], sizes = [64, 128], strides = [1, 1]} : vector<64x256xf32> to vector<64x128xf32>
    %107 = arith.maximumf %105, %106 : vector<64x128xf32>
    %108 = vector.shape_cast %107 : vector<64x128xf32> to vector<4x16x128xf32>
    %109 = vector.extract_strided_slice %108 {offsets = [0, 0, 0], sizes = [4, 8, 128], strides = [1, 1, 1]} : vector<4x16x128xf32> to vector<4x8x128xf32>
    %110 = vector.extract_strided_slice %108 {offsets = [0, 8, 0], sizes = [4, 8, 128], strides = [1, 1, 1]} : vector<4x16x128xf32> to vector<4x8x128xf32>
    %111 = arith.maximumf %109, %110 : vector<4x8x128xf32>
    %112 = vector.shape_cast %111 : vector<4x8x128xf32> to vector<32x128xf32>
    %cst_92 = arith.constant 0.000000e+00 : bf16
    %113 = vector.broadcast %cst_92 : bf16 to vector<8x256xbf16>
    %c0_93 = arith.constant 0 : index
    %c0_94 = arith.constant 0 : index
    %114 = vector.load %arg15[%c0_93, %c0_94] : memref<48x256xbf16, #tpu.memory_space<vmem>>, vector<8x256xbf16>
    tpu.vector_store %arg15[%c0_93, %c0_94], %113 {strides = array<i32>} : memref<48x256xbf16, #tpu.memory_space<vmem>>, vector<8x256xbf16>,
    %cst_95 = arith.constant 0.000000e+00 : bf16
    %115 = vector.broadcast %cst_95 : bf16 to vector<8x256xbf16>
    %c40 = arith.constant 40 : index
    %c0_96 = arith.constant 0 : index
    %116 = vector.load %arg15[%c40, %c0_96] : memref<48x256xbf16, #tpu.memory_space<vmem>>, vector<8x256xbf16>
    tpu.vector_store %arg15[%c40, %c0_96], %115 {strides = array<i32>} : memref<48x256xbf16, #tpu.memory_space<vmem>>, vector<8x256xbf16>,
    %117 = arith.truncf %112 : vector<32x128xf32> to vector<32x128xbf16>
    %c8_97 = arith.constant 8 : index
    %c0_98 = arith.constant 0 : index
    %118 = vector.load %arg15[%c8_97, %c0_98] : memref<48x256xbf16, #tpu.memory_space<vmem>>, vector<32x128xbf16>
    tpu.vector_store %arg15[%c8_97, %c0_98], %117 {strides = array<i32>} : memref<48x256xbf16, #tpu.memory_space<vmem>>, vector<32x128xbf16>,
    %cst_99 = arith.constant 0.000000e+00 : bf16
    %119 = vector.broadcast %cst_99 : bf16 to vector<32x128xbf16>
    %c8_100 = arith.constant 8 : index
    %c128_101 = arith.constant 128 : index
    %120 = vector.load %arg15[%c8_100, %c128_101] : memref<48x256xbf16, #tpu.memory_space<vmem>>, vector<32x128xbf16>
    tpu.vector_store %arg15[%c8_100, %c128_101], %119 {strides = array<i32>} : memref<48x256xbf16, #tpu.memory_space<vmem>>, vector<32x128xbf16>,
    %c0_102 = arith.constant 0 : index
    %c0_103 = arith.constant 0 : index
    %121 = vector.load %arg15[%c0_102, %c0_103] : memref<48x256xbf16, #tpu.memory_space<vmem>>, vector<32x256xbf16>
    %c0_104 = arith.constant 0 : index
    %c0_105 = arith.constant 0 : index
    %c0_106 = arith.constant 0 : index
    %122 = vector.load %arg5[%c0_104, %c0_105, %c0_106] : memref<3x256x256xbf16, #tpu.memory_space<vmem>>, vector<1x256x256xbf16>
    %123 = vector.shape_cast %122 : vector<1x256x256xbf16> to vector<256x256xbf16>
    %cst_107 = arith.constant dense<0.000000e+00> : vector<32x256xf32>
    %124 = tpu.matmul %121, %123, %cst_107 {dimension_numbers = #tpu.dot_dimension_numbers<[1], [0], [0], [1], [0, 0, 1, 1], [], []>} : vector<32x256xbf16>, vector<256x256xbf16>, vector<32x256xf32> -> vector<32x256xf32>
    %c8_108 = arith.constant 8 : index
    %c0_109 = arith.constant 0 : index
    %125 = vector.load %arg15[%c8_108, %c0_109] : memref<48x256xbf16, #tpu.memory_space<vmem>>, vector<32x256xbf16>
    %c1_110 = arith.constant 1 : index
    %c0_111 = arith.constant 0 : index
    %c0_112 = arith.constant 0 : index
    %126 = vector.load %arg5[%c1_110, %c0_111, %c0_112] : memref<3x256x256xbf16, #tpu.memory_space<vmem>>, vector<1x256x256xbf16>
    %127 = vector.shape_cast %126 : vector<1x256x256xbf16> to vector<256x256xbf16>
    %cst_113 = arith.constant dense<0.000000e+00> : vector<32x256xf32>
    %128 = tpu.matmul %125, %127, %cst_113 {dimension_numbers = #tpu.dot_dimension_numbers<[1], [0], [0], [1], [0, 0, 1, 1], [], []>} : vector<32x256xbf16>, vector<256x256xbf16>, vector<32x256xf32> -> vector<32x256xf32>
    %129 = arith.addf %124, %128 : vector<32x256xf32>
    %c16_114 = arith.constant 16 : index
    %c0_115 = arith.constant 0 : index
    %130 = vector.load %arg15[%c16_114, %c0_115] : memref<48x256xbf16, #tpu.memory_space<vmem>>, vector<32x256xbf16>
    %c2_116 = arith.constant 2 : index
    %c0_117 = arith.constant 0 : index
    %c0_118 = arith.constant 0 : index
    %131 = vector.load %arg5[%c2_116, %c0_117, %c0_118] : memref<3x256x256xbf16, #tpu.memory_space<vmem>>, vector<1x256x256xbf16>
    %132 = vector.shape_cast %131 : vector<1x256x256xbf16> to vector<256x256xbf16>
    %cst_119 = arith.constant dense<0.000000e+00> : vector<32x256xf32>
    %133 = tpu.matmul %130, %132, %cst_119 {dimension_numbers = #tpu.dot_dimension_numbers<[1], [0], [0], [1], [0, 0, 1, 1], [], []>} : vector<32x256xbf16>, vector<256x256xbf16>, vector<32x256xf32> -> vector<32x256xf32>
    %134 = arith.addf %129, %133 : vector<32x256xf32>
    %c3 = arith.constant 3 : index
    %c0_120 = arith.constant 0 : index
    %135 = vector.load %arg7[%c3, %c0_120] : memref<5x256xf32, #tpu.memory_space<vmem>>, vector<1x256xf32>
    %136 = vector.broadcast %135 : vector<1x256xf32> to vector<32x256xf32>
    %137 = arith.mulf %134, %136 : vector<32x256xf32>
    %c3_121 = arith.constant 3 : index
    %c0_122 = arith.constant 0 : index
    %138 = vector.load %arg8[%c3_121, %c0_122] : memref<5x256xf32, #tpu.memory_space<vmem>>, vector<1x256xf32>
    %139 = vector.broadcast %138 : vector<1x256xf32> to vector<32x256xf32>
    %140 = arith.addf %137, %139 : vector<32x256xf32>
    %cst_123 = arith.constant 0.000000e+00 : f32
    %141 = vector.broadcast %cst_123 : f32 to vector<32x256xf32>
    %142 = arith.maximumf %140, %141 : vector<32x256xf32>
    %143 = vector.extract_strided_slice %142 {offsets = [0, 0], sizes = [32, 128], strides = [1, 1]} : vector<32x256xf32> to vector<32x128xf32>
    %144 = vector.extract_strided_slice %142 {offsets = [0, 128], sizes = [32, 128], strides = [1, 1]} : vector<32x256xf32> to vector<32x128xf32>
    %145 = arith.maximumf %143, %144 : vector<32x128xf32>
    %146 = vector.shape_cast %145 : vector<32x128xf32> to vector<2x16x128xf32>
    %147 = vector.extract_strided_slice %146 {offsets = [0, 0, 0], sizes = [2, 8, 128], strides = [1, 1, 1]} : vector<2x16x128xf32> to vector<2x8x128xf32>
    %148 = vector.extract_strided_slice %146 {offsets = [0, 8, 0], sizes = [2, 8, 128], strides = [1, 1, 1]} : vector<2x16x128xf32> to vector<2x8x128xf32>
    %149 = arith.maximumf %147, %148 : vector<2x8x128xf32>
    %150 = vector.shape_cast %149 : vector<2x8x128xf32> to vector<16x128xf32>
    %cst_124 = arith.constant 0.000000e+00 : bf16
    %151 = vector.broadcast %cst_124 : bf16 to vector<8x256xbf16>
    %c0_125 = arith.constant 0 : index
    %c0_126 = arith.constant 0 : index
    %152 = vector.load %arg16[%c0_125, %c0_126] : memref<32x256xbf16, #tpu.memory_space<vmem>>, vector<8x256xbf16>
    tpu.vector_store %arg16[%c0_125, %c0_126], %151 {strides = array<i32>} : memref<32x256xbf16, #tpu.memory_space<vmem>>, vector<8x256xbf16>,
    %cst_127 = arith.constant 0.000000e+00 : bf16
    %153 = vector.broadcast %cst_127 : bf16 to vector<8x256xbf16>
    %c24 = arith.constant 24 : index
    %c0_128 = arith.constant 0 : index
    %154 = vector.load %arg16[%c24, %c0_128] : memref<32x256xbf16, #tpu.memory_space<vmem>>, vector<8x256xbf16>
    tpu.vector_store %arg16[%c24, %c0_128], %153 {strides = array<i32>} : memref<32x256xbf16, #tpu.memory_space<vmem>>, vector<8x256xbf16>,
    %155 = arith.truncf %150 : vector<16x128xf32> to vector<16x128xbf16>
    %c8_129 = arith.constant 8 : index
    %c0_130 = arith.constant 0 : index
    %156 = vector.load %arg16[%c8_129, %c0_130] : memref<32x256xbf16, #tpu.memory_space<vmem>>, vector<16x128xbf16>
    tpu.vector_store %arg16[%c8_129, %c0_130], %155 {strides = array<i32>} : memref<32x256xbf16, #tpu.memory_space<vmem>>, vector<16x128xbf16>,
    %cst_131 = arith.constant 0.000000e+00 : bf16
    %157 = vector.broadcast %cst_131 : bf16 to vector<16x128xbf16>
    %c8_132 = arith.constant 8 : index
    %c128_133 = arith.constant 128 : index
    %158 = vector.load %arg16[%c8_132, %c128_133] : memref<32x256xbf16, #tpu.memory_space<vmem>>, vector<16x128xbf16>
    tpu.vector_store %arg16[%c8_132, %c128_133], %157 {strides = array<i32>} : memref<32x256xbf16, #tpu.memory_space<vmem>>, vector<16x128xbf16>,
    %c0_134 = arith.constant 0 : index
    %c0_135 = arith.constant 0 : index
    %159 = vector.load %arg16[%c0_134, %c0_135] : memref<32x256xbf16, #tpu.memory_space<vmem>>, vector<16x256xbf16>
    %c0_136 = arith.constant 0 : index
    %c0_137 = arith.constant 0 : index
    %c0_138 = arith.constant 0 : index
    %160 = vector.load %arg6[%c0_136, %c0_137, %c0_138] : memref<3x256x256xbf16, #tpu.memory_space<vmem>>, vector<1x256x256xbf16>
    %161 = vector.shape_cast %160 : vector<1x256x256xbf16> to vector<256x256xbf16>
    %cst_139 = arith.constant dense<0.000000e+00> : vector<16x256xf32>
    %162 = tpu.matmul %159, %161, %cst_139 {dimension_numbers = #tpu.dot_dimension_numbers<[1], [0], [0], [1], [0, 0, 1, 1], [], []>} : vector<16x256xbf16>, vector<256x256xbf16>, vector<16x256xf32> -> vector<16x256xf32>
    %c8_140 = arith.constant 8 : index
    %c0_141 = arith.constant 0 : index
    %163 = vector.load %arg16[%c8_140, %c0_141] : memref<32x256xbf16, #tpu.memory_space<vmem>>, vector<16x256xbf16>
    %c1_142 = arith.constant 1 : index
    %c0_143 = arith.constant 0 : index
    %c0_144 = arith.constant 0 : index
    %164 = vector.load %arg6[%c1_142, %c0_143, %c0_144] : memref<3x256x256xbf16, #tpu.memory_space<vmem>>, vector<1x256x256xbf16>
    %165 = vector.shape_cast %164 : vector<1x256x256xbf16> to vector<256x256xbf16>
    %cst_145 = arith.constant dense<0.000000e+00> : vector<16x256xf32>
    %166 = tpu.matmul %163, %165, %cst_145 {dimension_numbers = #tpu.dot_dimension_numbers<[1], [0], [0], [1], [0, 0, 1, 1], [], []>} : vector<16x256xbf16>, vector<256x256xbf16>, vector<16x256xf32> -> vector<16x256xf32>
    %167 = arith.addf %162, %166 : vector<16x256xf32>
    %c16_146 = arith.constant 16 : index
    %c0_147 = arith.constant 0 : index
    %168 = vector.load %arg16[%c16_146, %c0_147] : memref<32x256xbf16, #tpu.memory_space<vmem>>, vector<16x256xbf16>
    %c2_148 = arith.constant 2 : index
    %c0_149 = arith.constant 0 : index
    %c0_150 = arith.constant 0 : index
    %169 = vector.load %arg6[%c2_148, %c0_149, %c0_150] : memref<3x256x256xbf16, #tpu.memory_space<vmem>>, vector<1x256x256xbf16>
    %170 = vector.shape_cast %169 : vector<1x256x256xbf16> to vector<256x256xbf16>
    %cst_151 = arith.constant dense<0.000000e+00> : vector<16x256xf32>
    %171 = tpu.matmul %168, %170, %cst_151 {dimension_numbers = #tpu.dot_dimension_numbers<[1], [0], [0], [1], [0, 0, 1, 1], [], []>} : vector<16x256xbf16>, vector<256x256xbf16>, vector<16x256xf32> -> vector<16x256xf32>
    %172 = arith.addf %167, %171 : vector<16x256xf32>
    %c4 = arith.constant 4 : index
    %c0_152 = arith.constant 0 : index
    %173 = vector.load %arg7[%c4, %c0_152] : memref<5x256xf32, #tpu.memory_space<vmem>>, vector<1x256xf32>
    %174 = vector.broadcast %173 : vector<1x256xf32> to vector<16x256xf32>
    %175 = arith.mulf %172, %174 : vector<16x256xf32>
    %c4_153 = arith.constant 4 : index
    %c0_154 = arith.constant 0 : index
    %176 = vector.load %arg8[%c4_153, %c0_154] : memref<5x256xf32, #tpu.memory_space<vmem>>, vector<1x256xf32>
    %177 = vector.broadcast %176 : vector<1x256xf32> to vector<16x256xf32>
    %178 = arith.addf %175, %177 : vector<16x256xf32>
    %cst_155 = arith.constant 0.000000e+00 : f32
    %179 = vector.broadcast %cst_155 : f32 to vector<16x256xf32>
    %180 = arith.maximumf %178, %179 : vector<16x256xf32>
    %181 = vector.extract_strided_slice %180 {offsets = [0, 0], sizes = [16, 128], strides = [1, 1]} : vector<16x256xf32> to vector<16x128xf32>
    %182 = vector.extract_strided_slice %180 {offsets = [0, 128], sizes = [16, 128], strides = [1, 1]} : vector<16x256xf32> to vector<16x128xf32>
    %183 = arith.maximumf %181, %182 : vector<16x128xf32>
    %184 = vector.shape_cast %183 : vector<16x128xf32> to vector<1x16x128xf32>
    %185 = vector.extract_strided_slice %184 {offsets = [0, 0, 0], sizes = [1, 8, 128], strides = [1, 1, 1]} : vector<1x16x128xf32> to vector<1x8x128xf32>
    %186 = vector.extract_strided_slice %184 {offsets = [0, 8, 0], sizes = [1, 8, 128], strides = [1, 1, 1]} : vector<1x16x128xf32> to vector<1x8x128xf32>
    %187 = arith.maximumf %185, %186 : vector<1x8x128xf32>
    %188 = vector.shape_cast %187 : vector<1x8x128xf32> to vector<8x128xf32>
    %c0_156 = arith.constant 0 : index
    %c0_157 = arith.constant 0 : index
    %189 = vector.load %arg9[%c0_156, %c0_157] : memref<128x128xf32, #tpu.memory_space<vmem>>, vector<128x128xf32>
    %cst_158 = arith.constant dense<0.000000e+00> : vector<8x128xf32>
    %190 = tpu.matmul %188, %189, %cst_158 {dimension_numbers = #tpu.dot_dimension_numbers<[1], [0], [0], [1], [0, 0, 1, 1], [], []>} : vector<8x128xf32>, vector<128x128xf32>, vector<8x128xf32> -> vector<8x128xf32>
    %c0_159 = arith.constant 0 : index
    %c0_160 = arith.constant 0 : index
    %191 = vector.load %arg10[%c0_159, %c0_160] : memref<1x128xf32, #tpu.memory_space<vmem>>, vector<1x128xf32>
    %192 = vector.broadcast %191 : vector<1x128xf32> to vector<8x128xf32>
    %193 = arith.addf %190, %192 : vector<8x128xf32>
    %194 = arith.negf %193 : vector<8x128xf32>
    %195 = math.exp %194 : vector<8x128xf32>
    %cst_161 = arith.constant 1.000000e+00 : f32
    %196 = vector.broadcast %cst_161 : f32 to vector<8x128xf32>
    %197 = arith.addf %196, %195 : vector<8x128xf32>
    %198 = arith.divf %196, %197 : vector<8x128xf32>
    %c0_162 = arith.constant 0 : index
    %c0_163 = arith.constant 0 : index
    %199 = vector.load %arg11[%c0_162, %c0_163] : memref<8x128xf32, #tpu.memory_space<vmem>>, vector<8x128xf32>
    tpu.vector_store %arg11[%c0_162, %c0_163], %198 {strides = array<i32>} : memref<8x128xf32, #tpu.memory_space<vmem>>, vector<8x128xf32>,
    return
  }
  func.func @transform_0(%arg0: i32) -> (i32, i32, i32) {
    %c0_i32 = arith.constant 0 : i32
    %c0_i32_0 = arith.constant 0 : i32
    %c0_i32_1 = arith.constant 0 : i32
    return %arg0, %c0_i32, %c0_i32_0 : i32, i32, i32
  }
  func.func @transform_1(%arg0: i32) -> (i32, i32, i32) {
    %c0_i32 = arith.constant 0 : i32
    %c0_i32_0 = arith.constant 0 : i32
    %c0_i32_1 = arith.constant 0 : i32
    %c0_i32_2 = arith.constant 0 : i32
    return %c0_i32, %c0_i32_0, %c0_i32_1 : i32, i32, i32
  }
  func.func @transform_2(%arg0: i32) -> (i32, i32, i32) {
    %c0_i32 = arith.constant 0 : i32
    %c0_i32_0 = arith.constant 0 : i32
    %c0_i32_1 = arith.constant 0 : i32
    %c0_i32_2 = arith.constant 0 : i32
    return %c0_i32, %c0_i32_0, %c0_i32_1 : i32, i32, i32
  }
  func.func @transform_3(%arg0: i32) -> (i32, i32, i32) {
    %c0_i32 = arith.constant 0 : i32
    %c0_i32_0 = arith.constant 0 : i32
    %c0_i32_1 = arith.constant 0 : i32
    %c0_i32_2 = arith.constant 0 : i32
    return %c0_i32, %c0_i32_0, %c0_i32_1 : i32, i32, i32
  }
  func.func @transform_4(%arg0: i32) -> (i32, i32, i32) {
    %c0_i32 = arith.constant 0 : i32
    %c0_i32_0 = arith.constant 0 : i32
    %c0_i32_1 = arith.constant 0 : i32
    %c0_i32_2 = arith.constant 0 : i32
    return %c0_i32, %c0_i32_0, %c0_i32_1 : i32, i32, i32
  }
  func.func @transform_5(%arg0: i32) -> (i32, i32, i32) {
    %c0_i32 = arith.constant 0 : i32
    %c0_i32_0 = arith.constant 0 : i32
    %c0_i32_1 = arith.constant 0 : i32
    %c0_i32_2 = arith.constant 0 : i32
    return %c0_i32, %c0_i32_0, %c0_i32_1 : i32, i32, i32
  }
  func.func @transform_6(%arg0: i32) -> (i32, i32) {
    %c0_i32 = arith.constant 0 : i32
    %c0_i32_0 = arith.constant 0 : i32
    %c0_i32_1 = arith.constant 0 : i32
    return %c0_i32, %c0_i32_0 : i32, i32
  }
  func.func @transform_7(%arg0: i32) -> (i32, i32) {
    %c0_i32 = arith.constant 0 : i32
    %c0_i32_0 = arith.constant 0 : i32
    %c0_i32_1 = arith.constant 0 : i32
    return %c0_i32, %c0_i32_0 : i32, i32
  }
  func.func @transform_8(%arg0: i32) -> (i32, i32) {
    %c0_i32 = arith.constant 0 : i32
    %c0_i32_0 = arith.constant 0 : i32
    %c0_i32_1 = arith.constant 0 : i32
    return %c0_i32, %c0_i32_0 : i32, i32
  }
  func.func @transform_9(%arg0: i32) -> (i32, i32) {
    %c0_i32 = arith.constant 0 : i32
    %c0_i32_0 = arith.constant 0 : i32
    %c0_i32_1 = arith.constant 0 : i32
    return %c0_i32, %c0_i32_0 : i32, i32
  }
  func.func @transform_10(%arg0: i32) -> (i32, i32) {
    %c0_i32 = arith.constant 0 : i32
    %c0_i32_0 = arith.constant 0 : i32
    return %arg0, %c0_i32 : i32, i32
  }
}

</mosaic_0001>

<bundles_post_ra>
// kernel: _lambda_.1
= control target key start
LH: loop header
LB: loop body
LE: loop exit
PB: predicated region body
PF: predicated region fallthrough
CT: control target
= control target key end

     0   :  { %v7272_v2 = vmov 0   ;;  %vm269_vm0 = vcmask 1043456   ;;  %s9420_s0 = inlined_call_operand.vmem [shape: bf16[1,256,128], index: 0, kind: input, shape index: {}]   ;;  %s9421_s1 = inlined_call_operand.vmem [shape: bf16[3,128,256], index: 1, kind: input, shape index: {}]   ;;  %s9422_s2 = inlined_call_operand.vmem [shape: bf16[3,256,256], index: 2, kind: input, shape index: {}]   ;;  %s9423_s3 = inlined_call_operand.vmem [shape: bf16[3,256,256], index: 3, kind: input, shape index: {}]   ;;  %s9424_s4 = inlined_call_operand.vmem [shape: bf16[3,256,256], index: 4, kind: input, shape index: {}]   ;;  %s9425_s5 = inlined_call_operand.vmem [shape: bf16[3,256,256], index: 5, kind: input, shape index: {}]   ;;  %s9426_s6 = inlined_call_operand.vmem [shape: f32[5,256], index: 6, kind: input, shape index: {}]   ;;  %s9427_s7 = inlined_call_operand.vmem [shape: f32[5,256], index: 7, kind: input, shape index: {}]   ;;  %s9428_s8 = inlined_call_operand.vmem [shape: f32[128,128], index: 8, kind: input, shape index: {}]   ;;  %s9429_s9 = inlined_call_operand.vmem [shape: f32[1,128], index: 9, kind: input, shape index: {}]   ;;  %s9430_s10 = inlined_call_operand.hbm [shape: f32[8,128], index: 10, kind: output, shape index: {}]  }
   0x1   :  { %v6561_v0 = vld [vmem:[%s9421_s1 + $0x84] ss:$8 sps:$4 sm:$0xff]   ;;  %v6563_v1 = vld [vmem:[%s9421_s1 + $0x80] ss:$8 sps:$4 sm:$0xff]   ;;  %431 = vmatprep.mubr.bf16.mxu0 %v7272_v2  ;;  %69 = vst [vmem:[#allocation2] sm:$0xf] %v7272_v2 }
   0x2   :  { %70 = vst [vmem:[#allocation2 + $0x80] sm:$0xf0] %v7272_v2  ;;  %1484 = vst [vmem:[#allocation3] sm:$0xf] %v7272_v2  ;;  %399 = vmatprep.subr.bf16.mxu0 %v6561_v0  ;;  %v6564_v3 = vld [vmem:[%s9421_s1 + $0x94] ss:$8 sps:$4 sm:$0xff]  }
   0x3   :  { %1485 = vst [vmem:[#allocation3 + $0x8] sm:$0xf] %v7272_v2  ;;  %1486 = vst [vmem:[#allocation3 + $0x80] sm:$0xf0] %v7272_v2  ;;  %400 = vmatpush1.bf16.msra.mxu0 %v6563_v1  ;;  %v6566_v4 = vld [vmem:[%s9421_s1 + $0x90] ss:$8 sps:$4 sm:$0xff]  }
   0x4   :  { %1487 = vst [vmem:[#allocation3 + $0x88] sm:$0xf0] %v7272_v2  ;;  %1537 = vst [vmem:[#allocation3 + $0x8] sm:$0xf0] %v7272_v2  ;;  %401 = vmatprep.subr.bf16.mxu0 %v6564_v3  ;;  %v6567_v5 = vld [vmem:[%s9421_s1 + $0xa4] ss:$8 sps:$4 sm:$0xff]  }
   0x5   :  { %1538 = vst [vmem:[#allocation3 + $0x18] sm:$0xff] %v7272_v2  ;;  %1545 = vst [vmem:[#allocation3 + $0x88] sm:$0xf] %v7272_v2  ;;  %v6569_v6 = vld [vmem:[%s9421_s1 + $0xa0] ss:$8 sps:$4 sm:$0xff]   ;;  %v7402_v13 = vld [vmem:[%s9420_s0 + $0xc] sm:$0xff]  }
   0x6   :  { %2745 = vst [vmem:[#allocation4] sm:$0xf] %v7272_v2  ;;  %2746 = vst [vmem:[#allocation4 + $0x8] sm:$0xf] %v7272_v2  ;;  %v6570_v7 = vld [vmem:[%s9421_s1 + $0xb4] ss:$8 sps:$4 sm:$0xff]  }
   0x7   :  { %2747 = vst [vmem:[#allocation4 + $0x40] sm:$0xf0] %v7272_v2  ;;  %2748 = vst [vmem:[#allocation4 + $0x48] sm:$0xf0] %v7272_v2  ;;  %402 = vmatpush1.bf16.msra.mxu0 %v6566_v4  ;;  %v6572_v8 = vld [vmem:[%s9421_s1 + $0xb0] ss:$8 sps:$4 sm:$0xff]  }
   0x8   :  { %2774 = vst [vmem:[#allocation4 + $0x8] sm:$0xf0] %v7272_v2  ;;  %2778 = vst [vmem:[#allocation4 + $0x48] sm:$0xf] %v7272_v2  ;;  %403 = vmatprep.subr.bf16.mxu0 %v6567_v5  ;;  %v6573_v9 = vld [vmem:[%s9421_s1 + $0xc4] ss:$8 sps:$4 sm:$0xff]  }
   0x9   :  { %3734 = vst [vmem:[#allocation5] sm:$0xf] %v7272_v2  ;;  %3735 = vst [vmem:[#allocation5 + $0x8] sm:$0xf] %v7272_v2  ;;  %v6585_v10 = vld [vmem:[%s9420_s0] ss:$0 sps:$4 sm:$0xff]  }
   0xa   :  { %3736 = vst [vmem:[#allocation5 + $0x20] sm:$0xf0] %v7272_v2  ;;  %3737 = vst [vmem:[#allocation5 + $0x28] sm:$0xf0] %v7272_v2  ;;  %v7393_v11 = vld [vmem:[%s9420_s0 + $0x4] sm:$0xff]   ;;  %v7407_v14 = vld [vmem:[%s9420_s0 + $0x14] sm:$0xff]  }
   0xb   :  { %3751 = vst [vmem:[#allocation5 + $0x8] sm:$0xf0] %v7272_v2  ;;  %3753 = vst [vmem:[#allocation5 + $0x28] sm:$0xf] %v7272_v2  ;;  %404 = vmatpush1.bf16.msra.mxu0 %v6569_v6  ;;  %v6575_v12 = vld [vmem:[%s9421_s1 + $0xc0] ss:$8 sps:$4 sm:$0xff]  }
   0xc   :  { %4587 = vst [vmem:[#allocation6] sm:$0xf] %v7272_v2  ;;  %4588 = vst [vmem:[#allocation6 + $0x8] sm:$0xf] %v7272_v2  ;;  %405 = vmatprep.subr.bf16.mxu0 %v6570_v7  ;;  %v6576_v15 = vld [vmem:[%s9421_s1 + $0xd4] ss:$8 sps:$4 sm:$0xff]  }
   0xd   :  { %4589 = vst [vmem:[#allocation6 + $0x10] sm:$0xf0] %v7272_v2  ;;  %4590 = vst [vmem:[#allocation6 + $0x18] sm:$0xf0] %v7272_v2  ;;  %v7417_v16 = vld [vmem:[%s9420_s0 + $0x1c] sm:$0xff]   ;;  %v7422_v17 = vld [vmem:[%s9420_s0 + $0x24] sm:$0xff]  }
   0xe   :  { %4597 = vst [vmem:[#allocation6 + $0x8] sm:$0xf0] %v7272_v2  ;;  %4598 = vst [vmem:[#allocation6 + $0x18] sm:$0xf] %v7272_v2  ;;  %v6578_v18 = vld [vmem:[%s9421_s1 + $0xd0] ss:$8 sps:$4 sm:$0xff]  }
   0xf   :  { %169 = vst [vmem:[#allocation2] sm:$0xf0] %v6585_v10  ;;  %170 = vst [vmem:[#allocation2 + $0x8] sm:$0xff] %v7393_v11  ;;  %406 = vmatpush1.bf16.msra.mxu0 %v6572_v8  ;;  %v6579_v19 = vld [vmem:[%s9421_s1 + $0xe4] ss:$8 sps:$4 sm:$0xff]   ;;  %v7443_v22 = vld [vmem:[%s9420_s0 + $0x34] sm:$0xff]  }
  0x10   :  { %407 = vmatprep.subr.bf16.mxu0 %v6573_v9  ;;  %171 = vst [vmem:[#allocation2 + $0x10] sm:$0xff] %v7402_v13  ;;  %172 = vst [vmem:[#allocation2 + $0x18] sm:$0xff] %v7407_v14  ;;  %v7435_v20 = vld [vmem:[%s9420_s0 + $0x2c] sm:$0xff]   ;;  %v6581_v21 = vld [vmem:[%s9421_s1 + $0xe0] ss:$8 sps:$4 sm:$0xff]   ;;  %v271_v30 = vrot.slane %v7393_v11, 4 }
  0x11   :  { %173 = vst [vmem:[#allocation2 + $0x20] sm:$0xff] %v7417_v16  ;;  %174 = vst [vmem:[#allocation2 + $0x28] sm:$0xff] %v7422_v17  ;;  %v6582_v23 = vld [vmem:[%s9421_s1 + $0xf4] ss:$8 sps:$4 sm:$0xff]   ;;  %v6584_v26 = vld [vmem:[%s9421_s1 + $0xf0] ss:$8 sps:$4 sm:$0xff]  }
  0x12   :  { %175 = vst [vmem:[#allocation2 + $0x30] sm:$0xff] %v7435_v20  ;;  %176 = vst [vmem:[#allocation2 + $0x38] sm:$0xff] %v7443_v22  ;;  %v7453_v25 = vld [vmem:[%s9420_s0 + $0x3c] sm:$0xff]   ;;  %v7461_v27 = vld [vmem:[%s9420_s0 + $0x44] sm:$0xff]   ;;  %v273_v40 = vrot.slane %v7402_v13, 4  ;;  %v275_v49 = vrot.slane %v7407_v14, 4 }
  0x13   :  { %408 = vmatpush1.bf16.msra.mxu0 %v6575_v12  ;;  %v6589_v28 = vld [vmem:[%s9421_s1 + $0x4] ss:$8 sps:$4 sm:$0xff]   ;;  %177 = vst [vmem:[#allocation2 + $0x40] sm:$0xff] %v7453_v25  ;;  %178 = vst [vmem:[#allocation2 + $0x48] sm:$0xff] %v7461_v27  ;;  %v7478_v32 = vld [vmem:[%s9420_s0 + $0x54] sm:$0xff]   ;;  %v277_v55 = vrot.slane %v7417_v16, 4 }
  0x14   :  { %409 = vmatprep.subr.bf16.mxu0 %v6576_v15  ;;  %v7472_v31 = vld [vmem:[%s9420_s0 + $0x4c] sm:$0xff]   ;;  %v6587_v33 = vld [vmem:[%s9421_s1] ss:$8 sps:$4 sm:$0xff]   ;;  %v6594_v34 = vld [vmem:[%s9421_s1 + $0x14] ss:$8 sps:$4 sm:$0xff]   ;;  %180 = vst [vmem:[#allocation2 + $0x58] sm:$0xff] %v7478_v32  ;;  %v274_v44 = vsel %vm269_vm0, %v271_v30, %v273_v40  ;;  %v276_v51 = vsel %vm269_vm0, %v273_v40, %v275_v49 }
  0x15   :  { %179 = vst [vmem:[#allocation2 + $0x50] sm:$0xff] %v7472_v31  ;;  %v7491_v36 = vld [vmem:[%s9420_s0 + $0x5c] sm:$0xff]   ;;  %v7496_v37 = vld [vmem:[%s9420_s0 + $0x64] sm:$0xff]   ;;  %v6592_v38 = vld [vmem:[%s9421_s1 + $0x10] ss:$8 sps:$4 sm:$0xff]   ;;  %v278_v58 = vsel %vm269_vm0, %v275_v49, %v277_v55  ;;  %v279_v61 = vrot.slane %v7422_v17, 4 }
  0x16   :  { %v218_v24 = vld [vmem:[#allocation2] sm:$0xf0]  ;;  %181 = vst [vmem:[#allocation2 + $0x60] sm:$0xff] %v7491_v36  ;;  %182 = vst [vmem:[#allocation2 + $0x68] sm:$0xff] %v7496_v37  ;;  %v7506_v39 = vld [vmem:[%s9420_s0 + $0x6c] sm:$0xff]   ;;  %v281_v63 = vrot.slane %v7435_v20, 4 }
  0x17   :  { %410 = vmatpush1.bf16.msra.mxu0 %v6578_v18  ;;  %v270_v29 = vrot.slane %v218_v24, 4  ;;  %v7513_v41 = vld [vmem:[%s9420_s0 + $0x74] sm:$0xff]   ;;  %v6599_v42 = vld [vmem:[%s9421_s1 + $0x24] ss:$8 sps:$4 sm:$0xff]   ;;  %183 = vst [vmem:[#allocation2 + $0x70] sm:$0xff] %v7506_v39  ;;  %v280_v62 = vsel %vm269_vm0, %v277_v55, %v279_v61  ;;  %v283_v1 = vrot.slane %v7443_v22, 4 }
  0x18   :  { %411 = vmatprep.subr.bf16.mxu0 %v6579_v19  ;;  %184 = vst [vmem:[#allocation2 + $0x78] sm:$0xff] %v7513_v41  ;;  %v6625_v43 = vld [vmem:[%s9420_s0 + $0x7c] ss:$0 sps:$4 sm:$0xff]   ;;  %v6597_v45 = vld [vmem:[%s9421_s1 + $0x20] ss:$8 sps:$4 sm:$0xff]   ;;  %v282_v0 = vsel %vm269_vm0, %v279_v61, %v281_v63  ;;  %v285_v4 = vrot.slane %v7453_v25, 4 }
  0x19   :  { %v272_v35 = vsel %vm269_vm0, %v270_v29, %v271_v30  ;;  %v6604_v46 = vld [vmem:[%s9421_s1 + $0x34] ss:$8 sps:$4 sm:$0xff]   ;;  %185 = vst [vmem:[#allocation2 + $0x80] sm:$0xf] %v6625_v43  ;;  %v6602_v47 = vld [vmem:[%s9421_s1 + $0x30] ss:$8 sps:$4 sm:$0xff]   ;;  %v284_v3 = vsel %vm269_vm0, %v281_v63, %v283_v1 }
  0x1a   :  { %v6609_v48 = vld [vmem:[%s9421_s1 + $0x44] ss:$8 sps:$4 sm:$0xff]   ;;  %v6607_v50 = vld [vmem:[%s9421_s1 + $0x40] ss:$8 sps:$4 sm:$0xff]   ;;  %v6614_v52 = vld [vmem:[%s9421_s1 + $0x54] ss:$8 sps:$4 sm:$0xff]   ;;  %v286_v5 = vsel %vm269_vm0, %v283_v1, %v285_v4 }
  0x1b   :  { %412 = vmatpush1.bf16.msra.mxu0 %v6581_v21  ;;  %v6612_v53 = vld [vmem:[%s9421_s1 + $0x50] ss:$8 sps:$4 sm:$0xff]   ;;  %v6619_v54 = vld [vmem:[%s9421_s1 + $0x64] ss:$8 sps:$4 sm:$0xff]   ;;  %v6617_v56 = vld [vmem:[%s9421_s1 + $0x60] ss:$8 sps:$4 sm:$0xff]  }
  0x1c   :  { %413 = vmatprep.subr.bf16.mxu0 %v6582_v23  ;;  %v6624_v57 = vld [vmem:[%s9421_s1 + $0x74] ss:$8 sps:$4 sm:$0xff]   ;;  %v6622_v59 = vld [vmem:[%s9421_s1 + $0x70] ss:$8 sps:$4 sm:$0xff]   ;;  %v6628_v60 = vld [vmem:[%s9421_s1 + $0x104] ss:$8 sps:$4 sm:$0xff]  }
  0x1d   :  { %v287_v6 = vrot.slane %v7461_v27, 4  ;;  %v289_v8 = vrot.slane %v7472_v31, 4  ;;  %v291_v10 = vrot.slane %v7478_v32, 4  ;;  %v293_v12 = vrot.slane %v7491_v36, 4  ;;  %v7596_v18 = vld [vmem:[#allocation3 + $0x18] sm:$0xff]  ;;  %v7626_v31 = vld [vmem:[#allocation2 + $0x8] sm:$0xff] }
  0x1e   :  { %v295_v14 = vrot.slane %v7496_v37, 4  ;;  %v297_v16 = vrot.slane %v7506_v39, 4  ;;  %v299_v19 = vrot.slane %v7513_v41, 4  ;;  %v186_v23 = vld [vmem:[#allocation2] sm:$0xff]  ;;  %v6631_v25 = vld [vmem:[%s9421_s1 + $0x114] ss:$8 sps:$4 sm:$0xff]  }
  0x1f   :  { %414 = vmatpush1.bf16.msra.mxu0 %v6584_v26  ;;  %v288_v7 = vsel %vm269_vm0, %v285_v4, %v287_v6  ;;  %v290_v9 = vsel %vm269_vm0, %v287_v6, %v289_v8  ;;  %v292_v11 = vsel %vm269_vm0, %v289_v8, %v291_v10  ;;  %v294_v13 = vsel %vm269_vm0, %v291_v10, %v293_v12  ;;  %v6626_v24 = vld [vmem:[%s9421_s1 + $0x100] ss:$8 sps:$4 sm:$0xff]   ;;  %v6629_v26 = vld [vmem:[%s9421_s1 + $0x110] ss:$8 sps:$4 sm:$0xff]   ;;  %v6634_v27 = vld [vmem:[%s9421_s1 + $0x124] ss:$8 sps:$4 sm:$0xff]  }
  0x20   :  { %672 = vmatprep.subr.bf16.mxu0 %v6589_v28  ;;  %v296_v15 = vsel %vm269_vm0, %v293_v12, %v295_v14  ;;  %v298_v17 = vsel %vm269_vm0, %v295_v14, %v297_v16  ;;  %v234_v20 = vld [vmem:[#allocation2 + $0x80] sm:$0xf]  ;;  %v300_v21 = vsel %vm269_vm0, %v297_v16, %v299_v19  ;;  %v6637_v29 = vld [vmem:[%s9421_s1 + $0x134] ss:$8 sps:$4 sm:$0xff]   ;;  %v6635_v30 = vld [vmem:[%s9421_s1 + $0x130] ss:$8 sps:$4 sm:$0xff]  }
  0x21   :  { %v301_v22 = vrot.slane %v234_v20, 4  ;;  %v6632_v28 = vld [vmem:[%s9421_s1 + $0x120] ss:$8 sps:$4 sm:$0xff]   ;;  %v6640_v32 = vld [vmem:[%s9421_s1 + $0x144] ss:$8 sps:$4 sm:$0xff]  }
  0x22   :  { %432 = vmatmul.mubr.bf16.vlgmr.msra.gmra.mrb[0].mxu0 %v272_v35 }
  0x23   :  { %673 = vmatpush1.bf16.msra.mxu0 %v6587_v33  ;;  %441 = vmatprep.mubr.bf16.mxu0 %v7272_v2  ;;  %v6638_v33 = vld [vmem:[%s9421_s1 + $0x140] ss:$8 sps:$4 sm:$0xff]  }
  0x24   :  { %674 = vmatprep.subr.bf16.mxu0 %v6594_v34  ;;  %v6643_v34 = vld [vmem:[%s9421_s1 + $0x154] ss:$8 sps:$4 sm:$0xff]  }
  0x27   :  { %675 = vmatpush1.bf16.msra.mxu0 %v6592_v38 }
  0x28   :  { %676 = vmatprep.subr.bf16.mxu0 %v6599_v42 }
  0x2a   :  { %442 = vmatmul.mubr.bf16.gmra.mrb[4].mxu0 %v274_v44 }
  0x2b   :  { %451 = vmatprep.mubr.bf16.mxu0 %v7272_v2  ;;  %677 = vmatpush1.bf16.msra.mxu0 %v6597_v45 }
  0x2c   :  { %678 = vmatprep.subr.bf16.mxu0 %v6604_v46 }
  0x2f   :  { %679 = vmatpush1.bf16.msra.mxu0 %v6602_v47 }
  0x30   :  { %680 = vmatprep.subr.bf16.mxu0 %v6609_v48 }
  0x32   :  { %452 = vmatmul.mubr.bf16.gmra.mrb[8].mxu0 %v276_v51 }
  0x33   :  { %461 = vmatprep.mubr.bf16.mxu0 %v7272_v2  ;;  %681 = vmatpush1.bf16.msra.mxu0 %v6607_v50 }
  0x34   :  { %682 = vmatprep.subr.bf16.mxu0 %v6614_v52 }
  0x37   :  { %683 = vmatpush1.bf16.msra.mxu0 %v6612_v53 }
  0x38   :  { %684 = vmatprep.subr.bf16.mxu0 %v6619_v54 }
  0x3a   :  { %462 = vmatmul.mubr.bf16.gmra.mrb[12].mxu0 %v278_v58 }
  0x3b   :  { %471 = vmatprep.mubr.bf16.mxu0 %v7272_v2  ;;  %685 = vmatpush1.bf16.msra.mxu0 %v6617_v56 }
  0x3c   :  { %686 = vmatprep.subr.bf16.mxu0 %v6624_v57 }
  0x3f   :  { %687 = vmatpush1.bf16.msra.mxu0 %v6622_v59 }
  0x40   :  { %963 = vmatprep.subr.bf16.mxu0 %v6628_v60 }
  0x42   :  { %472 = vmatmul.mubr.bf16.gmra.mrb[16].mxu0 %v280_v62 }
  0x43   :  { %481 = vmatprep.mubr.bf16.mxu0 %v7272_v2 }
  0x4a   :  { %482 = vmatmul.mubr.bf16.gmra.mrb[20].mxu0 %v282_v0 }
  0x4b   :  { %491 = vmatprep.mubr.bf16.mxu0 %v7272_v2 }
  0x52   :  { %492 = vmatmul.mubr.bf16.gmra.mrb[24].mxu0 %v284_v3 }
  0x53   :  { %501 = vmatprep.mubr.bf16.mxu0 %v7272_v2 }
  0x5a   :  { %502 = vmatmul.mubr.bf16.gmra.mrb[28].mxu0 %v286_v5 }
  0x5b   :  { %511 = vmatprep.mubr.bf16.mxu0 %v7272_v2 }
  0x62   :  { %512 = vmatmul.mubr.bf16.gmra.mrb[32].mxu0 %v288_v7 }
  0x63   :  { %521 = vmatprep.mubr.bf16.mxu0 %v7272_v2 }
  0x6a   :  { %522 = vmatmul.mubr.bf16.gmra.mrb[36].mxu0 %v290_v9 }
  0x6b   :  { %531 = vmatprep.mubr.bf16.mxu0 %v7272_v2 }
  0x72   :  { %532 = vmatmul.mubr.bf16.gmra.mrb[40].mxu0 %v292_v11 }
  0x73   :  { %541 = vmatprep.mubr.bf16.mxu0 %v7272_v2 }
  0x7a   :  { %542 = vmatmul.mubr.bf16.gmra.mrb[44].mxu0 %v294_v13 }
  0x7b   :  { %551 = vmatprep.mubr.bf16.mxu0 %v7272_v2 }
  0x82   :  { %552 = vmatmul.mubr.bf16.gmra.mrb[48].mxu0 %v296_v15 }
  0x83   :  { %561 = vmatprep.mubr.bf16.mxu0 %v7272_v2  ;;  %v302_v2 = vsel %vm269_vm0, %v299_v19, %v301_v22 }
  0x8a   :  { %562 = vmatmul.mubr.bf16.gmra.mrb[52].mxu0 %v298_v17 }
  0x8b   :  { %571 = vmatprep.mubr.bf16.mxu0 %v7596_v18 }
  0x92   :  { %572 = vmatmul.mubr.bf16.gmra.mrb[56].mxu0 %v300_v21 }
  0x93   :  { %581 = vmatprep.mubr.bf16.mxu0 %v7596_v18 }
  0x9a   :  { %582 = vmatmul.mubr.bf16.gmra.mrb[60].mxu0 %v302_v2 }
  0x9b   :  { %704 = vmatprep.mubr.bf16.mxu0 %v7596_v18 }
  0xa2   :  { %705 = vmatmul.mubr.bf16.vlgmr.msra.gmra.mrb[0].mxu0 %v186_v23 }
  0xa3   :  { %964 = vmatpush1.bf16.msra.mxu0 %v6626_v24  ;;  %714 = vmatprep.mubr.bf16.mxu0 %v7596_v18 }
  0xa4   :  { %965 = vmatprep.subr.bf16.mxu0 %v6631_v25 }
  0xa7   :  { %966 = vmatpush1.bf16.msra.mxu0 %v6629_v26 }
  0xa8   :  { %967 = vmatprep.subr.bf16.mxu0 %v6634_v27 }
  0xaa   :  { %715 = vmatmul.mubr.bf16.gmra.mrb[4].mxu0 %v7626_v31 }
  0xab   :  { %724 = vmatprep.mubr.bf16.mxu0 %v7596_v18  ;;  %968 = vmatpush1.bf16.msra.mxu0 %v6632_v28 }
  0xac   :  { %969 = vmatprep.subr.bf16.mxu0 %v6637_v29 }
  0xaf   :  { %970 = vmatpush1.bf16.msra.mxu0 %v6635_v30 }
  0xb0   :  { %971 = vmatprep.subr.bf16.mxu0 %v6640_v32 }
  0xb1   :  { %15 = vsyncpa [#allocation8], 0  ;;  %v7639_v35 = vld [vmem:[#allocation2 + $0x10] sm:$0xff]  ;;  %v6646_v37 = vld [vmem:[%s9421_s1 + $0x164] ss:$8 sps:$4 sm:$0xff]   ;;  %v7797_v26 = vrot.slane %v7596_v18, 4  ;;  %v1222_v29 = vlaneseq }
  0xb2   :  { %725 = vmatmul.mubr.bf16.gmra.mrb[8].mxu0 %v7639_v35  ;;  %v6641_v36 = vld [vmem:[%s9421_s1 + $0x150] ss:$8 sps:$4 sm:$0xff]   ;;  %v6644_v38 = vld [vmem:[%s9421_s1 + $0x160] ss:$8 sps:$4 sm:$0xff]   ;;  %v6649_v39 = vld [vmem:[%s9421_s1 + $0x174] ss:$8 sps:$4 sm:$0xff]  }
  0xb3   :  { %734 = vmatprep.mubr.bf16.mxu0 %v7596_v18  ;;  %972 = vmatpush1.bf16.msra.mxu0 %v6638_v33  ;;  %v7233_v40 = vld [vmem:[#allocation2 + $0x18] sm:$0xff]  ;;  %v7234_v42 = vld [vmem:[#allocation2 + $0x20] sm:$0xff]  ;;  %v7235_v43 = vld [vmem:[#allocation2 + $0x28] sm:$0xff]  ;;  %v1223_v30 = vshrl.u32 %v1222_v29, 7  ;;  %vm7274_vm1 = vmmov 0  }
  0xb4   :  { %973 = vmatprep.subr.bf16.mxu0 %v6643_v34  ;;  %v6647_v41 = vld [vmem:[%s9421_s1 + $0x170] ss:$8 sps:$4 sm:$0xff]   ;;  %v7238_v46 = vld [vmem:[#allocation2 + $0x40] sm:$0xff]  ;;  %v7239_v47 = vld [vmem:[#allocation2 + $0x48] sm:$0xff] }
  0xb5   :  { %v7236_v44 = vld [vmem:[#allocation2 + $0x30] sm:$0xff]  ;;  %v7237_v45 = vld [vmem:[#allocation2 + $0x38] sm:$0xff]  ;;  %v7242_v50 = vld [vmem:[#allocation2 + $0x60] sm:$0xff] }
  0xb6   :  { %v7240_v48 = vld [vmem:[#allocation2 + $0x50] sm:$0xff]  ;;  %v7241_v49 = vld [vmem:[#allocation2 + $0x58] sm:$0xff]  ;;  %v7668_v51 = vld [vmem:[#allocation2 + $0x68] sm:$0xff] }
  0xb7   :  { %974 = vmatpush1.bf16.msra.mxu0 %v6641_v36  ;;  %v7672_v52 = vld [vmem:[#allocation2 + $0x70] sm:$0xff]  ;;  %v7676_v53 = vld [vmem:[#allocation2 + $0x78] sm:$0xff]  ;;  %v6650_v54 = vld [vmem:[%s9422_s2 + $0x104] ss:$8 sps:$4 sm:$0xff]  }
  0xb8   :  { %975 = vmatprep.subr.bf16.mxu0 %v6646_v37  ;;  %v6652_v55 = vld [vmem:[%s9422_s2 + $0x100] ss:$8 sps:$4 sm:$0xff]   ;;  %v6653_v56 = vld [vmem:[%s9422_s2 + $0x114] ss:$8 sps:$4 sm:$0xff]   ;;  %1873 = vmatprep.subr.bf16.mxu1 %v6650_v54  ;;  %v6655_v57 = vld [vmem:[%s9422_s2 + $0x110] ss:$8 sps:$4 sm:$0xff]  }
  0xb9   :  { %1874 = vmatpush1.bf16.msra.mxu1 %v6652_v55  ;;  %v6656_v58 = vld [vmem:[%s9422_s2 + $0x124] ss:$8 sps:$4 sm:$0xff]   ;;  %v6658_v59 = vld [vmem:[%s9422_s2 + $0x120] ss:$8 sps:$4 sm:$0xff]   ;;  %v6659_v60 = vld [vmem:[%s9422_s2 + $0x134] ss:$8 sps:$4 sm:$0xff]  }
  0xba   :  { %735 = vmatmul.mubr.bf16.gmra.mrb[12].mxu0 %v7233_v40  ;;  %1875 = vmatprep.subr.bf16.mxu1 %v6653_v56  ;;  %v6661_v61 = vld [vmem:[%s9422_s2 + $0x130] ss:$8 sps:$4 sm:$0xff]   ;;  %v6662_v62 = vld [vmem:[%s9422_s2 + $0x144] ss:$8 sps:$4 sm:$0xff]   ;;  %v6664_v63 = vld [vmem:[%s9422_s2 + $0x140] ss:$8 sps:$4 sm:$0xff]  }
  0xbb   :  { %744 = vmatprep.mubr.bf16.mxu0 %v7596_v18  ;;  %976 = vmatpush1.bf16.msra.mxu0 %v6644_v38  ;;  %v6665_v0 = vld [vmem:[%s9422_s2 + $0x154] ss:$8 sps:$4 sm:$0xff]   ;;  %v6667_v1 = vld [vmem:[%s9422_s2 + $0x150] ss:$8 sps:$4 sm:$0xff]   ;;  %v6668_v3 = vld [vmem:[%s9422_s2 + $0x164] ss:$8 sps:$4 sm:$0xff]  }
  0xbc   :  { %977 = vmatprep.subr.bf16.mxu0 %v6649_v39  ;;  %v6670_v4 = vld [vmem:[%s9422_s2 + $0x160] ss:$8 sps:$4 sm:$0xff]   ;;  %v6671_v5 = vld [vmem:[%s9422_s2 + $0x174] ss:$8 sps:$4 sm:$0xff]   ;;  %v6673_v6 = vld [vmem:[%s9422_s2 + $0x170] ss:$8 sps:$4 sm:$0xff]  }
  0xbd   :  { %1876 = vmatpush1.bf16.msra.mxu1 %v6655_v57  ;;  %v6674_v7 = vld [vmem:[%s9422_s2 + $0x184] ss:$8 sps:$4 sm:$0xff]   ;;  %v6676_v8 = vld [vmem:[%s9422_s2 + $0x180] ss:$8 sps:$4 sm:$0xff]   ;;  %v6677_v9 = vld [vmem:[%s9422_s2 + $0x194] ss:$8 sps:$4 sm:$0xff]  }
  0xbe   :  { %1877 = vmatprep.subr.bf16.mxu1 %v6656_v58  ;;  %v6679_v10 = vld [vmem:[%s9422_s2 + $0x190] ss:$8 sps:$4 sm:$0xff]   ;;  %v6680_v11 = vld [vmem:[%s9422_s2 + $0x1a4] ss:$8 sps:$4 sm:$0xff]   ;;  %v6682_v12 = vld [vmem:[%s9422_s2 + $0x1a0] ss:$8 sps:$4 sm:$0xff]  }
  0xbf   :  { %978 = vmatpush1.bf16.msra.mxu0 %v6647_v41  ;;  %v6683_v13 = vld [vmem:[%s9422_s2 + $0x1b4] ss:$8 sps:$4 sm:$0xff]   ;;  %v6685_v14 = vld [vmem:[%s9422_s2 + $0x1b0] ss:$8 sps:$4 sm:$0xff]   ;;  %v6686_v15 = vld [vmem:[%s9422_s2 + $0x1c4] ss:$8 sps:$4 sm:$0xff]  }
  0xc0   :  { %v6688_v16 = vld [vmem:[%s9422_s2 + $0x1c0] ss:$8 sps:$4 sm:$0xff]   ;;  %v6689_v17 = vld [vmem:[%s9422_s2 + $0x1d4] ss:$8 sps:$4 sm:$0xff]   ;;  %v6691_v19 = vld [vmem:[%s9422_s2 + $0x1d0] ss:$8 sps:$4 sm:$0xff]  }
  0xc1   :  { %1878 = vmatpush1.bf16.msra.mxu1 %v6658_v59  ;;  %v865_v20 = vld [vmem:[#allocation2 + $0x80] sm:$0xff]  ;;  %v6695_v2 = vld [vmem:[%s9422_s2 + $0x1f4] ss:$8 sps:$4 sm:$0xff]   ;;  %v6697_v23 = vld [vmem:[%s9422_s2 + $0x1f0] ss:$8 sps:$4 sm:$0xff]  }
  0xc2   :  { %745 = vmatmul.mubr.bf16.gmra.mrb[16].mxu0 %v7234_v42  ;;  %1879 = vmatprep.subr.bf16.mxu1 %v6659_v60  ;;  %v6692_v21 = vld [vmem:[%s9422_s2 + $0x1e4] ss:$8 sps:$4 sm:$0xff]   ;;  %v6694_v22 = vld [vmem:[%s9422_s2 + $0x1e0] ss:$8 sps:$4 sm:$0xff]   ;;  %v1595_v24 = vld [vmem:[#allocation3 + $0x8] sm:$0xf0] }
  0xc3   :  { %754 = vmatprep.mubr.bf16.mxu0 %v7596_v18  ;;  %v1666_v25 = vrot.slane %v1595_v24, 4  ;;  %v6700_v28 = vld [vmem:[%s9422_s2 + $0x4] ss:$8 sps:$4 sm:$0xff]   ;;  %v1220_v32 = vld [vmem:[%s9426_s6] ss:$8 sm:$0x3] }
  0xc4   :  { %v1296_v33 = vld [vmem:[%s9427_s7] ss:$8 sm:$0x3] }
  0xc5   :  { %1880 = vmatpush1.bf16.msra.mxu1 %v6661_v61  ;;  %v1668_v27 = vsel %vm269_vm0, %v1666_v25, %v7797_v26 }
  0xc6   :  { %1881 = vmatprep.subr.bf16.mxu1 %v6662_v62  ;;  %1905 = vmatprep.mubr.bf16.mxu1 %v1668_v27 }
  0xc9   :  { %1882 = vmatpush1.bf16.msra.mxu1 %v6664_v63 }
  0xca   :  { %755 = vmatmul.mubr.bf16.gmra.mrb[20].mxu0 %v7235_v43  ;;  %1883 = vmatprep.subr.bf16.mxu1 %v6665_v0 }
  0xcb   :  { %764 = vmatprep.mubr.bf16.mxu0 %v7596_v18 }
  0xcd   :  { %1884 = vmatpush1.bf16.msra.mxu1 %v6667_v1 }
  0xce   :  { %1885 = vmatprep.subr.bf16.mxu1 %v6668_v3 }
  0xd1   :  { %1886 = vmatpush1.bf16.msra.mxu1 %v6670_v4 }
  0xd2   :  { %765 = vmatmul.mubr.bf16.gmra.mrb[24].mxu0 %v7236_v44  ;;  %1887 = vmatprep.subr.bf16.mxu1 %v6671_v5 }
  0xd3   :  { %774 = vmatprep.mubr.bf16.mxu0 %v7596_v18 }
  0xd5   :  { %1888 = vmatpush1.bf16.msra.mxu1 %v6673_v6 }
  0xd6   :  { %1889 = vmatprep.subr.bf16.mxu1 %v6674_v7 }
  0xd9   :  { %1890 = vmatpush1.bf16.msra.mxu1 %v6676_v8 }
  0xda   :  { %775 = vmatmul.mubr.bf16.gmra.mrb[28].mxu0 %v7237_v45  ;;  %1891 = vmatprep.subr.bf16.mxu1 %v6677_v9 }
  0xdb   :  { %784 = vmatprep.mubr.bf16.mxu0 %v7596_v18 }
  0xdd   :  { %1892 = vmatpush1.bf16.msra.mxu1 %v6679_v10 }
  0xde   :  { %1893 = vmatprep.subr.bf16.mxu1 %v6680_v11 }
  0xe1   :  { %1894 = vmatpush1.bf16.msra.mxu1 %v6682_v12 }
  0xe2   :  { %785 = vmatmul.mubr.bf16.gmra.mrb[32].mxu0 %v7238_v46  ;;  %1895 = vmatprep.subr.bf16.mxu1 %v6683_v13 }
  0xe3   :  { %794 = vmatprep.mubr.bf16.mxu0 %v7596_v18 }
  0xe5   :  { %1896 = vmatpush1.bf16.msra.mxu1 %v6685_v14 }
  0xe6   :  { %1897 = vmatprep.subr.bf16.mxu1 %v6686_v15 }
  0xe9   :  { %1898 = vmatpush1.bf16.msra.mxu1 %v6688_v16 }
  0xea   :  { %795 = vmatmul.mubr.bf16.gmra.mrb[36].mxu0 %v7239_v47  ;;  %1899 = vmatprep.subr.bf16.mxu1 %v6689_v17 }
  0xeb   :  { %804 = vmatprep.mubr.bf16.mxu0 %v7596_v18 }
  0xed   :  { %1900 = vmatpush1.bf16.msra.mxu1 %v6691_v19 }
  0xee   :  { %1901 = vmatprep.subr.bf16.mxu1 %v6692_v21 }
  0xf1   :  { %1902 = vmatpush1.bf16.msra.mxu1 %v6694_v22 }
  0xf2   :  { %805 = vmatmul.mubr.bf16.gmra.mrb[40].mxu0 %v7240_v48  ;;  %1903 = vmatprep.subr.bf16.mxu1 %v6695_v2 }
  0xf3   :  { %814 = vmatprep.mubr.bf16.mxu0 %v7596_v18 }
  0xf5   :  { %1904 = vmatpush1.bf16.msra.mxu1 %v6697_v23 }
  0xf6   :  { %2146 = vmatprep.subr.bf16.mxu1 %v6700_v28 }
  0xfa   :  { %815 = vmatmul.mubr.bf16.gmra.mrb[44].mxu0 %v7241_v49 }
  0xfb   :  { %824 = vmatprep.mubr.bf16.mxu0 %v7596_v18 }
 0x102   :  { %825 = vmatmul.mubr.bf16.gmra.mrb[48].mxu0 %v7242_v50 }
 0x103   :  { %834 = vmatprep.mubr.bf16.mxu0 %v7596_v18 }
 0x10a   :  { %835 = vmatmul.mubr.bf16.gmra.mrb[52].mxu0 %v7668_v51 }
 0x10b   :  { %844 = vmatprep.mubr.bf16.mxu0 %v7596_v18 }
 0x112   :  { %845 = vmatmul.mubr.bf16.gmra.mrb[56].mxu0 %v7672_v52 }
 0x113   :  { %854 = vmatprep.mubr.bf16.mxu0 %v7596_v18 }
 0x11a   :  { %855 = vmatmul.mubr.bf16.gmra.mrb[60].mxu0 %v7676_v53 }
 0x11b   :  { %995 = vmatprep.mubr.bf16.mxu0 %v7596_v18 }
 0x122   :  { %996 = vmatmul.mubr.bf16.vlgmr.msra.gmra.mrb[0].mxu0 %v7626_v31  ;;  %v7804_v31 = vsub.s32 0, %v1223_v30 }
 0x123   :  { %1005 = vmatprep.mubr.bf16.mxu0 %v7596_v18 }
 0x124   :  { %v7815_v34 = vrot.slane %v1220_v32, %v7804_v31  ;;  %v7821_v36 = vrot.slane %v1296_v33, %v7804_v31 }
 0x12a   :  { %1006 = vmatmul.mubr.bf16.gmra.mrb[4].mxu0 %v7639_v35 }
 0x12b   :  { %1015 = vmatprep.mubr.bf16.mxu0 %v7596_v18 }
 0x132   :  { %1016 = vmatmul.mubr.bf16.gmra.mrb[8].mxu0 %v7233_v40 }
 0x133   :  { %1025 = vmatprep.mubr.bf16.mxu0 %v7596_v18 }
 0x13a   :  { %1026 = vmatmul.mubr.bf16.gmra.mrb[12].mxu0 %v7234_v42 }
 0x13b   :  { %1035 = vmatprep.mubr.bf16.mxu0 %v7596_v18 }
 0x142   :  { %1036 = vmatmul.mubr.bf16.gmra.mrb[16].mxu0 %v7235_v43 }
 0x143   :  { %1045 = vmatprep.mubr.bf16.mxu0 %v7596_v18 }
 0x14a   :  { %1046 = vmatmul.mubr.bf16.gmra.mrb[20].mxu0 %v7236_v44 }
 0x14b   :  { %1055 = vmatprep.mubr.bf16.mxu0 %v7596_v18 }
 0x152   :  { %1056 = vmatmul.mubr.bf16.gmra.mrb[24].mxu0 %v7237_v45 }
 0x153   :  { %1065 = vmatprep.mubr.bf16.mxu0 %v7596_v18 }
 0x15a   :  { %1066 = vmatmul.mubr.bf16.gmra.mrb[28].mxu0 %v7238_v46 }
 0x15b   :  { %1075 = vmatprep.mubr.bf16.mxu0 %v7596_v18 }
 0x162   :  { %1076 = vmatmul.mubr.bf16.gmra.mrb[32].mxu0 %v7239_v47 }
 0x163   :  { %1085 = vmatprep.mubr.bf16.mxu0 %v7596_v18 }
 0x16a   :  { %1086 = vmatmul.mubr.bf16.gmra.mrb[36].mxu0 %v7240_v48 }
 0x16b   :  { %1095 = vmatprep.mubr.bf16.mxu0 %v7596_v18 }
 0x172   :  { %1096 = vmatmul.mubr.bf16.gmra.mrb[40].mxu0 %v7241_v49 }
 0x173   :  { %1105 = vmatprep.mubr.bf16.mxu0 %v7596_v18 }
 0x17a   :  { %1106 = vmatmul.mubr.bf16.gmra.mrb[44].mxu0 %v7242_v50 }
 0x17b   :  { %1115 = vmatprep.mubr.bf16.mxu0 %v7596_v18 }
 0x182   :  { %1116 = vmatmul.mubr.bf16.gmra.mrb[48].mxu0 %v7668_v51 }
 0x183   :  { %1125 = vmatprep.mubr.bf16.mxu0 %v7596_v18 }
 0x18a   :  { %1126 = vmatmul.mubr.bf16.gmra.mrb[52].mxu0 %v7672_v52 }
 0x18b   :  { %1135 = vmatprep.mubr.bf16.mxu0 %v7596_v18 }
 0x192   :  { %1136 = vmatmul.mubr.bf16.gmra.mrb[56].mxu0 %v7676_v53 }
 0x193   :  { %1145 = vmatprep.mubr.bf16.mxu0 %v7596_v18  ;;  %v7809_v18 = vsub.s32 1, %v1223_v30 }
 0x195   :  { %v7818_v35 = vrot.slane %v1220_v32, %v7809_v18  ;;  %v7824_v38 = vrot.slane %v1296_v33, %v7809_v18 }
 0x19a   :  { %1146 = vmatmul.mubr.bf16.gmra.mrb[60].mxu0 %v865_v20 }
 0x1f5   :  { %v997_v37 = vpop.f32.mrb[0].mxu0 }
 0x1f6   :  { %v1232_v39 = vmul.f32 %v7815_v34, %v997_v37  ;;  %v999_v40 = vpop.f32.mrb[1].mxu0 }
 0x1f7   :  { %v1233_v41 = vmul.f32 %v7818_v35, %v999_v40  ;;  %v1001_v42 = vpop.f32.mrb[2].mxu0 }
 0x1f8   :  { %v1308_v43 = vadd.f32 %v7821_v36, %v1232_v39  ;;  %v1234_v44 = vmul.f32 %v7815_v34, %v1001_v42  ;;  %v1003_v45 = vpop.f32.mrb[3].mxu0 }
 0x1f9   :  { %v1309_v46 = vadd.f32 %v7824_v38, %v1233_v41  ;;  %v1235_v47 = vmul.f32 %v7818_v35, %v1003_v45 }
 0x1fa   :  { %v1372_v48 = vmax.f32 %v1308_v43, 0.0  ;;  %v1310_v49 = vadd.f32 %v7821_v36, %v1234_v44 }
 0x1fb   :  { %v1373_v50 = vmax.f32 %v1309_v46, 0.0  ;;  %v1311_v51 = vadd.f32 %v7824_v38, %v1235_v47 }
 0x1fc   :  { %v1374_v52 = vmax.f32 %v1310_v49, 0.0 }
 0x1fd   :  { %v1436_v53 = vmax.f32 %v1372_v48, %v1373_v50  ;;  %v1375_v54 = vmax.f32 %v1311_v51, 0.0  ;;  %v1007_v55 = vpop.f32.mrb[4].mxu0 }
 0x1fe   :  { %v1236_v56 = vmul.f32 %v7815_v34, %v1007_v55  ;;  %v1009_v57 = vpop.f32.mrb[5].mxu0 }
 0x1ff   :  { %v1437_v58 = vmax.f32 %v1374_v52, %v1375_v54  ;;  %v1237_v59 = vmul.f32 %v7818_v35, %v1009_v57  ;;  %v1011_v60 = vpop.f32.mrb[6].mxu0 }
 0x200   :  { %v1312_v61 = vadd.f32 %v7821_v36, %v1236_v56  ;;  %v1238_v62 = vmul.f32 %v7815_v34, %v1011_v60  ;;  %v1013_v63 = vpop.f32.mrb[7].mxu0 }
 0x201   :  { %v1468_v0 = vmax.f32 %v1436_v53, %v1437_v58  ;;  %v1313_v1 = vadd.f32 %v7824_v38, %v1237_v59  ;;  %v1239_v3 = vmul.f32 %v7818_v35, %v1013_v63 }
 0x202   :  { %v1376_v4 = vmax.f32 %v1312_v61, 0.0  ;;  %v1314_v5 = vadd.f32 %v7821_v36, %v1238_v62 }
 0x203   :  { %v1377_v6 = vmax.f32 %v1313_v1, 0.0  ;;  %v1315_v7 = vadd.f32 %v7824_v38, %v1239_v3 }
 0x204   :  { %v1378_v8 = vmax.f32 %v1314_v5, 0.0 }
 0x205   :  { %v1438_v9 = vmax.f32 %v1376_v4, %v1377_v6  ;;  %v1379_v10 = vmax.f32 %v1315_v7, 0.0  ;;  %v1017_v11 = vpop.f32.mrb[8].mxu0 }
 0x206   :  { %v1240_v12 = vmul.f32 %v7815_v34, %v1017_v11  ;;  %v1019_v13 = vpop.f32.mrb[9].mxu0 }
 0x207   :  { %v1439_v14 = vmax.f32 %v1378_v8, %v1379_v10  ;;  %v1241_v15 = vmul.f32 %v7818_v35, %v1019_v13  ;;  %v1021_v16 = vpop.f32.mrb[10].mxu0 }
 0x208   :  { %v1316_v17 = vadd.f32 %v7821_v36, %v1240_v12  ;;  %v1242_v19 = vmul.f32 %v7815_v34, %v1021_v16  ;;  %v1023_v20 = vpop.f32.mrb[11].mxu0 }
 0x209   :  { %v1469_v21 = vmax.f32 %v1438_v9, %v1439_v14  ;;  %v1317_v22 = vadd.f32 %v7824_v38, %v1241_v15  ;;  %v1243_v2 = vmul.f32 %v7818_v35, %v1023_v20 }
 0x20a   :  { %v1380_v23 = vmax.f32 %v1316_v17, 0.0  ;;  %v1318_v24 = vadd.f32 %v7821_v36, %v1242_v19 }
 0x20b   :  { %v1488_v25 = vpack.c.bf16 %v1469_v21, %v1468_v0  ;;  %v1381_v27 = vmax.f32 %v1317_v22, 0.0  ;;  %v1319_v28 = vadd.f32 %v7824_v38, %v1243_v2 }
 0x20c   :  { %v1382_v29 = vmax.f32 %v1318_v24, 0.0 }
 0x20d   :  { %v1504_v30 = vrot.slane %v1488_v25, 4  ;;  %v1440_v32 = vmax.f32 %v1380_v23, %v1381_v27  ;;  %v1383_v33 = vmax.f32 %v1319_v28, 0.0  ;;  %v1027_v37 = vpop.f32.mrb[12].mxu0 }
 0x20e   :  { %v1244_v39 = vmul.f32 %v7815_v34, %v1027_v37  ;;  %v1029_v40 = vpop.f32.mrb[13].mxu0  ;;  %v6703_v37 = vld [vmem:[%s9422_s2 + $0x14] ss:$8 sps:$4 sm:$0xff]  }
 0x20f   :  { %1528 = vst [vmem:[#allocation3] sm:$0xf0] %v1504_v30  ;;  %v1441_v41 = vmax.f32 %v1382_v29, %v1383_v33  ;;  %v1245_v42 = vmul.f32 %v7818_v35, %v1029_v40  ;;  %v1031_v43 = vpop.f32.mrb[14].mxu0  ;;  %v6698_v29 = vld [vmem:[%s9422_s2] ss:$8 sps:$4 sm:$0xff]  }
 0x210   :  { %v1320_v44 = vadd.f32 %v7821_v36, %v1244_v39  ;;  %v1246_v45 = vmul.f32 %v7815_v34, %v1031_v43  ;;  %v1033_v46 = vpop.f32.mrb[15].mxu0 }
 0x211   :  { %v1470_v47 = vmax.f32 %v1440_v32, %v1441_v41  ;;  %v1321_v48 = vadd.f32 %v7824_v38, %v1245_v42  ;;  %v1247_v49 = vmul.f32 %v7818_v35, %v1033_v46 }
 0x212   :  { %v1384_v50 = vmax.f32 %v1320_v44, 0.0  ;;  %v1322_v51 = vadd.f32 %v7821_v36, %v1246_v45  ;;  %v6701_v45 = vld [vmem:[%s9422_s2 + $0x10] ss:$8 sps:$4 sm:$0xff]  }
 0x213   :  { %v1385_v52 = vmax.f32 %v1321_v48, 0.0  ;;  %v1323_v53 = vadd.f32 %v7824_v38, %v1247_v49  ;;  %v6706_v49 = vld [vmem:[%s9422_s2 + $0x24] ss:$8 sps:$4 sm:$0xff]  }
 0x214   :  { %v1386_v54 = vmax.f32 %v1322_v51, 0.0 }
 0x215   :  { %v1442_v55 = vmax.f32 %v1384_v50, %v1385_v52  ;;  %v1387_v56 = vmax.f32 %v1323_v53, 0.0  ;;  %v1037_v57 = vpop.f32.mrb[16].mxu0 }
 0x216   :  { %v1248_v58 = vmul.f32 %v7815_v34, %v1037_v57  ;;  %v1039_v59 = vpop.f32.mrb[17].mxu0  ;;  %v1594_v16 = vld [vmem:[#allocation3] sm:$0xf0] }
 0x217   :  { %v1443_v60 = vmax.f32 %v1386_v54, %v1387_v56  ;;  %v1249_v61 = vmul.f32 %v7818_v35, %v1039_v59  ;;  %v1041_v62 = vpop.f32.mrb[18].mxu0  ;;  %v1663_v27 = vrot.slane %v1594_v16, 4 }
 0x218   :  { %v1324_v63 = vadd.f32 %v7821_v36, %v1248_v58  ;;  %v1250_v0 = vmul.f32 %v7815_v34, %v1041_v62  ;;  %v1043_v1 = vpop.f32.mrb[19].mxu0  ;;  %v6704_v58 = vld [vmem:[%s9422_s2 + $0x20] ss:$8 sps:$4 sm:$0xff]   ;;  %v6709_v62 = vld [vmem:[%s9422_s2 + $0x34] ss:$8 sps:$4 sm:$0xff]  }
 0x219   :  { %v1471_v3 = vmax.f32 %v1442_v55, %v1443_v60  ;;  %v1325_v4 = vadd.f32 %v7824_v38, %v1249_v61  ;;  %v1251_v5 = vmul.f32 %v7818_v35, %v1043_v1 }
 0x21a   :  { %v1388_v6 = vmax.f32 %v1324_v63, 0.0  ;;  %v1326_v7 = vadd.f32 %v7821_v36, %v1250_v0 }
 0x21b   :  { %v7865_v8 = vpack.c.bf16 %v1471_v3, %v1470_v47  ;;  %v1389_v9 = vmax.f32 %v1325_v4, 0.0  ;;  %v1327_v10 = vadd.f32 %v7824_v38, %v1251_v5 }
 0x21c   :  { %v1390_v11 = vmax.f32 %v1326_v7, 0.0 }
 0x21d   :  { %v1505_v12 = vrot.slane %v7865_v8, 4  ;;  %v1444_v13 = vmax.f32 %v1388_v6, %v1389_v9  ;;  %v1391_v14 = vmax.f32 %v1327_v10, 0.0  ;;  %v1047_v15 = vpop.f32.mrb[20].mxu0  ;;  %v6707_v6 = vld [vmem:[%s9422_s2 + $0x30] ss:$8 sps:$4 sm:$0xff]  }
 0x21e   :  { %v1252_v17 = vmul.f32 %v7815_v34, %v1047_v15  ;;  %v1049_v19 = vpop.f32.mrb[21].mxu0 }
 0x21f   :  { %v7873_v20 = vsel %vm269_vm0, %v1504_v30, %v1505_v12  ;;  %v1445_v21 = vmax.f32 %v1390_v11, %v1391_v14  ;;  %v1253_v22 = vmul.f32 %v7818_v35, %v1049_v19  ;;  %v1051_v2 = vpop.f32.mrb[22].mxu0 }
 0x220   :  { %v1328_v23 = vadd.f32 %v7821_v36, %v1252_v17  ;;  %v1254_v24 = vmul.f32 %v7815_v34, %v1051_v2  ;;  %v1053_v25 = vpop.f32.mrb[23].mxu0  ;;  %v1664_v28 = vrot.slane %v7873_v20, 4 }
 0x221   :  { %v1472_v32 = vmax.f32 %v1444_v13, %v1445_v21  ;;  %v1329_v30 = vadd.f32 %v7824_v38, %v1253_v22  ;;  %v1255_v33 = vmul.f32 %v7818_v35, %v1053_v25  ;;  %v6712_v13 = vld [vmem:[%s9422_s2 + $0x44] ss:$8 sps:$4 sm:$0xff]   ;;  %v6710_v25 = vld [vmem:[%s9422_s2 + $0x40] ss:$8 sps:$4 sm:$0xff]  }
 0x222   :  { %v1392_v39 = vmax.f32 %v1328_v23, 0.0  ;;  %v1330_v40 = vadd.f32 %v7821_v36, %v1254_v24  ;;  %v1665_v41 = vsel %vm269_vm0, %v1663_v27, %v1664_v28 }
 0x223   :  { %v1393_v42 = vmax.f32 %v1329_v30, 0.0  ;;  %v1331_v43 = vadd.f32 %v7824_v38, %v1255_v33  ;;  %1906 = vmatmul.mubr.bf16.vlgmr.msra.gmra.mrb[0].mxu1 %v1665_v41  ;;  %v6713_v41 = vld [vmem:[%s9422_s2 + $0x50] ss:$8 sps:$4 sm:$0xff]  }
 0x224   :  { %v1394_v44 = vmax.f32 %v1330_v40, 0.0  ;;  %1915 = vmatprep.mubr.bf16.mxu1 %v7797_v26  ;;  %2147 = vmatpush1.bf16.msra.mxu1 %v6698_v29  ;;  %v6715_v29 = vld [vmem:[%s9422_s2 + $0x54] ss:$8 sps:$4 sm:$0xff]  }
 0x225   :  { %v1446_v46 = vmax.f32 %v1392_v39, %v1393_v42  ;;  %v1395_v47 = vmax.f32 %v1331_v43, 0.0  ;;  %v1057_v48 = vpop.f32.mrb[24].mxu0  ;;  %2148 = vmatprep.subr.bf16.mxu1 %v6703_v37 }
 0x226   :  { %v1256_v50 = vmul.f32 %v7815_v34, %v1057_v48  ;;  %v1059_v51 = vpop.f32.mrb[25].mxu0 }
 0x227   :  { %v1447_v52 = vmax.f32 %v1394_v44, %v1395_v47  ;;  %v1257_v53 = vmul.f32 %v7818_v35, %v1059_v51  ;;  %v1061_v54 = vpop.f32.mrb[26].mxu0 }
 0x228   :  { %v1332_v55 = vadd.f32 %v7821_v36, %v1256_v50  ;;  %v1258_v56 = vmul.f32 %v7815_v34, %v1061_v54  ;;  %v1063_v57 = vpop.f32.mrb[27].mxu0  ;;  %2149 = vmatpush1.bf16.msra.mxu1 %v6701_v45 }
 0x229   :  { %v1473_v59 = vmax.f32 %v1446_v46, %v1447_v52  ;;  %v1333_v60 = vadd.f32 %v7824_v38, %v1257_v53  ;;  %v1259_v61 = vmul.f32 %v7818_v35, %v1063_v57  ;;  %2150 = vmatprep.subr.bf16.mxu1 %v6706_v49  ;;  %v6716_v53 = vld [vmem:[%s9422_s2 + $0x60] ss:$8 sps:$4 sm:$0xff]   ;;  %v6721_v57 = vld [vmem:[%s9422_s2 + $0x74] ss:$8 sps:$4 sm:$0xff]  }
 0x22a   :  { %v1396_v63 = vmax.f32 %v1332_v55, 0.0  ;;  %v1334_v0 = vadd.f32 %v7821_v36, %v1258_v56 }
 0x22b   :  { %v7912_v1 = vpack.c.bf16 %v1473_v59, %v1472_v32  ;;  %v1397_v3 = vmax.f32 %v1333_v60, 0.0  ;;  %v1335_v4 = vadd.f32 %v7824_v38, %v1259_v61 }
 0x22c   :  { %v1398_v5 = vmax.f32 %v1334_v0, 0.0  ;;  %2151 = vmatpush1.bf16.msra.mxu1 %v6704_v58  ;;  %v6719_v0 = vld [vmem:[%s9422_s2 + $0x70] ss:$8 sps:$4 sm:$0xff]  }
 0x22d   :  { %v1507_v7 = vrot.slane %v7912_v1, 4  ;;  %v1448_v9 = vmax.f32 %v1396_v63, %v1397_v3  ;;  %v1399_v10 = vmax.f32 %v1335_v4, 0.0  ;;  %v1067_v11 = vpop.f32.mrb[28].mxu0  ;;  %2152 = vmatprep.subr.bf16.mxu1 %v6709_v62 }
 0x22e   :  { %v1260_v14 = vmul.f32 %v7815_v34, %v1067_v11  ;;  %v1069_v15 = vpop.f32.mrb[29].mxu0 }
 0x22f   :  { %v7928_v16 = vsel %vm269_vm0, %v1505_v12, %v1507_v7  ;;  %v1449_v17 = vmax.f32 %v1398_v5, %v1399_v10  ;;  %v1261_v19 = vmul.f32 %v7818_v35, %v1069_v15  ;;  %v1071_v21 = vpop.f32.mrb[30].mxu0 }
 0x230   :  { %v1336_v22 = vadd.f32 %v7821_v36, %v1260_v14  ;;  %v1262_v2 = vmul.f32 %v7815_v34, %v1071_v21  ;;  %v1073_v23 = vpop.f32.mrb[31].mxu0  ;;  %v1669_v24 = vrot.slane %v7928_v16, 4  ;;  %2153 = vmatpush1.bf16.msra.mxu1 %v6707_v6 }
 0x231   :  { %v1474_v8 = vmax.f32 %v1448_v9, %v1449_v17  ;;  %v1337_v12 = vadd.f32 %v7824_v38, %v1261_v19  ;;  %v1263_v27 = vmul.f32 %v7818_v35, %v1073_v23  ;;  %2154 = vmatprep.subr.bf16.mxu1 %v6712_v13  ;;  %v6724_v9 = vld [vmem:[%s9422_s2 + $0x84] ss:$8 sps:$4 sm:$0xff]   ;;  %v6722_v23 = vld [vmem:[%s9422_s2 + $0x80] ss:$8 sps:$4 sm:$0xff]  }
 0x232   :  { %v1400_v32 = vmax.f32 %v1336_v22, 0.0  ;;  %v1338_v30 = vadd.f32 %v7821_v36, %v1262_v2  ;;  %v1670_v33 = vsel %vm269_vm0, %v1664_v28, %v1669_v24  ;;  %v6718_v28 = vld [vmem:[%s9422_s2 + $0x64] ss:$8 sps:$4 sm:$0xff]  }
 0x233   :  { %v1401_v37 = vmax.f32 %v1337_v12, 0.0  ;;  %v1339_v39 = vadd.f32 %v7824_v38, %v1263_v27  ;;  %1916 = vmatmul.mubr.bf16.gmra.mrb[4].mxu1 %v1670_v33 }
 0x234   :  { %v1402_v40 = vmax.f32 %v1338_v30, 0.0  ;;  %1925 = vmatprep.mubr.bf16.mxu1 %v7797_v26  ;;  %2155 = vmatpush1.bf16.msra.mxu1 %v6710_v25 }
 0x235   :  { %v1450_v42 = vmax.f32 %v1400_v32, %v1401_v37  ;;  %v1403_v43 = vmax.f32 %v1339_v39, 0.0  ;;  %v1077_v44 = vpop.f32.mrb[32].mxu0  ;;  %2156 = vmatprep.subr.bf16.mxu1 %v6715_v29  ;;  %v6725_v37 = vld [vmem:[%s9422_s2 + $0x90] ss:$8 sps:$4 sm:$0xff]  }
 0x236   :  { %v1264_v45 = vmul.f32 %v7815_v34, %v1077_v44  ;;  %v1079_v46 = vpop.f32.mrb[33].mxu0 }
 0x237   :  { %v1451_v47 = vmax.f32 %v1402_v40, %v1403_v43  ;;  %v1265_v48 = vmul.f32 %v7818_v35, %v1079_v46  ;;  %v1081_v49 = vpop.f32.mrb[34].mxu0 }
 0x238   :  { %v1340_v50 = vadd.f32 %v7821_v36, %v1264_v45  ;;  %v1266_v51 = vmul.f32 %v7815_v34, %v1081_v49  ;;  %v1083_v52 = vpop.f32.mrb[35].mxu0  ;;  %2157 = vmatpush1.bf16.msra.mxu1 %v6713_v41  ;;  %v6728_v49 = vld [vmem:[%s9422_s2 + $0xa0] ss:$8 sps:$4 sm:$0xff]  }
 0x239   :  { %v1475_v54 = vmax.f32 %v1450_v42, %v1451_v47  ;;  %v1341_v55 = vadd.f32 %v7824_v38, %v1265_v48  ;;  %v1267_v56 = vmul.f32 %v7818_v35, %v1083_v52  ;;  %2158 = vmatprep.subr.bf16.mxu1 %v6718_v28 }
 0x23a   :  { %v1404_v58 = vmax.f32 %v1340_v50, 0.0  ;;  %v1342_v59 = vadd.f32 %v7821_v36, %v1266_v51 }
 0x23b   :  { %v7969_v60 = vpack.c.bf16 %v1475_v54, %v1474_v8  ;;  %v1405_v61 = vmax.f32 %v1341_v55, 0.0  ;;  %v1343_v62 = vadd.f32 %v7824_v38, %v1267_v56  ;;  %v6727_v8 = vld [vmem:[%s9422_s2 + $0x94] ss:$8 sps:$4 sm:$0xff]  }
 0x23c   :  { %v1406_v63 = vmax.f32 %v1342_v59, 0.0  ;;  %2159 = vmatpush1.bf16.msra.mxu1 %v6716_v53  ;;  %v6733_v53 = vld [vmem:[%s9422_s2 + $0xb4] ss:$8 sps:$4 sm:$0xff]  }
 0x23d   :  { %v1509_v3 = vrot.slane %v7969_v60, 4  ;;  %v1452_v4 = vmax.f32 %v1404_v58, %v1405_v61  ;;  %v1407_v5 = vmax.f32 %v1343_v62, 0.0  ;;  %v1087_v6 = vpop.f32.mrb[36].mxu0  ;;  %2160 = vmatprep.subr.bf16.mxu1 %v6721_v57  ;;  %v6731_v61 = vld [vmem:[%s9422_s2 + $0xb0] ss:$8 sps:$4 sm:$0xff]  }
 0x23e   :  { %v1268_v10 = vmul.f32 %v7815_v34, %v1087_v6  ;;  %v1089_v11 = vpop.f32.mrb[37].mxu0 }
 0x23f   :  { %v7985_v13 = vsel %vm269_vm0, %v1507_v7, %v1509_v3  ;;  %v1453_v14 = vmax.f32 %v1406_v63, %v1407_v5  ;;  %v1269_v15 = vmul.f32 %v7818_v35, %v1089_v11  ;;  %v1091_v17 = vpop.f32.mrb[38].mxu0  ;;  %v6736_v5 = vld [vmem:[%s9422_s2 + $0xc4] ss:$8 sps:$4 sm:$0xff]  }
 0x240   :  { %v1344_v19 = vadd.f32 %v7821_v36, %v1268_v10  ;;  %v1270_v21 = vmul.f32 %v7815_v34, %v1091_v17  ;;  %v1093_v22 = vpop.f32.mrb[39].mxu0  ;;  %v1673_v2 = vrot.slane %v7985_v13, 4  ;;  %2161 = vmatpush1.bf16.msra.mxu1 %v6719_v0 }
 0x241   :  { %v1476_v1 = vmax.f32 %v1452_v4, %v1453_v14  ;;  %v1345_v7 = vadd.f32 %v7824_v38, %v1269_v15  ;;  %v1271_v25 = vmul.f32 %v7818_v35, %v1093_v22  ;;  %2162 = vmatprep.subr.bf16.mxu1 %v6724_v9 }
 0x242   :  { %v1408_v12 = vmax.f32 %v1344_v19, 0.0  ;;  %v1346_v27 = vadd.f32 %v7821_v36, %v1270_v21  ;;  %v1674_v29 = vsel %vm269_vm0, %v1669_v24, %v1673_v2  ;;  %v6730_v24 = vld [vmem:[%s9422_s2 + $0xa4] ss:$8 sps:$4 sm:$0xff]  }
 0x243   :  { %v1409_v32 = vmax.f32 %v1345_v7, 0.0  ;;  %v1347_v30 = vadd.f32 %v7824_v38, %v1271_v25  ;;  %1926 = vmatmul.mubr.bf16.gmra.mrb[8].mxu1 %v1674_v29  ;;  %v6739_v7 = vld [vmem:[%s9422_s2 + $0xd4] ss:$8 sps:$4 sm:$0xff]  }
 0x244   :  { %v1410_v33 = vmax.f32 %v1346_v27, 0.0  ;;  %1935 = vmatprep.mubr.bf16.mxu1 %v7797_v26  ;;  %2163 = vmatpush1.bf16.msra.mxu1 %v6722_v23  ;;  %v6734_v23 = vld [vmem:[%s9422_s2 + $0xc0] ss:$8 sps:$4 sm:$0xff]  }
 0x245   :  { %v1454_v39 = vmax.f32 %v1408_v12, %v1409_v32  ;;  %v1411_v40 = vmax.f32 %v1347_v30, 0.0  ;;  %v1097_v41 = vpop.f32.mrb[40].mxu0  ;;  %2164 = vmatprep.subr.bf16.mxu1 %v6727_v8  ;;  %v6737_v30 = vld [vmem:[%s9422_s2 + $0xd0] ss:$8 sps:$4 sm:$0xff]  }
 0x246   :  { %v1272_v42 = vmul.f32 %v7815_v34, %v1097_v41  ;;  %v1099_v43 = vpop.f32.mrb[41].mxu0 }
 0x247   :  { %v1455_v44 = vmax.f32 %v1410_v33, %v1411_v40  ;;  %v1273_v28 = vmul.f32 %v7818_v35, %v1099_v43  ;;  %v1101_v45 = vpop.f32.mrb[42].mxu0 }
 0x248   :  { %v1348_v46 = vadd.f32 %v7821_v36, %v1272_v42  ;;  %v1274_v47 = vmul.f32 %v7815_v34, %v1101_v45  ;;  %v1103_v48 = vpop.f32.mrb[43].mxu0  ;;  %2165 = vmatpush1.bf16.msra.mxu1 %v6725_v37 }
 0x249   :  { %v1477_v50 = vmax.f32 %v1454_v39, %v1455_v44  ;;  %v1349_v51 = vadd.f32 %v7824_v38, %v1273_v28  ;;  %v1275_v52 = vmul.f32 %v7818_v35, %v1103_v48  ;;  %2166 = vmatprep.subr.bf16.mxu1 %v6730_v24 }
 0x24a   :  { %v1412_v54 = vmax.f32 %v1348_v46, 0.0  ;;  %v1350_v55 = vadd.f32 %v7821_v36, %v1274_v47  ;;  %v6740_v46 = vld [vmem:[%s9422_s2 + $0xe0] ss:$8 sps:$4 sm:$0xff]  }
 0x24b   :  { %v8026_v56 = vpack.c.bf16 %v1477_v50, %v1476_v1  ;;  %v1413_v57 = vmax.f32 %v1349_v51, 0.0  ;;  %v1351_v58 = vadd.f32 %v7824_v38, %v1275_v52  ;;  %v6745_v50 = vld [vmem:[%s9422_s2 + $0xf4] ss:$8 sps:$4 sm:$0xff]  }
 0x24c   :  { %v1414_v59 = vmax.f32 %v1350_v55, 0.0  ;;  %2167 = vmatpush1.bf16.msra.mxu1 %v6728_v49 }
 0x24d   :  { %v1511_v62 = vrot.slane %v8026_v56, 4  ;;  %v1456_v63 = vmax.f32 %v1412_v54, %v1413_v57  ;;  %v1415_v0 = vmax.f32 %v1351_v58, 0.0  ;;  %v1107_v4 = vpop.f32.mrb[44].mxu0  ;;  %2168 = vmatprep.subr.bf16.mxu1 %v6733_v53  ;;  %v6743_v58 = vld [vmem:[%s9422_s2 + $0xf0] ss:$8 sps:$4 sm:$0xff]  }
 0x24e   :  { %v1276_v6 = vmul.f32 %v7815_v34, %v1107_v4  ;;  %v1109_v9 = vpop.f32.mrb[45].mxu0  ;;  %v6748_v4 = vld [vmem:[%s9422_s2 + $0x204] ss:$8 sps:$4 sm:$0xff]  }
 0x24f   :  { %v8042_v10 = vsel %vm269_vm0, %v1509_v3, %v1511_v62  ;;  %v1457_v11 = vmax.f32 %v1414_v59, %v1415_v0  ;;  %v1277_v14 = vmul.f32 %v7818_v35, %v1109_v9  ;;  %v1111_v15 = vpop.f32.mrb[46].mxu0 }
 0x250   :  { %v1352_v17 = vadd.f32 %v7821_v36, %v1276_v6  ;;  %v1278_v19 = vmul.f32 %v7815_v34, %v1111_v15  ;;  %v1113_v21 = vpop.f32.mrb[47].mxu0  ;;  %v1677_v22 = vrot.slane %v8042_v10, 4  ;;  %2169 = vmatpush1.bf16.msra.mxu1 %v6731_v61 }
 0x251   :  { %v1478_v60 = vmax.f32 %v1456_v63, %v1457_v11  ;;  %v1353_v3 = vadd.f32 %v7824_v38, %v1277_v14  ;;  %v1279_v1 = vmul.f32 %v7818_v35, %v1113_v21  ;;  %2170 = vmatprep.subr.bf16.mxu1 %v6736_v5 }
 0x252   :  { %v1416_v25 = vmax.f32 %v1352_v17, 0.0  ;;  %v1354_v8 = vadd.f32 %v7821_v36, %v1278_v19  ;;  %v1678_v12 = vsel %vm269_vm0, %v1673_v2, %v1677_v22  ;;  %v6742_v2 = vld [vmem:[%s9422_s2 + $0xe4] ss:$8 sps:$4 sm:$0xff]  }
 0x253   :  { %v1417_v27 = vmax.f32 %v1353_v3, 0.0  ;;  %v1355_v29 = vadd.f32 %v7824_v38, %v1279_v1  ;;  %1936 = vmatmul.mubr.bf16.gmra.mrb[12].mxu1 %v1678_v12 }
 0x254   :  { %v1418_v32 = vmax.f32 %v1354_v8, 0.0  ;;  %1945 = vmatprep.mubr.bf16.mxu1 %v7797_v26  ;;  %2171 = vmatpush1.bf16.msra.mxu1 %v6734_v23 }
 0x255   :  { %v1458_v33 = vmax.f32 %v1416_v25, %v1417_v27  ;;  %v1419_v37 = vmax.f32 %v1355_v29, 0.0  ;;  %v1117_v39 = vpop.f32.mrb[48].mxu0  ;;  %2172 = vmatprep.subr.bf16.mxu1 %v6739_v7 }
 0x256   :  { %v1280_v40 = vmul.f32 %v7815_v34, %v1117_v39  ;;  %v1119_v41 = vpop.f32.mrb[49].mxu0 }
 0x257   :  { %v1459_v24 = vmax.f32 %v1418_v32, %v1419_v37  ;;  %v1281_v42 = vmul.f32 %v7818_v35, %v1119_v41  ;;  %v1121_v43 = vpop.f32.mrb[50].mxu0 }
 0x258   :  { %v1356_v44 = vadd.f32 %v7821_v36, %v1280_v40  ;;  %v1282_v28 = vmul.f32 %v7815_v34, %v1121_v43  ;;  %v1123_v45 = vpop.f32.mrb[51].mxu0  ;;  %2173 = vmatpush1.bf16.msra.mxu1 %v6737_v30 }
 0x259   :  { %v1479_v47 = vmax.f32 %v1458_v33, %v1459_v24  ;;  %v1357_v48 = vadd.f32 %v7824_v38, %v1281_v42  ;;  %v1283_v49 = vmul.f32 %v7818_v35, %v1123_v45  ;;  %2174 = vmatprep.subr.bf16.mxu1 %v6742_v2 }
 0x25a   :  { %v1420_v51 = vmax.f32 %v1356_v44, 0.0  ;;  %v1358_v52 = vadd.f32 %v7821_v36, %v1282_v28 }
 0x25b   :  { %v8083_v53 = vpack.c.bf16 %v1479_v47, %v1478_v60  ;;  %v1421_v54 = vmax.f32 %v1357_v48, 0.0  ;;  %v1359_v55 = vadd.f32 %v7824_v38, %v1283_v49 }
 0x25c   :  { %v1422_v57 = vmax.f32 %v1358_v52, 0.0  ;;  %2175 = vmatpush1.bf16.msra.mxu1 %v6740_v46 }
 0x25d   :  { %v1513_v59 = vrot.slane %v8083_v53, 4  ;;  %v1460_v61 = vmax.f32 %v1420_v51, %v1421_v54  ;;  %v1423_v63 = vmax.f32 %v1359_v55, 0.0  ;;  %v1127_v0 = vpop.f32.mrb[52].mxu0  ;;  %2176 = vmatprep.subr.bf16.mxu1 %v6745_v50 }
 0x25e   :  { %v1284_v5 = vmul.f32 %v7815_v34, %v1127_v0  ;;  %v1129_v6 = vpop.f32.mrb[53].mxu0 }
 0x25f   :  { %v8097_v9 = vsel %vm269_vm0, %v1511_v62, %v1513_v59  ;;  %v1461_v11 = vmax.f32 %v1422_v57, %v1423_v63  ;;  %v1285_v14 = vmul.f32 %v7818_v35, %v1129_v6  ;;  %v1131_v15 = vpop.f32.mrb[54].mxu0 }
 0x260   :  { %v1360_v17 = vadd.f32 %v7821_v36, %v1284_v5  ;;  %v1286_v19 = vmul.f32 %v7815_v34, %v1131_v15  ;;  %v1133_v21 = vpop.f32.mrb[55].mxu0  ;;  %v1681_v23 = vrot.slane %v8097_v9, 4  ;;  %2177 = vmatpush1.bf16.msra.mxu1 %v6743_v58 }
 0x261   :  { %v1480_v60 = vmax.f32 %v1460_v61, %v1461_v11  ;;  %v1361_v3 = vadd.f32 %v7824_v38, %v1285_v14  ;;  %v1287_v56 = vmul.f32 %v7818_v35, %v1133_v21  ;;  %2454 = vmatprep.subr.bf16.mxu1 %v6748_v4 }
 0x262   :  { %v1424_v62 = vmax.f32 %v1360_v17, 0.0  ;;  %v1362_v1 = vadd.f32 %v7821_v36, %v1286_v19  ;;  %v1682_v7 = vsel %vm269_vm0, %v1677_v22, %v1681_v23 }
 0x263   :  { %v1425_v25 = vmax.f32 %v1361_v3, 0.0  ;;  %v1363_v8 = vadd.f32 %v7824_v38, %v1287_v56  ;;  %1946 = vmatmul.mubr.bf16.gmra.mrb[16].mxu1 %v1682_v7 }
 0x264   :  { %v1426_v12 = vmax.f32 %v1362_v1, 0.0  ;;  %1955 = vmatprep.mubr.bf16.mxu1 %v7797_v26  ;;  %v1611_v1 = vld [vmem:[#allocation3 + $0x88] sm:$0xf] }
 0x265   :  { %v1462_v27 = vmax.f32 %v1424_v62, %v1425_v25  ;;  %v1427_v29 = vmax.f32 %v1363_v8, 0.0  ;;  %v1137_v32 = vpop.f32.mrb[56].mxu0 }
 0x266   :  { %v1288_v30 = vmul.f32 %v7815_v34, %v1137_v32  ;;  %v1139_v33 = vpop.f32.mrb[57].mxu0  ;;  %v1547_v32 = vld [vmem:[#allocation3 + $0x8] sm:$0xff] }
 0x267   :  { %v1463_v37 = vmax.f32 %v1426_v12, %v1427_v29  ;;  %v1289_v39 = vmul.f32 %v7818_v35, %v1139_v33  ;;  %v1141_v2 = vpop.f32.mrb[58].mxu0  ;;  %v6751_v33 = vld [vmem:[%s9422_s2 + $0x214] ss:$8 sps:$4 sm:$0xff]  }
 0x268   :  { %v1364_v40 = vadd.f32 %v7821_v36, %v1288_v30  ;;  %v1290_v22 = vmul.f32 %v7815_v34, %v1141_v2  ;;  %v1143_v41 = vpop.f32.mrb[59].mxu0  ;;  %v6746_v30 = vld [vmem:[%s9422_s2 + $0x200] ss:$8 sps:$4 sm:$0xff]   ;;  %v6754_v2 = vld [vmem:[%s9422_s2 + $0x224] ss:$8 sps:$4 sm:$0xff]  }
 0x269   :  { %v1481_v24 = vmax.f32 %v1462_v27, %v1463_v37  ;;  %v1365_v42 = vadd.f32 %v7824_v38, %v1289_v39  ;;  %v1291_v43 = vmul.f32 %v7818_v35, %v1143_v41  ;;  %v6749_v37 = vld [vmem:[%s9422_s2 + $0x210] ss:$8 sps:$4 sm:$0xff]   ;;  %v8150_v39 = vld [vmem:[#allocation3 + $0x18] sm:$0xff] }
 0x26a   :  { %v1428_v44 = vmax.f32 %v1364_v40, 0.0  ;;  %v1366_v28 = vadd.f32 %v7821_v36, %v1290_v22  ;;  %v6752_v40 = vld [vmem:[%s9422_s2 + $0x220] ss:$8 sps:$4 sm:$0xff]   ;;  %v6757_v22 = vld [vmem:[%s9422_s2 + $0x234] ss:$8 sps:$4 sm:$0xff]  }
 0x26b   :  { %v1494_v45 = vpack.c.bf16 %v1481_v24, %v1480_v60  ;;  %v1429_v46 = vmax.f32 %v1365_v42, 0.0  ;;  %v1367_v47 = vadd.f32 %v7824_v38, %v1291_v43  ;;  %v6755_v41 = vld [vmem:[%s9422_s2 + $0x230] ss:$8 sps:$4 sm:$0xff]   ;;  %v6760_v24 = vld [vmem:[%s9422_s2 + $0x244] ss:$8 sps:$4 sm:$0xff]  }
 0x26c   :  { %v1430_v48 = vmax.f32 %v1366_v28, 0.0  ;;  %v6758_v42 = vld [vmem:[%s9422_s2 + $0x240] ss:$8 sps:$4 sm:$0xff]   ;;  %v6763_v43 = vld [vmem:[%s9422_s2 + $0x254] ss:$8 sps:$4 sm:$0xff]  }
 0x26d   :  { %v1515_v49 = vrot.slane %v1494_v45, 4  ;;  %v1464_v50 = vmax.f32 %v1428_v44, %v1429_v46  ;;  %v1431_v51 = vmax.f32 %v1367_v47, 0.0  ;;  %v1147_v52 = vpop.f32.mrb[60].mxu0  ;;  %v6761_v44 = vld [vmem:[%s9422_s2 + $0x250] ss:$8 sps:$4 sm:$0xff]  }
 0x26e   :  { %v1292_v53 = vmul.f32 %v7815_v34, %v1147_v52  ;;  %v1149_v54 = vpop.f32.mrb[61].mxu0  ;;  %v6766_v28 = vld [vmem:[%s9422_s2 + $0x264] ss:$8 sps:$4 sm:$0xff]   ;;  %v6764_v45 = vld [vmem:[%s9422_s2 + $0x260] ss:$8 sps:$4 sm:$0xff]  }
 0x26f   :  { %v8121_v55 = vsel %vm269_vm0, %v1513_v59, %v1515_v49  ;;  %v1465_v57 = vmax.f32 %v1430_v48, %v1431_v51  ;;  %v1293_v58 = vmul.f32 %v7818_v35, %v1149_v54  ;;  %v1151_v61 = vpop.f32.mrb[62].mxu0  ;;  %v6769_v46 = vld [vmem:[%s9422_s2 + $0x274] ss:$8 sps:$4 sm:$0xff]   ;;  %v6767_v47 = vld [vmem:[%s9422_s2 + $0x270] ss:$8 sps:$4 sm:$0xff]  }
 0x270   :  { %v1368_v63 = vadd.f32 %v7821_v36, %v1292_v53  ;;  %v1294_v0 = vmul.f32 %v7815_v34, %v1151_v61  ;;  %v1153_v4 = vpop.f32.mrb[63].mxu0  ;;  %v1685_v5 = vrot.slane %v8121_v55, 4  ;;  %v6772_v48 = vld [vmem:[%s9422_s2 + $0x284] ss:$8 sps:$4 sm:$0xff]   ;;  %v6773_v51 = vld [vmem:[%s9422_s2 + $0x290] ss:$8 sps:$4 sm:$0xff]  }
 0x271   :  { %v1482_v6 = vmax.f32 %v1464_v50, %v1465_v57  ;;  %v1369_v11 = vadd.f32 %v7824_v38, %v1293_v58  ;;  %v1295_v14 = vmul.f32 %v7818_v35, %v1153_v4  ;;  %v1695_v35 = vrot.slane %v1611_v1, 4  ;;  %v6775_v50 = vld [vmem:[%s9422_s2 + $0x294] ss:$8 sps:$4 sm:$0xff]   ;;  %v6778_v52 = vld [vmem:[%s9422_s2 + $0x2a4] ss:$8 sps:$4 sm:$0xff]  }
 0x272   :  { %v1432_v15 = vmax.f32 %v1368_v63, 0.0  ;;  %v1370_v59 = vadd.f32 %v7821_v36, %v1294_v0  ;;  %v1686_v17 = vsel %vm269_vm0, %v1681_v23, %v1685_v5  ;;  %v6776_v53 = vld [vmem:[%s9422_s2 + $0x2a0] ss:$8 sps:$4 sm:$0xff]   ;;  %v6781_v54 = vld [vmem:[%s9422_s2 + $0x2b4] ss:$8 sps:$4 sm:$0xff]  }
 0x273   :  { %v1433_v19 = vmax.f32 %v1369_v11, 0.0  ;;  %v1371_v21 = vadd.f32 %v7824_v38, %v1295_v14  ;;  %1956 = vmatmul.mubr.bf16.gmra.mrb[20].mxu1 %v1686_v17  ;;  %v1696_v38 = vsel %vm269_vm0, %v7797_v26, %v1695_v35  ;;  %v6779_v57 = vld [vmem:[%s9422_s2 + $0x2b0] ss:$8 sps:$4 sm:$0xff]   ;;  %v6784_v58 = vld [vmem:[%s9422_s2 + $0x2c4] ss:$8 sps:$4 sm:$0xff]  }
 0x274   :  { %v1434_v60 = vmax.f32 %v1370_v59, 0.0  ;;  %1965 = vmatprep.mubr.bf16.mxu1 %v7797_v26  ;;  %v1546_v26 = vld [vmem:[#allocation3] sm:$0xff]  ;;  %v6787_v63 = vld [vmem:[%s9422_s2 + $0x2d4] ss:$8 sps:$4 sm:$0xff]   ;;  %v6785_v0 = vld [vmem:[%s9422_s2 + $0x2d0] ss:$8 sps:$4 sm:$0xff]  }
 0x275   :  { %v1466_v34 = vmax.f32 %v1432_v15, %v1433_v19  ;;  %v1435_v3 = vmax.f32 %v1371_v21, 0.0  ;;  %v6782_v61 = vld [vmem:[%s9422_s2 + $0x2c0] ss:$8 sps:$4 sm:$0xff]   ;;  %v6790_v4 = vld [vmem:[%s9422_s2 + $0x2e4] ss:$8 sps:$4 sm:$0xff]  }
 0x276   :  { %v6791_v11 = vld [vmem:[%s9422_s2 + $0x2f0] ss:$8 sps:$4 sm:$0xff]   ;;  %v6796_v14 = vld [vmem:[%s9423_s3 + $0x104] ss:$8 sps:$4 sm:$0xff]   ;;  %v6794_v15 = vld [vmem:[%s9423_s3 + $0x100] ss:$8 sps:$4 sm:$0xff]  }
 0x277   :  { %v1467_v56 = vmax.f32 %v1434_v60, %v1435_v3  ;;  %v6799_v59 = vld [vmem:[%s9423_s3 + $0x114] ss:$8 sps:$4 sm:$0xff]   ;;  %v6797_v17 = vld [vmem:[%s9423_s3 + $0x110] ss:$8 sps:$4 sm:$0xff]   ;;  %v6802_v19 = vld [vmem:[%s9423_s3 + $0x124] ss:$8 sps:$4 sm:$0xff]  }
 0x278   :  { %v6800_v21 = vld [vmem:[%s9423_s3 + $0x120] ss:$8 sps:$4 sm:$0xff]   ;;  %v6811_v60 = vld [vmem:[%s9423_s3 + $0x154] ss:$8 sps:$4 sm:$0xff]   ;;  %v6814_v3 = vld [vmem:[%s9423_s3 + $0x164] ss:$8 sps:$4 sm:$0xff]  }
 0x279   :  { %v1483_v62 = vmax.f32 %v1466_v34, %v1467_v56  ;;  %v6809_v34 = vld [vmem:[%s9423_s3 + $0x150] ss:$8 sps:$4 sm:$0xff]   ;;  %v6812_v56 = vld [vmem:[%s9423_s3 + $0x160] ss:$8 sps:$4 sm:$0xff]   ;;  %v6823_v35 = vld [vmem:[%s9423_s3 + $0x194] ss:$8 sps:$4 sm:$0xff]  }
 0x27a   :  { %v6815_v1 = vld [vmem:[%s9423_s3 + $0x170] ss:$8 sps:$4 sm:$0xff]  }
 0x27b   :  { %v1495_v7 = vpack.c.bf16 %v1483_v62, %v1482_v6  ;;  %v6793_v6 = vld [vmem:[%s9422_s2 + $0x2f4] ss:$8 sps:$4 sm:$0xff]  }
 0x27c   :  { %v6817_v62 = vld [vmem:[%s9423_s3 + $0x174] ss:$8 sps:$4 sm:$0xff]  }
 0x27d   :  { %v1517_v25 = vrot.slane %v1495_v7, 4  ;;  %v6820_v7 = vld [vmem:[%s9423_s3 + $0x184] ss:$8 sps:$4 sm:$0xff]  }
 0x27f   :  { %v8134_v8 = vsel %vm269_vm0, %v1515_v49, %v1517_v25  ;;  %1536 = vst [vmem:[#allocation3 + $0x80] sm:$0xf] %v1517_v25  ;;  %v6770_v49 = vld [vmem:[%s9422_s2 + $0x280] ss:$8 sps:$4 sm:$0xff]  }
 0x280   :  { %v1689_v36 = vrot.slane %v8134_v8, 4  ;;  %v6818_v25 = vld [vmem:[%s9423_s3 + $0x180] ss:$8 sps:$4 sm:$0xff]  }
 0x282   :  { %v1690_v23 = vsel %vm269_vm0, %v1685_v5, %v1689_v36  ;;  %v6788_v5 = vld [vmem:[%s9422_s2 + $0x2e0] ss:$8 sps:$4 sm:$0xff]  }
 0x283   :  { %1966 = vmatmul.mubr.bf16.gmra.mrb[24].mxu1 %v1690_v23  ;;  %v6829_v23 = vld [vmem:[%s9423_s3 + $0x1b4] ss:$8 sps:$4 sm:$0xff]  }
 0x284   :  { %1975 = vmatprep.mubr.bf16.mxu1 %v1696_v38  ;;  %v6824_v38 = vld [vmem:[%s9423_s3 + $0x1a0] ss:$8 sps:$4 sm:$0xff]  }
 0x286   :  { %v1610_v12 = vld [vmem:[#allocation3 + $0x80] sm:$0xf] }
 0x287   :  { %v1693_v27 = vrot.slane %v1610_v12, 4  ;;  %v6827_v12 = vld [vmem:[%s9423_s3 + $0x1b0] ss:$8 sps:$4 sm:$0xff]  }
 0x289   :  { %v1694_v29 = vsel %vm269_vm0, %v1689_v36, %v1693_v27  ;;  %v6826_v36 = vld [vmem:[%s9423_s3 + $0x1a4] ss:$8 sps:$4 sm:$0xff]  }
 0x28a   :  { %v6832_v27 = vld [vmem:[%s9423_s3 + $0x1c4] ss:$8 sps:$4 sm:$0xff]  }
 0x28b   :  { %1976 = vmatmul.mubr.bf16.gmra.mrb[28].mxu1 %v1694_v29  ;;  %v6830_v29 = vld [vmem:[%s9423_s3 + $0x1c0] ss:$8 sps:$4 sm:$0xff]  }
 0x28c   :  { %2178 = vmatprep.mubr.bf16.mxu1 %v1547_v32  ;;  %v6835_v32 = vld [vmem:[%s9423_s3 + $0x1d4] ss:$8 sps:$4 sm:$0xff]  }
 0x293   :  { %2179 = vmatmul.mubr.bf16.vlgmr.msra.gmra.mrb[0].mxu1 %v1546_v26  ;;  %v6836_v26 = vld [vmem:[%s9423_s3 + $0x1e0] ss:$8 sps:$4 sm:$0xff]  }
 0x294   :  { %2455 = vmatpush1.bf16.msra.mxu1 %v6746_v30  ;;  %2188 = vmatprep.mubr.bf16.mxu1 %v8150_v39  ;;  %v6833_v30 = vld [vmem:[%s9423_s3 + $0x1d0] ss:$8 sps:$4 sm:$0xff]  }
 0x295   :  { %2456 = vmatprep.subr.bf16.mxu1 %v6751_v33  ;;  %v6838_v33 = vld [vmem:[%s9423_s3 + $0x1e4] ss:$8 sps:$4 sm:$0xff]  }
 0x298   :  { %2457 = vmatpush1.bf16.msra.mxu1 %v6749_v37  ;;  %v6841_v37 = vld [vmem:[%s9423_s3 + $0x1f4] ss:$8 sps:$4 sm:$0xff]  }
 0x299   :  { %2458 = vmatprep.subr.bf16.mxu1 %v6754_v2  ;;  %v6839_v2 = vld [vmem:[%s9423_s3 + $0x1f0] ss:$8 sps:$4 sm:$0xff]  }
 0x29b   :  { %2189 = vmatmul.mubr.bf16.gmra.mrb[4].mxu1 %v7873_v20 }
 0x29c   :  { %2459 = vmatpush1.bf16.msra.mxu1 %v6752_v40  ;;  %2198 = vmatprep.mubr.bf16.mxu1 %v8150_v39  ;;  %v2820_v40 = vld [vmem:[#allocation4 + $0x8] sm:$0xf0] }
 0x29d   :  { %2460 = vmatprep.subr.bf16.mxu1 %v6757_v22  ;;  %v2875_v22 = vrot.slane %v2820_v40, 4 }
 0x2a0   :  { %2461 = vmatpush1.bf16.msra.mxu1 %v6755_v41  ;;  %v8361_v41 = vrot.slane %v8150_v39, 4 }
 0x2a1   :  { %2462 = vmatprep.subr.bf16.mxu1 %v6760_v24  ;;  %v6844_v24 = vld [vmem:[%s9423_s3 + $0x4] ss:$8 sps:$4 sm:$0xff]  }
 0x2a3   :  { %2199 = vmatmul.mubr.bf16.gmra.mrb[8].mxu1 %v7928_v16 }
 0x2a4   :  { %2463 = vmatpush1.bf16.msra.mxu1 %v6758_v42  ;;  %2208 = vmatprep.mubr.bf16.mxu1 %v8150_v39  ;;  %v2877_v42 = vsel %vm269_vm0, %v2875_v22, %v8361_v41 }
 0x2a5   :  { %2464 = vmatprep.subr.bf16.mxu1 %v6763_v43  ;;  %v5742_v43 = vld [vmem:[%s9426_s6 + $0x1] ss:$8 sm:$0x3] }
 0x2a8   :  { %2465 = vmatpush1.bf16.msra.mxu1 %v6761_v44  ;;  %v5743_v44 = vld [vmem:[%s9427_s7 + $0x1] ss:$8 sm:$0x3] }
 0x2a9   :  { %2466 = vmatprep.subr.bf16.mxu1 %v6766_v28  ;;  %v8375_v28 = vrot.slane %v5742_v43, %v7804_v31 }
 0x2ab   :  { %2209 = vmatmul.mubr.bf16.gmra.mrb[12].mxu1 %v7985_v13 }
 0x2ac   :  { %2467 = vmatpush1.bf16.msra.mxu1 %v6764_v45  ;;  %2218 = vmatprep.mubr.bf16.mxu1 %v8150_v39  ;;  %v8378_v45 = vrot.slane %v5742_v43, %v7809_v18 }
 0x2ad   :  { %2468 = vmatprep.subr.bf16.mxu1 %v6769_v46  ;;  %v8381_v46 = vrot.slane %v5743_v44, %v7804_v31 }
 0x2b0   :  { %2469 = vmatpush1.bf16.msra.mxu1 %v6767_v47 }
 0x2b1   :  { %2470 = vmatprep.subr.bf16.mxu1 %v6772_v48  ;;  %v8384_v48 = vrot.slane %v5743_v44, %v7809_v18 }
 0x2b3   :  { %2219 = vmatmul.mubr.bf16.gmra.mrb[16].mxu1 %v8042_v10 }
 0x2b4   :  { %2471 = vmatpush1.bf16.msra.mxu1 %v6770_v49  ;;  %2228 = vmatprep.mubr.bf16.mxu1 %v8150_v39 }
 0x2b5   :  { %2472 = vmatprep.subr.bf16.mxu1 %v6775_v50 }
 0x2b8   :  { %2473 = vmatpush1.bf16.msra.mxu1 %v6773_v51 }
 0x2b9   :  { %2474 = vmatprep.subr.bf16.mxu1 %v6778_v52 }
 0x2bb   :  { %2229 = vmatmul.mubr.bf16.gmra.mrb[20].mxu1 %v8097_v9 }
 0x2bc   :  { %2475 = vmatpush1.bf16.msra.mxu1 %v6776_v53  ;;  %2238 = vmatprep.mubr.bf16.mxu1 %v8150_v39 }
 0x2bd   :  { %2476 = vmatprep.subr.bf16.mxu1 %v6781_v54 }
 0x2c0   :  { %2477 = vmatpush1.bf16.msra.mxu1 %v6779_v57 }
 0x2c1   :  { %2478 = vmatprep.subr.bf16.mxu1 %v6784_v58 }
 0x2c3   :  { %2239 = vmatmul.mubr.bf16.gmra.mrb[24].mxu1 %v8121_v55 }
 0x2c4   :  { %2479 = vmatpush1.bf16.msra.mxu1 %v6782_v61  ;;  %2248 = vmatprep.mubr.bf16.mxu1 %v8150_v39 }
 0x2c5   :  { %2480 = vmatprep.subr.bf16.mxu1 %v6787_v63 }
 0x2c8   :  { %2481 = vmatpush1.bf16.msra.mxu1 %v6785_v0 }
 0x2c9   :  { %2482 = vmatprep.subr.bf16.mxu1 %v6790_v4 }
 0x2cb   :  { %2249 = vmatmul.mubr.bf16.gmra.mrb[28].mxu1 %v8134_v8 }
 0x2cc   :  { %2483 = vmatpush1.bf16.msra.mxu1 %v6788_v5  ;;  %2486 = vmatprep.mubr.bf16.mxu1 %v8150_v39 }
 0x2cd   :  { %2484 = vmatprep.subr.bf16.mxu1 %v6793_v6 }
 0x2d0   :  { %2485 = vmatpush1.bf16.msra.mxu1 %v6791_v11 }
 0x2d1   :  { %3058 = vmatprep.subr.bf16.mxu1 %v6796_v14 }
 0x2d3   :  { %2487 = vmatmul.mubr.bf16.vlgmr.msra.gmra.mrb[0].mxu1 %v7873_v20  ;;  %v2260_v20 = vld [vmem:[#allocation3 + $0x88] sm:$0xff] }
 0x2d4   :  { %2496 = vmatprep.mubr.bf16.mxu1 %v8150_v39  ;;  %3059 = vmatpush1.bf16.msra.mxu1 %v6794_v15 }
 0x2d5   :  { %3060 = vmatprep.subr.bf16.mxu1 %v6799_v59 }
 0x2d8   :  { %3061 = vmatpush1.bf16.msra.mxu1 %v6797_v17 }
 0x2d9   :  { %3062 = vmatprep.subr.bf16.mxu1 %v6802_v19 }
 0x2db   :  { %2497 = vmatmul.mubr.bf16.gmra.mrb[4].mxu1 %v7928_v16  ;;  %v2259_v16 = vld [vmem:[#allocation3 + $0x80] sm:$0xff] }
 0x2dc   :  { %2506 = vmatprep.mubr.bf16.mxu1 %v8150_v39  ;;  %3063 = vmatpush1.bf16.msra.mxu1 %v6800_v21 }
 0x2e3   :  { %2507 = vmatmul.mubr.bf16.gmra.mrb[8].mxu1 %v7985_v13  ;;  %v6805_v13 = vld [vmem:[%s9423_s3 + $0x134] ss:$8 sps:$4 sm:$0xff]  }
 0x2e4   :  { %2516 = vmatprep.mubr.bf16.mxu1 %v8150_v39  ;;  %3064 = vmatprep.subr.bf16.mxu1 %v6805_v13 }
 0x2eb   :  { %2517 = vmatmul.mubr.bf16.gmra.mrb[12].mxu1 %v8042_v10  ;;  %v6803_v10 = vld [vmem:[%s9423_s3 + $0x130] ss:$8 sps:$4 sm:$0xff]  }
 0x2ec   :  { %2526 = vmatprep.mubr.bf16.mxu1 %v8150_v39  ;;  %3065 = vmatpush1.bf16.msra.mxu1 %v6803_v10 }
 0x2f3   :  { %2527 = vmatmul.mubr.bf16.gmra.mrb[16].mxu1 %v8097_v9  ;;  %v6808_v9 = vld [vmem:[%s9423_s3 + $0x144] ss:$8 sps:$4 sm:$0xff]  }
 0x2f4   :  { %2536 = vmatprep.mubr.bf16.mxu1 %v8150_v39  ;;  %3066 = vmatprep.subr.bf16.mxu1 %v6808_v9 }
 0x2fb   :  { %2537 = vmatmul.mubr.bf16.gmra.mrb[20].mxu1 %v8121_v55  ;;  %v6806_v55 = vld [vmem:[%s9423_s3 + $0x140] ss:$8 sps:$4 sm:$0xff]  }
 0x2fc   :  { %2546 = vmatprep.mubr.bf16.mxu1 %v8150_v39  ;;  %3067 = vmatpush1.bf16.msra.mxu1 %v6806_v55 }
 0x2fd   :  { %3068 = vmatprep.subr.bf16.mxu1 %v6811_v60 }
 0x300   :  { %3069 = vmatpush1.bf16.msra.mxu1 %v6809_v34 }
 0x301   :  { %3070 = vmatprep.subr.bf16.mxu1 %v6814_v3 }
 0x303   :  { %2547 = vmatmul.mubr.bf16.gmra.mrb[24].mxu1 %v8134_v8  ;;  %v6821_v8 = vld [vmem:[%s9423_s3 + $0x190] ss:$8 sps:$4 sm:$0xff]  }
 0x304   :  { %2556 = vmatprep.mubr.bf16.mxu1 %v2260_v20  ;;  %3071 = vmatpush1.bf16.msra.mxu1 %v6812_v56 }
 0x305   :  { %3072 = vmatprep.subr.bf16.mxu1 %v6817_v62 }
 0x308   :  { %3073 = vmatpush1.bf16.msra.mxu1 %v6815_v1 }
 0x309   :  { %3074 = vmatprep.subr.bf16.mxu1 %v6820_v7 }
 0x30b   :  { %2557 = vmatmul.mubr.bf16.gmra.mrb[28].mxu1 %v2259_v16 }
 0x30c   :  { %3075 = vmatpush1.bf16.msra.mxu1 %v6818_v25  ;;  %3090 = vmatprep.mubr.bf16.mxu1 %v2877_v42 }
 0x30d   :  { %3076 = vmatprep.subr.bf16.mxu1 %v6823_v35 }
 0x310   :  { %3077 = vmatpush1.bf16.msra.mxu1 %v6821_v8 }
 0x311   :  { %3078 = vmatprep.subr.bf16.mxu1 %v6826_v36 }
 0x314   :  { %3079 = vmatpush1.bf16.msra.mxu1 %v6824_v38 }
 0x315   :  { %3080 = vmatprep.subr.bf16.mxu1 %v6829_v23 }
 0x318   :  { %3081 = vmatpush1.bf16.msra.mxu1 %v6827_v12 }
 0x319   :  { %3082 = vmatprep.subr.bf16.mxu1 %v6832_v27 }
 0x31c   :  { %3083 = vmatpush1.bf16.msra.mxu1 %v6830_v29 }
 0x31d   :  { %3084 = vmatprep.subr.bf16.mxu1 %v6835_v32 }
 0x320   :  { %3085 = vmatpush1.bf16.msra.mxu1 %v6833_v30 }
 0x321   :  { %3086 = vmatprep.subr.bf16.mxu1 %v6838_v33 }
 0x324   :  { %3087 = vmatpush1.bf16.msra.mxu1 %v6836_v26 }
 0x325   :  { %3088 = vmatprep.subr.bf16.mxu1 %v6841_v37 }
 0x328   :  { %3089 = vmatpush1.bf16.msra.mxu1 %v6839_v2 }
 0x329   :  { %3291 = vmatprep.subr.bf16.mxu1 %v6844_v24 }
 0x3a6   :  { %v2488_v47 = vpop.f32.mrb[0].mxu1 }
 0x3a7   :  { %v2612_v49 = vmul.f32 %v8375_v28, %v2488_v47  ;;  %v2490_v50 = vpop.f32.mrb[1].mxu1 }
 0x3a8   :  { %v2613_v51 = vmul.f32 %v8378_v45, %v2490_v50  ;;  %v2492_v52 = vpop.f32.mrb[2].mxu1 }
 0x3a9   :  { %v2657_v53 = vadd.f32 %v8381_v46, %v2612_v49  ;;  %v2614_v54 = vmul.f32 %v8375_v28, %v2492_v52  ;;  %v2494_v57 = vpop.f32.mrb[3].mxu1 }
 0x3aa   :  { %v2658_v58 = vadd.f32 %v8384_v48, %v2613_v51  ;;  %v2615_v61 = vmul.f32 %v8378_v45, %v2494_v57 }
 0x3ab   :  { %v2689_v63 = vmax.f32 %v2657_v53, 0.0  ;;  %v2659_v0 = vadd.f32 %v8381_v46, %v2614_v54 }
 0x3ac   :  { %v2690_v4 = vmax.f32 %v2658_v58, 0.0  ;;  %v2660_v5 = vadd.f32 %v8384_v48, %v2615_v61 }
 0x3ad   :  { %v2691_v6 = vmax.f32 %v2659_v0, 0.0 }
 0x3ae   :  { %v2721_v11 = vmax.f32 %v2689_v63, %v2690_v4  ;;  %v2692_v14 = vmax.f32 %v2660_v5, 0.0  ;;  %v2498_v15 = vpop.f32.mrb[4].mxu1 }
 0x3af   :  { %v2616_v59 = vmul.f32 %v8375_v28, %v2498_v15  ;;  %v2500_v17 = vpop.f32.mrb[5].mxu1 }
 0x3b0   :  { %v2722_v19 = vmax.f32 %v2691_v6, %v2692_v14  ;;  %v2617_v21 = vmul.f32 %v8378_v45, %v2500_v17  ;;  %v2502_v20 = vpop.f32.mrb[6].mxu1 }
 0x3b1   :  { %v2661_v16 = vadd.f32 %v8381_v46, %v2616_v59  ;;  %v2618_v13 = vmul.f32 %v8375_v28, %v2502_v20  ;;  %v2504_v10 = vpop.f32.mrb[7].mxu1 }
 0x3b2   :  { %v2737_v9 = vmax.f32 %v2721_v11, %v2722_v19  ;;  %v2662_v55 = vadd.f32 %v8384_v48, %v2617_v21  ;;  %v2619_v60 = vmul.f32 %v8378_v45, %v2504_v10 }
 0x3b3   :  { %v2693_v34 = vmax.f32 %v2661_v16, 0.0  ;;  %v2663_v3 = vadd.f32 %v8381_v46, %v2618_v13 }
 0x3b4   :  { %v2694_v56 = vmax.f32 %v2662_v55, 0.0  ;;  %v2664_v62 = vadd.f32 %v8384_v48, %v2619_v60 }
 0x3b5   :  { %v2695_v1 = vmax.f32 %v2663_v3, 0.0 }
 0x3b6   :  { %v2723_v7 = vmax.f32 %v2693_v34, %v2694_v56  ;;  %v2696_v25 = vmax.f32 %v2664_v62, 0.0  ;;  %v2508_v35 = vpop.f32.mrb[8].mxu1 }
 0x3b7   :  { %v2620_v8 = vmul.f32 %v8375_v28, %v2508_v35  ;;  %v2510_v36 = vpop.f32.mrb[9].mxu1 }
 0x3b8   :  { %v2724_v38 = vmax.f32 %v2695_v1, %v2696_v25  ;;  %v2621_v23 = vmul.f32 %v8378_v45, %v2510_v36  ;;  %v2512_v12 = vpop.f32.mrb[10].mxu1 }
 0x3b9   :  { %v2665_v27 = vadd.f32 %v8381_v46, %v2620_v8  ;;  %v2622_v29 = vmul.f32 %v8375_v28, %v2512_v12  ;;  %v2514_v32 = vpop.f32.mrb[11].mxu1 }
 0x3ba   :  { %v2738_v30 = vmax.f32 %v2723_v7, %v2724_v38  ;;  %v2666_v33 = vadd.f32 %v8384_v48, %v2621_v23  ;;  %v2623_v26 = vmul.f32 %v8378_v45, %v2514_v32 }
 0x3bb   :  { %v2697_v37 = vmax.f32 %v2665_v27, 0.0  ;;  %v2667_v2 = vadd.f32 %v8381_v46, %v2622_v29 }
 0x3bc   :  { %v2749_v40 = vpack.c.bf16 %v2738_v30, %v2737_v9  ;;  %v2698_v22 = vmax.f32 %v2666_v33, 0.0  ;;  %v2668_v24 = vadd.f32 %v8384_v48, %v2623_v26 }
 0x3bd   :  { %v2699_v42 = vmax.f32 %v2667_v2, 0.0 }
 0x3be   :  { %v2757_v43 = vrot.slane %v2749_v40, 4  ;;  %v2725_v44 = vmax.f32 %v2697_v37, %v2698_v22  ;;  %v2700_v47 = vmax.f32 %v2668_v24, 0.0  ;;  %v2518_v49 = vpop.f32.mrb[12].mxu1  ;;  %v6842_v24 = vld [vmem:[%s9423_s3] ss:$8 sps:$4 sm:$0xff]  }
 0x3bf   :  { %v2624_v50 = vmul.f32 %v8375_v28, %v2518_v49  ;;  %v2520_v51 = vpop.f32.mrb[13].mxu1 }
 0x3c0   :  { %2769 = vst [vmem:[#allocation4] sm:$0xf0] %v2757_v43  ;;  %v2726_v52 = vmax.f32 %v2699_v42, %v2700_v47  ;;  %v2625_v53 = vmul.f32 %v8378_v45, %v2520_v51  ;;  %v2522_v54 = vpop.f32.mrb[14].mxu1 }
 0x3c1   :  { %v2669_v57 = vadd.f32 %v8381_v46, %v2624_v50  ;;  %v2626_v58 = vmul.f32 %v8375_v28, %v2522_v54  ;;  %v2524_v61 = vpop.f32.mrb[15].mxu1  ;;  %v6847_v50 = vld [vmem:[%s9423_s3 + $0x14] ss:$8 sps:$4 sm:$0xff]  }
 0x3c2   :  { %v2739_v63 = vmax.f32 %v2725_v44, %v2726_v52  ;;  %v2670_v0 = vadd.f32 %v8384_v48, %v2625_v53  ;;  %v2627_v4 = vmul.f32 %v8378_v45, %v2524_v61  ;;  %v6845_v61 = vld [vmem:[%s9423_s3 + $0x10] ss:$8 sps:$4 sm:$0xff]  }
 0x3c3   :  { %v2701_v5 = vmax.f32 %v2669_v57, 0.0  ;;  %v2671_v6 = vadd.f32 %v8381_v46, %v2626_v58 }
 0x3c4   :  { %v2702_v11 = vmax.f32 %v2670_v0, 0.0  ;;  %v2672_v14 = vadd.f32 %v8384_v48, %v2627_v4 }
 0x3c5   :  { %v2703_v15 = vmax.f32 %v2671_v6, 0.0 }
 0x3c6   :  { %v2727_v59 = vmax.f32 %v2701_v5, %v2702_v11  ;;  %v2704_v17 = vmax.f32 %v2672_v14, 0.0  ;;  %v2528_v19 = vpop.f32.mrb[16].mxu1  ;;  %v6850_v5 = vld [vmem:[%s9423_s3 + $0x24] ss:$8 sps:$4 sm:$0xff]  }
 0x3c7   :  { %v2628_v21 = vmul.f32 %v8375_v28, %v2528_v19  ;;  %v2530_v20 = vpop.f32.mrb[17].mxu1  ;;  %v2819_v27 = vld [vmem:[#allocation4] sm:$0xf0] }
 0x3c8   :  { %v2728_v16 = vmax.f32 %v2703_v15, %v2704_v17  ;;  %v2629_v13 = vmul.f32 %v8378_v45, %v2530_v20  ;;  %v2532_v10 = vpop.f32.mrb[18].mxu1  ;;  %v2872_v42 = vrot.slane %v2819_v27, 4  ;;  %v6848_v20 = vld [vmem:[%s9423_s3 + $0x20] ss:$8 sps:$4 sm:$0xff]  }
 0x3c9   :  { %v2673_v9 = vadd.f32 %v8381_v46, %v2628_v21  ;;  %v2630_v55 = vmul.f32 %v8375_v28, %v2532_v10  ;;  %v2534_v60 = vpop.f32.mrb[19].mxu1 }
 0x3ca   :  { %v2740_v34 = vmax.f32 %v2727_v59, %v2728_v16  ;;  %v2674_v3 = vadd.f32 %v8384_v48, %v2629_v13  ;;  %v2631_v56 = vmul.f32 %v8378_v45, %v2534_v60 }
 0x3cb   :  { %v2705_v62 = vmax.f32 %v2673_v9, 0.0  ;;  %v2675_v1 = vadd.f32 %v8381_v46, %v2630_v55  ;;  %v6853_v9 = vld [vmem:[%s9423_s3 + $0x34] ss:$8 sps:$4 sm:$0xff]  }
 0x3cc   :  { %v8425_v7 = vpack.c.bf16 %v2740_v34, %v2739_v63  ;;  %v2706_v25 = vmax.f32 %v2674_v3, 0.0  ;;  %v2676_v35 = vadd.f32 %v8384_v48, %v2631_v56 }
 0x3cd   :  { %v2707_v8 = vmax.f32 %v2675_v1, 0.0  ;;  %v6851_v1 = vld [vmem:[%s9423_s3 + $0x30] ss:$8 sps:$4 sm:$0xff]  }
 0x3ce   :  { %v2758_v36 = vrot.slane %v8425_v7, 4  ;;  %v2729_v38 = vmax.f32 %v2705_v62, %v2706_v25  ;;  %v2708_v23 = vmax.f32 %v2676_v35, 0.0  ;;  %v2538_v12 = vpop.f32.mrb[20].mxu1 }
 0x3cf   :  { %v2632_v29 = vmul.f32 %v8375_v28, %v2538_v12  ;;  %v2540_v32 = vpop.f32.mrb[21].mxu1 }
 0x3d0   :  { %v8433_v30 = vsel %vm269_vm0, %v2757_v43, %v2758_v36  ;;  %v2730_v33 = vmax.f32 %v2707_v8, %v2708_v23  ;;  %v2633_v26 = vmul.f32 %v8378_v45, %v2540_v32  ;;  %v2542_v37 = vpop.f32.mrb[22].mxu1  ;;  %v6856_v23 = vld [vmem:[%s9423_s3 + $0x44] ss:$8 sps:$4 sm:$0xff]  }
 0x3d1   :  { %v2677_v2 = vadd.f32 %v8381_v46, %v2632_v29  ;;  %v2634_v40 = vmul.f32 %v8375_v28, %v2542_v37  ;;  %v2544_v22 = vpop.f32.mrb[23].mxu1  ;;  %v2873_v44 = vrot.slane %v8433_v30, 4 }
 0x3d2   :  { %v2741_v47 = vmax.f32 %v2729_v38, %v2730_v33  ;;  %v2678_v43 = vadd.f32 %v8384_v48, %v2633_v26  ;;  %v2635_v49 = vmul.f32 %v8378_v45, %v2544_v22  ;;  %v6854_v22 = vld [vmem:[%s9423_s3 + $0x40] ss:$8 sps:$4 sm:$0xff]  }
 0x3d3   :  { %v2709_v51 = vmax.f32 %v2677_v2, 0.0  ;;  %v2679_v52 = vadd.f32 %v8381_v46, %v2634_v40  ;;  %v2874_v53 = vsel %vm269_vm0, %v2872_v42, %v2873_v44 }
 0x3d4   :  { %v2710_v54 = vmax.f32 %v2678_v43, 0.0  ;;  %v2680_v57 = vadd.f32 %v8384_v48, %v2635_v49  ;;  %3091 = vmatmul.mubr.bf16.vlgmr.msra.gmra.mrb[32].mxu1 %v2874_v53 }
 0x3d5   :  { %v2711_v58 = vmax.f32 %v2679_v52, 0.0  ;;  %3292 = vmatpush1.bf16.msra.mxu1 %v6842_v24  ;;  %3100 = vmatprep.mubr.bf16.mxu1 %v8361_v41 }
 0x3d6   :  { %v2731_v63 = vmax.f32 %v2709_v51, %v2710_v54  ;;  %v2712_v0 = vmax.f32 %v2680_v57, 0.0  ;;  %v2548_v4 = vpop.f32.mrb[24].mxu1  ;;  %3293 = vmatprep.subr.bf16.mxu1 %v6847_v50 }
 0x3d7   :  { %v2636_v6 = vmul.f32 %v8375_v28, %v2548_v4  ;;  %v2550_v11 = vpop.f32.mrb[25].mxu1  ;;  %v6940_v4 = vld [vmem:[%s9424_s4 + $0x104] ss:$8 sps:$4 sm:$0xff]  }
 0x3d8   :  { %v2732_v14 = vmax.f32 %v2711_v58, %v2712_v0  ;;  %v2637_v15 = vmul.f32 %v8378_v45, %v2550_v11  ;;  %v2552_v59 = vpop.f32.mrb[26].mxu1  ;;  %v6865_v58 = vld [vmem:[%s9423_s3 + $0x74] ss:$8 sps:$4 sm:$0xff]   ;;  %v6938_v0 = vld [vmem:[%s9424_s4 + $0x100] ss:$8 sps:$4 sm:$0xff]   ;;  %4009 = vmatprep.subr.bf16.mxu0 %v6940_v4 }
 0x3d9   :  { %v2681_v17 = vadd.f32 %v8381_v46, %v2636_v6  ;;  %v2638_v19 = vmul.f32 %v8375_v28, %v2552_v59  ;;  %v2554_v21 = vpop.f32.mrb[27].mxu1  ;;  %3294 = vmatpush1.bf16.msra.mxu1 %v6845_v61  ;;  %v2828_v61 = vld [vmem:[#allocation4 + $0x48] sm:$0xf]  ;;  %v6943_v6 = vld [vmem:[%s9424_s4 + $0x114] ss:$8 sps:$4 sm:$0xff]   ;;  %4010 = vmatpush1.bf16.msra.mxu0 %v6938_v0 }
 0x3da   :  { %v2742_v16 = vmax.f32 %v2731_v63, %v2732_v14  ;;  %v2682_v13 = vadd.f32 %v8384_v48, %v2637_v15  ;;  %v2639_v10 = vmul.f32 %v8378_v45, %v2554_v21  ;;  %3295 = vmatprep.subr.bf16.mxu1 %v6850_v5  ;;  %v6863_v5 = vld [vmem:[%s9423_s3 + $0x70] ss:$8 sps:$4 sm:$0xff]   ;;  %v6868_v14 = vld [vmem:[%s9423_s3 + $0x84] ss:$8 sps:$4 sm:$0xff]   ;;  %v2888_v15 = vrot.slane %v2828_v61, 4  ;;  %4011 = vmatprep.subr.bf16.mxu0 %v6943_v6 }
 0x3db   :  { %v2713_v55 = vmax.f32 %v2681_v17, 0.0  ;;  %v2683_v60 = vadd.f32 %v8381_v46, %v2638_v19  ;;  %v6941_v59 = vld [vmem:[%s9424_s4 + $0x110] ss:$8 sps:$4 sm:$0xff]   ;;  %v6946_v19 = vld [vmem:[%s9424_s4 + $0x124] ss:$8 sps:$4 sm:$0xff]  }
 0x3dc   :  { %v8472_v34 = vpack.c.bf16 %v2742_v16, %v2741_v47  ;;  %v2714_v3 = vmax.f32 %v2682_v13, 0.0  ;;  %v2684_v56 = vadd.f32 %v8384_v48, %v2639_v10  ;;  %v6859_v47 = vld [vmem:[%s9423_s3 + $0x54] ss:$8 sps:$4 sm:$0xff]   ;;  %v6866_v21 = vld [vmem:[%s9423_s3 + $0x80] ss:$8 sps:$4 sm:$0xff]   ;;  %v2889_v13 = vsel %vm269_vm0, %v8361_v41, %v2888_v15 }
 0x3dd   :  { %v2715_v62 = vmax.f32 %v2683_v60, 0.0  ;;  %3296 = vmatpush1.bf16.msra.mxu1 %v6848_v20  ;;  %v6871_v16 = vld [vmem:[%s9423_s3 + $0x94] ss:$8 sps:$4 sm:$0xff]   ;;  %4012 = vmatpush1.bf16.msra.mxu0 %v6941_v59  ;;  %v6869_v60 = vld [vmem:[%s9423_s3 + $0x90] ss:$8 sps:$4 sm:$0xff]  }
 0x3de   :  { %v2760_v25 = vrot.slane %v8472_v34, 4  ;;  %v2733_v35 = vmax.f32 %v2713_v55, %v2714_v3  ;;  %v2716_v8 = vmax.f32 %v2684_v56, 0.0  ;;  %v2558_v38 = vpop.f32.mrb[28].mxu1  ;;  %3297 = vmatprep.subr.bf16.mxu1 %v6853_v9  ;;  %v6944_v9 = vld [vmem:[%s9424_s4 + $0x120] ss:$8 sps:$4 sm:$0xff]   ;;  %4013 = vmatprep.subr.bf16.mxu0 %v6946_v19 }
 0x3df   :  { %v2640_v12 = vmul.f32 %v8375_v28, %v2558_v38  ;;  %v2560_v27 = vpop.f32.mrb[29].mxu1  ;;  %v6949_v55 = vld [vmem:[%s9424_s4 + $0x134] ss:$8 sps:$4 sm:$0xff]   ;;  %v6874_v34 = vld [vmem:[%s9423_s3 + $0xa4] ss:$8 sps:$4 sm:$0xff]  }
 0x3e0   :  { %v8486_v29 = vsel %vm269_vm0, %v2758_v36, %v2760_v25  ;;  %v2734_v32 = vmax.f32 %v2715_v62, %v2716_v8  ;;  %v2641_v33 = vmul.f32 %v8378_v45, %v2560_v27  ;;  %v2562_v26 = vpop.f32.mrb[30].mxu1  ;;  %v6947_v56 = vld [vmem:[%s9424_s4 + $0x130] ss:$8 sps:$4 sm:$0xff]   ;;  %v6877_v8 = vld [vmem:[%s9423_s3 + $0xb4] ss:$8 sps:$4 sm:$0xff]   ;;  %v2780_v38 = vld [vmem:[#allocation4 + $0x8] sm:$0xff] }
 0x3e1   :  { %v2685_v37 = vadd.f32 %v8381_v46, %v2640_v12  ;;  %v2642_v2 = vmul.f32 %v8375_v28, %v2562_v26  ;;  %v2564_v40 = vpop.f32.mrb[31].mxu1  ;;  %3298 = vmatpush1.bf16.msra.mxu1 %v6851_v1  ;;  %v2878_v24 = vrot.slane %v8486_v29, 4  ;;  %4014 = vmatpush1.bf16.msra.mxu0 %v6944_v9  ;;  %v6952_v1 = vld [vmem:[%s9424_s4 + $0x144] ss:$8 sps:$4 sm:$0xff]   ;;  %v6955_v12 = vld [vmem:[%s9424_s4 + $0x154] ss:$8 sps:$4 sm:$0xff]  }
 0x3e2   :  { %v2743_v7 = vmax.f32 %v2733_v35, %v2734_v32  ;;  %v2686_v36 = vadd.f32 %v8384_v48, %v2641_v33  ;;  %v2643_v42 = vmul.f32 %v8378_v45, %v2564_v40  ;;  %3299 = vmatprep.subr.bf16.mxu1 %v6856_v23  ;;  %v6857_v45 = vld [vmem:[%s9423_s3 + $0x50] ss:$8 sps:$4 sm:$0xff]   ;;  %4015 = vmatprep.subr.bf16.mxu0 %v6949_v55  ;;  %v6950_v23 = vld [vmem:[%s9424_s4 + $0x140] ss:$8 sps:$4 sm:$0xff]   ;;  %v6880_v32 = vld [vmem:[%s9423_s3 + $0xc4] ss:$8 sps:$4 sm:$0xff]  }
 0x3e3   :  { %v2717_v43 = vmax.f32 %v2685_v37, 0.0  ;;  %v2687_v28 = vadd.f32 %v8381_v46, %v2642_v2  ;;  %v2879_v49 = vsel %vm269_vm0, %v2873_v44, %v2878_v24  ;;  %v6862_v46 = vld [vmem:[%s9423_s3 + $0x64] ss:$8 sps:$4 sm:$0xff]   ;;  %v6875_v27 = vld [vmem:[%s9423_s3 + $0xb0] ss:$8 sps:$4 sm:$0xff]  }
 0x3e4   :  { %v2718_v50 = vmax.f32 %v2686_v36, 0.0  ;;  %v2688_v51 = vadd.f32 %v8384_v48, %v2643_v42  ;;  %3101 = vmatmul.mubr.bf16.gmra.mrb[36].mxu1 %v2879_v49  ;;  %v6860_v48 = vld [vmem:[%s9423_s3 + $0x60] ss:$8 sps:$4 sm:$0xff]   ;;  %v6953_v33 = vld [vmem:[%s9424_s4 + $0x150] ss:$8 sps:$4 sm:$0xff]  }
 0x3e5   :  { %v2719_v52 = vmax.f32 %v2687_v28, 0.0  ;;  %3300 = vmatpush1.bf16.msra.mxu1 %v6854_v22  ;;  %3110 = vmatprep.mubr.bf16.mxu1 %v8361_v41  ;;  %v6958_v26 = vld [vmem:[%s9424_s4 + $0x164] ss:$8 sps:$4 sm:$0xff]   ;;  %v6878_v37 = vld [vmem:[%s9423_s3 + $0xc0] ss:$8 sps:$4 sm:$0xff]  }
 0x3e6   :  { %v2735_v53 = vmax.f32 %v2717_v43, %v2718_v50  ;;  %v2720_v54 = vmax.f32 %v2688_v51, 0.0  ;;  %3301 = vmatprep.subr.bf16.mxu1 %v6859_v47  ;;  %4016 = vmatpush1.bf16.msra.mxu0 %v6947_v56  ;;  %v6883_v2 = vld [vmem:[%s9423_s3 + $0xd4] ss:$8 sps:$4 sm:$0xff]   ;;  %v6956_v40 = vld [vmem:[%s9424_s4 + $0x160] ss:$8 sps:$4 sm:$0xff]  }
 0x3e7   :  { %4017 = vmatprep.subr.bf16.mxu0 %v6952_v1  ;;  %v6961_v22 = vld [vmem:[%s9424_s4 + $0x174] ss:$8 sps:$4 sm:$0xff]   ;;  %v6959_v36 = vld [vmem:[%s9424_s4 + $0x170] ss:$8 sps:$4 sm:$0xff]   ;;  %v6964_v42 = vld [vmem:[%s9424_s4 + $0x184] ss:$8 sps:$4 sm:$0xff]  }
 0x3e8   :  { %v2736_v44 = vmax.f32 %v2719_v52, %v2720_v54  ;;  %v6884_v47 = vld [vmem:[%s9423_s3 + $0xe0] ss:$8 sps:$4 sm:$0xff]   ;;  %v6889_v43 = vld [vmem:[%s9423_s3 + $0xf4] ss:$8 sps:$4 sm:$0xff]   ;;  %v6887_v50 = vld [vmem:[%s9423_s3 + $0xf0] ss:$8 sps:$4 sm:$0xff]  }
 0x3e9   :  { %3302 = vmatpush1.bf16.msra.mxu1 %v6857_v45  ;;  %v6962_v28 = vld [vmem:[%s9424_s4 + $0x180] ss:$8 sps:$4 sm:$0xff]   ;;  %v6967_v49 = vld [vmem:[%s9424_s4 + $0x194] ss:$8 sps:$4 sm:$0xff]   ;;  %v6892_v51 = vld [vmem:[%s9423_s3 + $0x204] ss:$8 sps:$4 sm:$0xff]  }
 0x3ea   :  { %v2744_v57 = vmax.f32 %v2735_v53, %v2736_v44  ;;  %3303 = vmatprep.subr.bf16.mxu1 %v6862_v46  ;;  %4018 = vmatpush1.bf16.msra.mxu0 %v6950_v23  ;;  %v6965_v52 = vld [vmem:[%s9424_s4 + $0x190] ss:$8 sps:$4 sm:$0xff]   ;;  %v6890_v45 = vld [vmem:[%s9423_s3 + $0x200] ss:$8 sps:$4 sm:$0xff]   ;;  %v6895_v53 = vld [vmem:[%s9423_s3 + $0x214] ss:$8 sps:$4 sm:$0xff]  }
 0x3eb   :  { %4019 = vmatprep.subr.bf16.mxu0 %v6955_v12  ;;  %v2779_v54 = vld [vmem:[#allocation4] sm:$0xff]  ;;  %v6898_v44 = vld [vmem:[%s9423_s3 + $0x224] ss:$8 sps:$4 sm:$0xff]   ;;  %v6908_v6 = vld [vmem:[%s9423_s3 + $0x260] ss:$8 sps:$4 sm:$0xff]  }
 0x3ec   :  { %v2752_v63 = vpack.c.bf16 %v2744_v57, %v2743_v7  ;;  %v6886_v7 = vld [vmem:[%s9423_s3 + $0xe4] ss:$8 sps:$4 sm:$0xff]   ;;  %v6893_v46 = vld [vmem:[%s9423_s3 + $0x210] ss:$8 sps:$4 sm:$0xff]   ;;  %v6901_v57 = vld [vmem:[%s9423_s3 + $0x234] ss:$8 sps:$4 sm:$0xff]  }
 0x3ed   :  { %3304 = vmatpush1.bf16.msra.mxu1 %v6860_v48  ;;  %v6896_v48 = vld [vmem:[%s9423_s3 + $0x220] ss:$8 sps:$4 sm:$0xff]   ;;  %v6904_v61 = vld [vmem:[%s9423_s3 + $0x244] ss:$8 sps:$4 sm:$0xff]   ;;  %v6907_v0 = vld [vmem:[%s9423_s3 + $0x254] ss:$8 sps:$4 sm:$0xff]  }
 0x3ee   :  { %v2762_v11 = vrot.slane %v2752_v63, 4  ;;  %3305 = vmatprep.subr.bf16.mxu1 %v6865_v58  ;;  %4020 = vmatpush1.bf16.msra.mxu0 %v6953_v33  ;;  %v6899_v58 = vld [vmem:[%s9423_s3 + $0x230] ss:$8 sps:$4 sm:$0xff]   ;;  %v6902_v63 = vld [vmem:[%s9423_s3 + $0x240] ss:$8 sps:$4 sm:$0xff]  }
 0x3ef   :  { %4021 = vmatprep.subr.bf16.mxu0 %v6958_v26  ;;  %v6905_v4 = vld [vmem:[%s9423_s3 + $0x250] ss:$8 sps:$4 sm:$0xff]   ;;  %v6916_v15 = vld [vmem:[%s9423_s3 + $0x284] ss:$8 sps:$4 sm:$0xff]   ;;  %v6914_v59 = vld [vmem:[%s9423_s3 + $0x280] ss:$8 sps:$4 sm:$0xff]  }
 0x3f0   :  { %v8537_v17 = vsel %vm269_vm0, %v2760_v25, %v2762_v11  ;;  %2773 = vst [vmem:[#allocation4 + $0x40] sm:$0xf] %v2762_v11  ;;  %v6872_v25 = vld [vmem:[%s9423_s3 + $0xa0] ss:$8 sps:$4 sm:$0xff]   ;;  %v6913_v11 = vld [vmem:[%s9423_s3 + $0x274] ss:$8 sps:$4 sm:$0xff]  }
 0x3f1   :  { %3306 = vmatpush1.bf16.msra.mxu1 %v6863_v5  ;;  %v2882_v20 = vrot.slane %v8537_v17, 4  ;;  %v6910_v5 = vld [vmem:[%s9423_s3 + $0x264] ss:$8 sps:$4 sm:$0xff]   ;;  %v6919_v19 = vld [vmem:[%s9423_s3 + $0x294] ss:$8 sps:$4 sm:$0xff]  }
 0x3f2   :  { %3307 = vmatprep.subr.bf16.mxu1 %v6868_v14  ;;  %4022 = vmatpush1.bf16.msra.mxu0 %v6956_v40  ;;  %v6911_v14 = vld [vmem:[%s9423_s3 + $0x270] ss:$8 sps:$4 sm:$0xff]   ;;  %v6926_v9 = vld [vmem:[%s9423_s3 + $0x2c0] ss:$8 sps:$4 sm:$0xff]   ;;  %v6931_v55 = vld [vmem:[%s9423_s3 + $0x2d4] ss:$8 sps:$4 sm:$0xff]  }
 0x3f3   :  { %v2883_v10 = vsel %vm269_vm0, %v2878_v24, %v2882_v20  ;;  %v6881_v24 = vld [vmem:[%s9423_s3 + $0xd0] ss:$8 sps:$4 sm:$0xff]   ;;  %4023 = vmatprep.subr.bf16.mxu0 %v6961_v22  ;;  %v6937_v56 = vld [vmem:[%s9423_s3 + $0x2f4] ss:$8 sps:$4 sm:$0xff]   ;;  %v8741_v1 = vld [vmem:[#allocation3 + $0x18] sm:$0xff] }
 0x3f4   :  { %3111 = vmatmul.mubr.bf16.gmra.mrb[40].mxu1 %v2883_v10  ;;  %v6928_v10 = vld [vmem:[%s9423_s3 + $0x2c4] ss:$8 sps:$4 sm:$0xff]   ;;  %v6974_v23 = vld [vmem:[%s9424_s4 + $0x1c0] ss:$8 sps:$4 sm:$0xff]   ;;  %v6979_v12 = vld [vmem:[%s9424_s4 + $0x1d4] ss:$8 sps:$4 sm:$0xff]  }
 0x3f5   :  { %3308 = vmatpush1.bf16.msra.mxu1 %v6866_v21  ;;  %3120 = vmatprep.mubr.bf16.mxu1 %v2889_v13  ;;  %v6922_v21 = vld [vmem:[%s9423_s3 + $0x2a4] ss:$8 sps:$4 sm:$0xff]   ;;  %v6923_v13 = vld [vmem:[%s9423_s3 + $0x2b0] ss:$8 sps:$4 sm:$0xff]   ;;  %v6980_v33 = vld [vmem:[%s9424_s4 + $0x1e0] ss:$8 sps:$4 sm:$0xff]  }
 0x3f6   :  { %3309 = vmatprep.subr.bf16.mxu1 %v6871_v16  ;;  %4024 = vmatpush1.bf16.msra.mxu0 %v6959_v36  ;;  %v6925_v16 = vld [vmem:[%s9423_s3 + $0x2b4] ss:$8 sps:$4 sm:$0xff]   ;;  %v6988_v22 = vld [vmem:[%s9424_s4 + $0x4] ss:$8 sps:$4 sm:$0xff]  }
 0x3f7   :  { %v2827_v3 = vld [vmem:[#allocation4 + $0x40] sm:$0xf]  ;;  %4025 = vmatprep.subr.bf16.mxu0 %v6964_v42  ;;  %v6985_v26 = vld [vmem:[%s9424_s4 + $0x1f4] ss:$8 sps:$4 sm:$0xff]  }
 0x3f8   :  { %v2886_v62 = vrot.slane %v2827_v3, 4  ;;  %v6932_v3 = vld [vmem:[%s9423_s3 + $0x2e0] ss:$8 sps:$4 sm:$0xff]  }
 0x3f9   :  { %3310 = vmatpush1.bf16.msra.mxu1 %v6869_v60  ;;  %v6929_v60 = vld [vmem:[%s9423_s3 + $0x2d0] ss:$8 sps:$4 sm:$0xff]   ;;  %v5905_v36 = vld [vmem:[%s9427_s7 + $0x2] ss:$8 sm:$0x3] }
 0x3fa   :  { %3311 = vmatprep.subr.bf16.mxu1 %v6874_v34  ;;  %v2887_v35 = vsel %vm269_vm0, %v2882_v20, %v2886_v62  ;;  %4026 = vmatpush1.bf16.msra.mxu0 %v6962_v28  ;;  %v6920_v20 = vld [vmem:[%s9423_s3 + $0x2a0] ss:$8 sps:$4 sm:$0xff]   ;;  %v6934_v34 = vld [vmem:[%s9423_s3 + $0x2e4] ss:$8 sps:$4 sm:$0xff]   ;;  %v6935_v62 = vld [vmem:[%s9423_s3 + $0x2f0] ss:$8 sps:$4 sm:$0xff]  }
 0x3fb   :  { %4027 = vmatprep.subr.bf16.mxu0 %v6967_v49  ;;  %v8804_v49 = vrot.slane %v5905_v36, %v7809_v18 }
 0x3fc   :  { %3121 = vmatmul.mubr.bf16.gmra.mrb[44].mxu1 %v2887_v35  ;;  %v3364_v35 = vld [vmem:[#allocation4 + $0x40] sm:$0xff] }
 0x3fd   :  { %3312 = vmatpush1.bf16.msra.mxu1 %v6872_v25  ;;  %3323 = vmatprep.mubr.bf16.mxu1 %v2780_v38  ;;  %v3365_v25 = vld [vmem:[#allocation4 + $0x48] sm:$0xff] }
 0x3fe   :  { %3313 = vmatprep.subr.bf16.mxu1 %v6877_v8  ;;  %4028 = vmatpush1.bf16.msra.mxu0 %v6965_v52  ;;  %v6968_v8 = vld [vmem:[%s9424_s4 + $0x1a0] ss:$8 sps:$4 sm:$0xff]   ;;  %v6976_v38 = vld [vmem:[%s9424_s4 + $0x1c4] ss:$8 sps:$4 sm:$0xff]  }
 0x401   :  { %3314 = vmatpush1.bf16.msra.mxu1 %v6875_v27  ;;  %v6977_v27 = vld [vmem:[%s9424_s4 + $0x1d0] ss:$8 sps:$4 sm:$0xff]  }
 0x402   :  { %3315 = vmatprep.subr.bf16.mxu1 %v6880_v32  ;;  %v6982_v32 = vld [vmem:[%s9424_s4 + $0x1e4] ss:$8 sps:$4 sm:$0xff]  }
 0x405   :  { %3316 = vmatpush1.bf16.msra.mxu1 %v6878_v37  ;;  %v6983_v37 = vld [vmem:[%s9424_s4 + $0x1f0] ss:$8 sps:$4 sm:$0xff]  }
 0x406   :  { %3317 = vmatprep.subr.bf16.mxu1 %v6883_v2  ;;  %v3791_v2 = vld [vmem:[#allocation5 + $0x8] sm:$0xf0] }
 0x407   :  { %v3838_v40 = vrot.slane %v3791_v2, 4 }
 0x409   :  { %3318 = vmatpush1.bf16.msra.mxu1 %v6881_v24  ;;  %v3840_v24 = vsel %vm269_vm0, %v3838_v40, %v8361_v41 }
 0x40a   :  { %3319 = vmatprep.subr.bf16.mxu1 %v6886_v7  ;;  %4041 = vmatprep.mubr.bf16.mxu0 %v3840_v24  ;;  %v5904_v7 = vld [vmem:[%s9426_s6 + $0x2] ss:$8 sm:$0x3] }
 0x40b   :  { %v8795_v42 = vrot.slane %v5904_v7, %v7804_v31 }
 0x40d   :  { %3320 = vmatpush1.bf16.msra.mxu1 %v6884_v47  ;;  %v8798_v47 = vrot.slane %v5904_v7, %v7809_v18 }
 0x40e   :  { %3321 = vmatprep.subr.bf16.mxu1 %v6889_v43  ;;  %v8801_v43 = vrot.slane %v5905_v36, %v7804_v31 }
 0x411   :  { %3322 = vmatpush1.bf16.msra.mxu1 %v6887_v50 }
 0x412   :  { %3559 = vmatprep.subr.bf16.mxu1 %v6892_v51 }
 0x414   :  { %3324 = vmatmul.mubr.bf16.vlgmr.msra.gmra.mrb[32].mxu1 %v2779_v54 }
 0x415   :  { %3560 = vmatpush1.bf16.msra.mxu1 %v6890_v45  ;;  %3333 = vmatprep.mubr.bf16.mxu1 %v8150_v39 }
 0x416   :  { %3561 = vmatprep.subr.bf16.mxu1 %v6895_v53 }
 0x419   :  { %3562 = vmatpush1.bf16.msra.mxu1 %v6893_v46 }
 0x41a   :  { %3563 = vmatprep.subr.bf16.mxu1 %v6898_v44 }
 0x41c   :  { %3334 = vmatmul.mubr.bf16.gmra.mrb[36].mxu1 %v8433_v30 }
 0x41d   :  { %3564 = vmatpush1.bf16.msra.mxu1 %v6896_v48  ;;  %3343 = vmatprep.mubr.bf16.mxu1 %v8150_v39 }
 0x41e   :  { %3565 = vmatprep.subr.bf16.mxu1 %v6901_v57 }
 0x421   :  { %3566 = vmatpush1.bf16.msra.mxu1 %v6899_v58 }
 0x422   :  { %3567 = vmatprep.subr.bf16.mxu1 %v6904_v61 }
 0x424   :  { %3344 = vmatmul.mubr.bf16.gmra.mrb[40].mxu1 %v8486_v29 }
 0x425   :  { %3568 = vmatpush1.bf16.msra.mxu1 %v6902_v63  ;;  %3353 = vmatprep.mubr.bf16.mxu1 %v8150_v39 }
 0x426   :  { %3569 = vmatprep.subr.bf16.mxu1 %v6907_v0 }
 0x429   :  { %3570 = vmatpush1.bf16.msra.mxu1 %v6905_v4 }
 0x42a   :  { %3571 = vmatprep.subr.bf16.mxu1 %v6910_v5 }
 0x42c   :  { %3354 = vmatmul.mubr.bf16.gmra.mrb[44].mxu1 %v8537_v17 }
 0x42d   :  { %3572 = vmatpush1.bf16.msra.mxu1 %v6908_v6  ;;  %3591 = vmatprep.mubr.bf16.mxu1 %v8150_v39  ;;  %v6917_v39 = vld [vmem:[%s9423_s3 + $0x290] ss:$8 sps:$4 sm:$0xff]  }
 0x42e   :  { %3573 = vmatprep.subr.bf16.mxu1 %v6913_v11 }
 0x431   :  { %3574 = vmatpush1.bf16.msra.mxu1 %v6911_v14 }
 0x432   :  { %3575 = vmatprep.subr.bf16.mxu1 %v6916_v15 }
 0x435   :  { %3576 = vmatpush1.bf16.msra.mxu1 %v6914_v59 }
 0x436   :  { %3577 = vmatprep.subr.bf16.mxu1 %v6919_v19 }
 0x439   :  { %3578 = vmatpush1.bf16.msra.mxu1 %v6917_v39 }
 0x43a   :  { %3579 = vmatprep.subr.bf16.mxu1 %v6922_v21 }
 0x43d   :  { %3580 = vmatpush1.bf16.msra.mxu1 %v6920_v20 }
 0x43e   :  { %3581 = vmatprep.subr.bf16.mxu1 %v6925_v16 }
 0x441   :  { %3582 = vmatpush1.bf16.msra.mxu1 %v6923_v13 }
 0x442   :  { %3583 = vmatprep.subr.bf16.mxu1 %v6928_v10 }
 0x445   :  { %3584 = vmatpush1.bf16.msra.mxu1 %v6926_v9 }
 0x446   :  { %3585 = vmatprep.subr.bf16.mxu1 %v6931_v55 }
 0x449   :  { %3586 = vmatpush1.bf16.msra.mxu1 %v6929_v60 }
 0x44a   :  { %3587 = vmatprep.subr.bf16.mxu1 %v6934_v34 }
 0x44d   :  { %3588 = vmatpush1.bf16.msra.mxu1 %v6932_v3 }
 0x44e   :  { %3589 = vmatprep.subr.bf16.mxu1 %v6937_v56 }
 0x451   :  { %3590 = vmatpush1.bf16.msra.mxu1 %v6935_v62 }
 0x454   :  { %3592 = vmatmul.mubr.bf16.vlgmr.msra.gmra.mrb[32].mxu1 %v8433_v30  ;;  %v6970_v30 = vld [vmem:[%s9424_s4 + $0x1a4] ss:$8 sps:$4 sm:$0xff]  }
 0x455   :  { %3601 = vmatprep.mubr.bf16.mxu1 %v8741_v1  ;;  %4029 = vmatprep.subr.bf16.mxu0 %v6970_v30 }
 0x456   :  { %4030 = vmatpush1.bf16.msra.mxu0 %v6968_v8 }
 0x45c   :  { %3602 = vmatmul.mubr.bf16.gmra.mrb[36].mxu1 %v8486_v29  ;;  %v6973_v29 = vld [vmem:[%s9424_s4 + $0x1b4] ss:$8 sps:$4 sm:$0xff]  }
 0x45d   :  { %3611 = vmatprep.mubr.bf16.mxu1 %v8741_v1  ;;  %4031 = vmatprep.subr.bf16.mxu0 %v6973_v29 }
 0x464   :  { %3612 = vmatmul.mubr.bf16.gmra.mrb[40].mxu1 %v8537_v17  ;;  %v6971_v17 = vld [vmem:[%s9424_s4 + $0x1b0] ss:$8 sps:$4 sm:$0xff]  }
 0x465   :  { %3621 = vmatprep.mubr.bf16.mxu1 %v3365_v25  ;;  %4032 = vmatpush1.bf16.msra.mxu0 %v6971_v17 }
 0x466   :  { %4033 = vmatprep.subr.bf16.mxu0 %v6976_v38 }
 0x469   :  { %4034 = vmatpush1.bf16.msra.mxu0 %v6974_v23 }
 0x46a   :  { %4035 = vmatprep.subr.bf16.mxu0 %v6979_v12 }
 0x46c   :  { %3622 = vmatmul.mubr.bf16.gmra.mrb[44].mxu1 %v3364_v35 }
 0x46d   :  { %4036 = vmatpush1.bf16.msra.mxu0 %v6977_v27 }
 0x46e   :  { %4037 = vmatprep.subr.bf16.mxu0 %v6982_v32 }
 0x471   :  { %4038 = vmatpush1.bf16.msra.mxu0 %v6980_v33 }
 0x472   :  { %4039 = vmatprep.subr.bf16.mxu0 %v6985_v26 }
 0x475   :  { %4040 = vmatpush1.bf16.msra.mxu0 %v6983_v37 }
 0x476   :  { %4222 = vmatprep.subr.bf16.mxu0 %v6988_v22 }
 0x527   :  { %v3593_v28 = vpop.f32.mrb[32].mxu1 }
 0x528   :  { %v3661_v50 = vmul.f32 %v8795_v42, %v3593_v28  ;;  %v3595_v51 = vpop.f32.mrb[33].mxu1 }
 0x529   :  { %v3662_v52 = vmul.f32 %v8798_v47, %v3595_v51  ;;  %v3597_v45 = vpop.f32.mrb[34].mxu1 }
 0x52a   :  { %v3690_v53 = vadd.f32 %v8801_v43, %v3661_v50  ;;  %v3663_v54 = vmul.f32 %v8795_v42, %v3597_v45  ;;  %v3599_v46 = vpop.f32.mrb[35].mxu1 }
 0x52b   :  { %v3691_v44 = vadd.f32 %v8804_v49, %v3662_v52  ;;  %v3664_v48 = vmul.f32 %v8798_v47, %v3599_v46 }
 0x52c   :  { %v3706_v57 = vmax.f32 %v3690_v53, 0.0  ;;  %v3692_v58 = vadd.f32 %v8801_v43, %v3663_v54 }
 0x52d   :  { %v3707_v61 = vmax.f32 %v3691_v44, 0.0  ;;  %v3693_v63 = vadd.f32 %v8804_v49, %v3664_v48 }
 0x52e   :  { %v3708_v0 = vmax.f32 %v3692_v58, 0.0 }
 0x52f   :  { %v3722_v4 = vmax.f32 %v3706_v57, %v3707_v61  ;;  %v3709_v5 = vmax.f32 %v3693_v63, 0.0  ;;  %v3603_v6 = vpop.f32.mrb[36].mxu1 }
 0x530   :  { %v3665_v11 = vmul.f32 %v8795_v42, %v3603_v6  ;;  %v3605_v14 = vpop.f32.mrb[37].mxu1 }
 0x531   :  { %v3723_v15 = vmax.f32 %v3708_v0, %v3709_v5  ;;  %v3666_v59 = vmul.f32 %v8798_v47, %v3605_v14  ;;  %v3607_v19 = vpop.f32.mrb[38].mxu1 }
 0x532   :  { %v3694_v39 = vadd.f32 %v8801_v43, %v3665_v11  ;;  %v3667_v21 = vmul.f32 %v8795_v42, %v3607_v19  ;;  %v3609_v20 = vpop.f32.mrb[39].mxu1  ;;  %v3795_v19 = vld [vmem:[#allocation5 + $0x28] sm:$0xf] }
 0x533   :  { %v3730_v16 = vmax.f32 %v3722_v4, %v3723_v15  ;;  %v3695_v13 = vadd.f32 %v8804_v49, %v3666_v59  ;;  %v3668_v10 = vmul.f32 %v8798_v47, %v3609_v20  ;;  %v3843_v20 = vrot.slane %v3795_v19, 4  ;;  %v7039_v19 = vld [vmem:[%s9424_s4 + $0x214] ss:$8 sps:$4 sm:$0xff]  }
 0x534   :  { %v3710_v9 = vmax.f32 %v3694_v39, 0.0  ;;  %v3696_v55 = vadd.f32 %v8801_v43, %v3667_v21 }
 0x535   :  { %v3711_v60 = vmax.f32 %v3695_v13, 0.0  ;;  %v3697_v34 = vadd.f32 %v8804_v49, %v3668_v10  ;;  %v6991_v13 = vld [vmem:[%s9424_s4 + $0x14] ss:$8 sps:$4 sm:$0xff]   ;;  %v3844_v10 = vsel %vm269_vm0, %v8361_v41, %v3843_v20  ;;  %v6992_v41 = vld [vmem:[%s9424_s4 + $0x20] ss:$8 sps:$4 sm:$0xff]  }
 0x536   :  { %v3712_v3 = vmax.f32 %v3696_v55, 0.0  ;;  %v6989_v55 = vld [vmem:[%s9424_s4 + $0x10] ss:$8 sps:$4 sm:$0xff]   ;;  %v7040_v20 = vld [vmem:[%s9424_s4 + $0x220] ss:$8 sps:$4 sm:$0xff]  }
 0x537   :  { %v3724_v56 = vmax.f32 %v3710_v9, %v3711_v60  ;;  %v3713_v62 = vmax.f32 %v3697_v34, 0.0  ;;  %v3613_v25 = vpop.f32.mrb[40].mxu1  ;;  %v6994_v60 = vld [vmem:[%s9424_s4 + $0x24] ss:$8 sps:$4 sm:$0xff]  }
 0x538   :  { %v3669_v35 = vmul.f32 %v8795_v42, %v3613_v25  ;;  %v3615_v8 = vpop.f32.mrb[41].mxu1  ;;  %v3755_v25 = vld [vmem:[#allocation5 + $0x8] sm:$0xff] }
 0x539   :  { %v3725_v30 = vmax.f32 %v3712_v3, %v3713_v62  ;;  %v3670_v29 = vmul.f32 %v8798_v47, %v3615_v8  ;;  %v3617_v17 = vpop.f32.mrb[42].mxu1  ;;  %v6997_v62 = vld [vmem:[%s9424_s4 + $0x34] ss:$8 sps:$4 sm:$0xff]   ;;  %v7084_v8 = vld [vmem:[%s9425_s5 + $0x104] ss:$8 sps:$4 sm:$0xff]  }
 0x53a   :  { %v3698_v38 = vadd.f32 %v8801_v43, %v3669_v35  ;;  %v3671_v23 = vmul.f32 %v8795_v42, %v3617_v17  ;;  %v3619_v12 = vpop.f32.mrb[43].mxu1  ;;  %v7082_v35 = vld [vmem:[%s9425_s5 + $0x100] ss:$8 sps:$4 sm:$0xff]   ;;  %v7000_v17 = vld [vmem:[%s9424_s4 + $0x44] ss:$8 sps:$4 sm:$0xff]   ;;  %4842 = vmatprep.subr.bf16.mxu1 %v7084_v8 }
 0x53b   :  { %v3731_v27 = vmax.f32 %v3724_v56, %v3725_v30  ;;  %v3699_v32 = vadd.f32 %v8804_v49, %v3670_v29  ;;  %v3672_v33 = vmul.f32 %v8798_v47, %v3619_v12  ;;  %v6995_v30 = vld [vmem:[%s9424_s4 + $0x30] ss:$8 sps:$4 sm:$0xff]   ;;  %v7087_v29 = vld [vmem:[%s9425_s5 + $0x114] ss:$8 sps:$4 sm:$0xff]   ;;  %4843 = vmatpush1.bf16.msra.mxu1 %v7082_v35  ;;  %v6998_v12 = vld [vmem:[%s9424_s4 + $0x40] ss:$8 sps:$4 sm:$0xff]  }
 0x53c   :  { %v3714_v26 = vmax.f32 %v3698_v38, 0.0  ;;  %v3700_v37 = vadd.f32 %v8801_v43, %v3671_v23  ;;  %v7085_v38 = vld [vmem:[%s9425_s5 + $0x110] ss:$8 sps:$4 sm:$0xff]   ;;  %4844 = vmatprep.subr.bf16.mxu1 %v7087_v29  ;;  %v7090_v23 = vld [vmem:[%s9425_s5 + $0x124] ss:$8 sps:$4 sm:$0xff]  }
 0x53d   :  { %v3738_v2 = vpack.c.bf16 %v3731_v27, %v3730_v16  ;;  %v3715_v40 = vmax.f32 %v3699_v32, 0.0  ;;  %v3701_v22 = vadd.f32 %v8804_v49, %v3672_v33  ;;  %v7003_v27 = vld [vmem:[%s9424_s4 + $0x54] ss:$8 sps:$4 sm:$0xff]   ;;  %v7088_v32 = vld [vmem:[%s9425_s5 + $0x120] ss:$8 sps:$4 sm:$0xff]  }
 0x53e   :  { %v3716_v24 = vmax.f32 %v3700_v37, 0.0  ;;  %v7093_v33 = vld [vmem:[%s9425_s5 + $0x134] ss:$8 sps:$4 sm:$0xff]   ;;  %v7006_v37 = vld [vmem:[%s9424_s4 + $0x64] ss:$8 sps:$4 sm:$0xff]  }
 0x53f   :  { %v3742_v7 = vrot.slane %v3738_v2, 4  ;;  %v3726_v36 = vmax.f32 %v3714_v26, %v3715_v40  ;;  %v3717_v28 = vmax.f32 %v3701_v22, 0.0  ;;  %v3623_v50 = vpop.f32.mrb[44].mxu1  ;;  %4845 = vmatpush1.bf16.msra.mxu1 %v7085_v38  ;;  %v7001_v26 = vld [vmem:[%s9424_s4 + $0x50] ss:$8 sps:$4 sm:$0xff]  }
 0x540   :  { %v3673_v51 = vmul.f32 %v8795_v42, %v3623_v50  ;;  %v3625_v52 = vpop.f32.mrb[45].mxu1  ;;  %4846 = vmatprep.subr.bf16.mxu1 %v7090_v23  ;;  %v7091_v2 = vld [vmem:[%s9425_s5 + $0x130] ss:$8 sps:$4 sm:$0xff]   ;;  %v7096_v40 = vld [vmem:[%s9425_s5 + $0x144] ss:$8 sps:$4 sm:$0xff]  }
 0x541   :  { %3748 = vst [vmem:[#allocation5] sm:$0xf0] %v3742_v7  ;;  %v3727_v45 = vmax.f32 %v3716_v24, %v3717_v28  ;;  %v3674_v53 = vmul.f32 %v8798_v47, %v3625_v52  ;;  %v3627_v54 = vpop.f32.mrb[46].mxu1  ;;  %v7004_v22 = vld [vmem:[%s9424_s4 + $0x60] ss:$8 sps:$4 sm:$0xff]  }
 0x542   :  { %v3702_v46 = vadd.f32 %v8801_v43, %v3673_v51  ;;  %v3675_v44 = vmul.f32 %v8795_v42, %v3627_v54  ;;  %v3629_v48 = vpop.f32.mrb[47].mxu1  ;;  %v7009_v24 = vld [vmem:[%s9424_s4 + $0x74] ss:$8 sps:$4 sm:$0xff]   ;;  %v7007_v28 = vld [vmem:[%s9424_s4 + $0x70] ss:$8 sps:$4 sm:$0xff]  }
 0x543   :  { %v3732_v57 = vmax.f32 %v3726_v36, %v3727_v45  ;;  %v3703_v58 = vadd.f32 %v8804_v49, %v3674_v53  ;;  %v3676_v61 = vmul.f32 %v8798_v47, %v3629_v48  ;;  %v6986_v47 = vld [vmem:[%s9424_s4] ss:$8 sps:$4 sm:$0xff]   ;;  %4847 = vmatpush1.bf16.msra.mxu1 %v7088_v32  ;;  %v7099_v36 = vld [vmem:[%s9425_s5 + $0x154] ss:$8 sps:$4 sm:$0xff]   ;;  %v7012_v50 = vld [vmem:[%s9424_s4 + $0x84] ss:$8 sps:$4 sm:$0xff]  }
 0x544   :  { %v3718_v63 = vmax.f32 %v3702_v46, 0.0  ;;  %v3704_v0 = vadd.f32 %v8801_v43, %v3675_v44  ;;  %4848 = vmatprep.subr.bf16.mxu1 %v7093_v33  ;;  %v7097_v51 = vld [vmem:[%s9425_s5 + $0x150] ss:$8 sps:$4 sm:$0xff]   ;;  %v7102_v52 = vld [vmem:[%s9425_s5 + $0x164] ss:$8 sps:$4 sm:$0xff]  }
 0x545   :  { %v3719_v4 = vmax.f32 %v3703_v58, 0.0  ;;  %v3705_v5 = vadd.f32 %v8804_v49, %v3676_v61  ;;  %v7010_v45 = vld [vmem:[%s9424_s4 + $0x80] ss:$8 sps:$4 sm:$0xff]   ;;  %v7015_v53 = vld [vmem:[%s9424_s4 + $0x94] ss:$8 sps:$4 sm:$0xff]  }
 0x546   :  { %v3720_v6 = vmax.f32 %v3704_v0, 0.0  ;;  %v7100_v54 = vld [vmem:[%s9425_s5 + $0x160] ss:$8 sps:$4 sm:$0xff]   ;;  %v7013_v46 = vld [vmem:[%s9424_s4 + $0x90] ss:$8 sps:$4 sm:$0xff]  }
 0x547   :  { %v3728_v11 = vmax.f32 %v3718_v63, %v3719_v4  ;;  %v3721_v14 = vmax.f32 %v3705_v5, 0.0  ;;  %4849 = vmatpush1.bf16.msra.mxu1 %v7091_v2  ;;  %v7018_v44 = vld [vmem:[%s9424_s4 + $0xa4] ss:$8 sps:$4 sm:$0xff]   ;;  %v7016_v48 = vld [vmem:[%s9424_s4 + $0xa0] ss:$8 sps:$4 sm:$0xff]  }
 0x548   :  { %v3790_v21 = vld [vmem:[#allocation5] sm:$0xf0]  ;;  %4850 = vmatprep.subr.bf16.mxu1 %v7096_v40  ;;  %v7019_v58 = vld [vmem:[%s9424_s4 + $0xb0] ss:$8 sps:$4 sm:$0xff]   ;;  %v7022_v63 = vld [vmem:[%s9424_s4 + $0xc0] ss:$8 sps:$4 sm:$0xff]  }
 0x549   :  { %v3729_v15 = vmax.f32 %v3720_v6, %v3721_v14  ;;  %v3835_v43 = vrot.slane %v3790_v21, 4  ;;  %v7024_v61 = vld [vmem:[%s9424_s4 + $0xc4] ss:$8 sps:$4 sm:$0xff]   ;;  %v7027_v0 = vld [vmem:[%s9424_s4 + $0xd4] ss:$8 sps:$4 sm:$0xff]  }
 0x54a   :  { %v7025_v4 = vld [vmem:[%s9424_s4 + $0xd0] ss:$8 sps:$4 sm:$0xff]   ;;  %v7030_v5 = vld [vmem:[%s9424_s4 + $0xe4] ss:$8 sps:$4 sm:$0xff]   ;;  %v7028_v6 = vld [vmem:[%s9424_s4 + $0xe0] ss:$8 sps:$4 sm:$0xff]  }
 0x54b   :  { %v3733_v59 = vmax.f32 %v3728_v11, %v3729_v15  ;;  %v7033_v11 = vld [vmem:[%s9424_s4 + $0xf4] ss:$8 sps:$4 sm:$0xff]   ;;  %v7031_v14 = vld [vmem:[%s9424_s4 + $0xf0] ss:$8 sps:$4 sm:$0xff]   ;;  %v7036_v15 = vld [vmem:[%s9424_s4 + $0x204] ss:$8 sps:$4 sm:$0xff]  }
 0x54c   :  { %v7042_v21 = vld [vmem:[%s9424_s4 + $0x224] ss:$8 sps:$4 sm:$0xff]   ;;  %v7064_v35 = vld [vmem:[%s9424_s4 + $0x2a0] ss:$8 sps:$4 sm:$0xff]   ;;  %v7069_v8 = vld [vmem:[%s9424_s4 + $0x2b4] ss:$8 sps:$4 sm:$0xff]  }
 0x54d   :  { %v3739_v39 = vpack.c.bf16 %v3733_v59, %v3732_v57  ;;  %v7021_v57 = vld [vmem:[%s9424_s4 + $0xb4] ss:$8 sps:$4 sm:$0xff]   ;;  %v7034_v59 = vld [vmem:[%s9424_s4 + $0x200] ss:$8 sps:$4 sm:$0xff]   ;;  %v7072_v29 = vld [vmem:[%s9424_s4 + $0x2c4] ss:$8 sps:$4 sm:$0xff]  }
 0x54e   :  { %v7075_v38 = vld [vmem:[%s9424_s4 + $0x2d4] ss:$8 sps:$4 sm:$0xff]   ;;  %v7073_v23 = vld [vmem:[%s9424_s4 + $0x2d0] ss:$8 sps:$4 sm:$0xff]  }
 0x54f   :  { %v3743_v42 = vrot.slane %v3739_v39, 4  ;;  %v3754_v39 = vld [vmem:[#allocation5] sm:$0xff]  ;;  %v7081_v32 = vld [vmem:[%s9424_s4 + $0x2f4] ss:$8 sps:$4 sm:$0xff]   ;;  %v7079_v33 = vld [vmem:[%s9424_s4 + $0x2f0] ss:$8 sps:$4 sm:$0xff]  }
 0x550   :  { %v7105_v2 = vld [vmem:[%s9425_s5 + $0x174] ss:$8 sps:$4 sm:$0xff]   ;;  %v7103_v40 = vld [vmem:[%s9425_s5 + $0x170] ss:$8 sps:$4 sm:$0xff]  }
 0x551   :  { %v8839_v16 = vsel %vm269_vm0, %v3742_v7, %v3743_v42  ;;  %3750 = vst [vmem:[#allocation5 + $0x20] sm:$0xf] %v3743_v42  ;;  %v7094_v7 = vld [vmem:[%s9425_s5 + $0x140] ss:$8 sps:$4 sm:$0xff]   ;;  %v7037_v42 = vld [vmem:[%s9424_s4 + $0x210] ss:$8 sps:$4 sm:$0xff]  }
 0x552   :  { %v3836_v49 = vrot.slane %v8839_v16, 4  ;;  %4851 = vmatpush1.bf16.msra.mxu1 %v7094_v7  ;;  %v7109_v7 = vld [vmem:[%s9425_s5 + $0x190] ss:$8 sps:$4 sm:$0xff]  }
 0x553   :  { %4852 = vmatprep.subr.bf16.mxu1 %v7099_v36  ;;  %v7114_v36 = vld [vmem:[%s9425_s5 + $0x1a4] ss:$8 sps:$4 sm:$0xff]  }
 0x554   :  { %v3837_v9 = vsel %vm269_vm0, %v3835_v43, %v3836_v49  ;;  %v7043_v43 = vld [vmem:[%s9424_s4 + $0x230] ss:$8 sps:$4 sm:$0xff]  }
 0x555   :  { %4042 = vmatmul.mubr.bf16.vlgmr.msra.gmra.mrb[64].mxu0 %v3837_v9  ;;  %v7054_v9 = vld [vmem:[%s9424_s4 + $0x264] ss:$8 sps:$4 sm:$0xff]  }
 0x556   :  { %4223 = vmatpush1.bf16.msra.mxu0 %v6986_v47  ;;  %4051 = vmatprep.mubr.bf16.mxu0 %v3844_v10  ;;  %v7045_v47 = vld [vmem:[%s9424_s4 + $0x234] ss:$8 sps:$4 sm:$0xff]  }
 0x557   :  { %4224 = vmatprep.subr.bf16.mxu0 %v6991_v13  ;;  %4853 = vmatpush1.bf16.msra.mxu1 %v7097_v51  ;;  %v7046_v13 = vld [vmem:[%s9424_s4 + $0x240] ss:$8 sps:$4 sm:$0xff]   ;;  %v7051_v10 = vld [vmem:[%s9424_s4 + $0x254] ss:$8 sps:$4 sm:$0xff]   ;;  %v7115_v51 = vld [vmem:[%s9425_s5 + $0x1b0] ss:$8 sps:$4 sm:$0xff]  }
 0x558   :  { %v3794_v34 = vld [vmem:[#allocation5 + $0x20] sm:$0xf]  ;;  %4854 = vmatprep.subr.bf16.mxu1 %v7102_v52  ;;  %v7120_v52 = vld [vmem:[%s9425_s5 + $0x1c4] ss:$8 sps:$4 sm:$0xff]  }
 0x559   :  { %v3841_v3 = vrot.slane %v3794_v34, 4  ;;  %v7055_v34 = vld [vmem:[%s9424_s4 + $0x270] ss:$8 sps:$4 sm:$0xff]  }
 0x55a   :  { %4225 = vmatpush1.bf16.msra.mxu0 %v6989_v55  ;;  %v7052_v55 = vld [vmem:[%s9424_s4 + $0x260] ss:$8 sps:$4 sm:$0xff]  }
 0x55b   :  { %4226 = vmatprep.subr.bf16.mxu0 %v6994_v60  ;;  %v3842_v56 = vsel %vm269_vm0, %v3836_v49, %v3841_v3  ;;  %4855 = vmatpush1.bf16.msra.mxu1 %v7100_v54  ;;  %v7048_v49 = vld [vmem:[%s9424_s4 + $0x244] ss:$8 sps:$4 sm:$0xff]   ;;  %v7057_v60 = vld [vmem:[%s9424_s4 + $0x274] ss:$8 sps:$4 sm:$0xff]   ;;  %v7121_v54 = vld [vmem:[%s9425_s5 + $0x1d0] ss:$8 sps:$4 sm:$0xff]  }
 0x55c   :  { %v7060_v3 = vld [vmem:[%s9424_s4 + $0x284] ss:$8 sps:$4 sm:$0xff]   ;;  %4856 = vmatprep.subr.bf16.mxu1 %v7105_v2 }
 0x55d   :  { %4052 = vmatmul.mubr.bf16.gmra.mrb[68].mxu0 %v3842_v56  ;;  %v7063_v56 = vld [vmem:[%s9424_s4 + $0x294] ss:$8 sps:$4 sm:$0xff]  }
 0x55e   :  { %4227 = vmatpush1.bf16.msra.mxu0 %v6992_v41  ;;  %4254 = vmatprep.mubr.bf16.mxu0 %v3755_v25  ;;  %v7058_v41 = vld [vmem:[%s9424_s4 + $0x280] ss:$8 sps:$4 sm:$0xff]   ;;  %v7066_v25 = vld [vmem:[%s9424_s4 + $0x2a4] ss:$8 sps:$4 sm:$0xff]  }
 0x55f   :  { %4228 = vmatprep.subr.bf16.mxu0 %v6997_v62  ;;  %v7061_v62 = vld [vmem:[%s9424_s4 + $0x290] ss:$8 sps:$4 sm:$0xff]   ;;  %4857 = vmatpush1.bf16.msra.mxu1 %v7103_v40 }
 0x562   :  { %4229 = vmatpush1.bf16.msra.mxu0 %v6995_v30  ;;  %v7067_v30 = vld [vmem:[%s9424_s4 + $0x2b0] ss:$8 sps:$4 sm:$0xff]  }
 0x563   :  { %4230 = vmatprep.subr.bf16.mxu0 %v7000_v17  ;;  %v7070_v17 = vld [vmem:[%s9424_s4 + $0x2c0] ss:$8 sps:$4 sm:$0xff]  }
 0x566   :  { %4231 = vmatpush1.bf16.msra.mxu0 %v6998_v12  ;;  %v7078_v12 = vld [vmem:[%s9424_s4 + $0x2e4] ss:$8 sps:$4 sm:$0xff]  }
 0x567   :  { %4232 = vmatprep.subr.bf16.mxu0 %v7003_v27  ;;  %v7076_v27 = vld [vmem:[%s9424_s4 + $0x2e0] ss:$8 sps:$4 sm:$0xff]  }
 0x56a   :  { %4233 = vmatpush1.bf16.msra.mxu0 %v7001_v26  ;;  %v4276_v26 = vld [vmem:[#allocation5 + $0x28] sm:$0xff] }
 0x56b   :  { %4234 = vmatprep.subr.bf16.mxu0 %v7006_v37  ;;  %v4275_v37 = vld [vmem:[#allocation5 + $0x20] sm:$0xff] }
 0x56e   :  { %4235 = vmatpush1.bf16.msra.mxu0 %v7004_v22  ;;  %v7108_v22 = vld [vmem:[%s9425_s5 + $0x184] ss:$8 sps:$4 sm:$0xff]  }
 0x56f   :  { %4236 = vmatprep.subr.bf16.mxu0 %v7009_v24  ;;  %4858 = vmatprep.subr.bf16.mxu1 %v7108_v22  ;;  %v7111_v24 = vld [vmem:[%s9425_s5 + $0x194] ss:$8 sps:$4 sm:$0xff]  }
 0x572   :  { %4237 = vmatpush1.bf16.msra.mxu0 %v7007_v28  ;;  %v7112_v28 = vld [vmem:[%s9425_s5 + $0x1a0] ss:$8 sps:$4 sm:$0xff]  }
 0x573   :  { %4238 = vmatprep.subr.bf16.mxu0 %v7012_v50  ;;  %v7117_v50 = vld [vmem:[%s9425_s5 + $0x1b4] ss:$8 sps:$4 sm:$0xff]  }
 0x576   :  { %4239 = vmatpush1.bf16.msra.mxu0 %v7010_v45  ;;  %v7118_v45 = vld [vmem:[%s9425_s5 + $0x1c0] ss:$8 sps:$4 sm:$0xff]  }
 0x577   :  { %4240 = vmatprep.subr.bf16.mxu0 %v7015_v53  ;;  %v7123_v53 = vld [vmem:[%s9425_s5 + $0x1d4] ss:$8 sps:$4 sm:$0xff]  }
 0x57a   :  { %4241 = vmatpush1.bf16.msra.mxu0 %v7013_v46  ;;  %v7124_v46 = vld [vmem:[%s9425_s5 + $0x1e0] ss:$8 sps:$4 sm:$0xff]  }
 0x57b   :  { %4242 = vmatprep.subr.bf16.mxu0 %v7018_v44  ;;  %v7126_v44 = vld [vmem:[%s9425_s5 + $0x1e4] ss:$8 sps:$4 sm:$0xff]  }
 0x57e   :  { %4243 = vmatpush1.bf16.msra.mxu0 %v7016_v48  ;;  %v7129_v48 = vld [vmem:[%s9425_s5 + $0x1f4] ss:$8 sps:$4 sm:$0xff]  }
 0x57f   :  { %4244 = vmatprep.subr.bf16.mxu0 %v7021_v57  ;;  %v4634_v57 = vld [vmem:[#allocation6 + $0x8] sm:$0xf0] }
 0x582   :  { %4245 = vmatpush1.bf16.msra.mxu0 %v7019_v58  ;;  %v4636_v58 = vld [vmem:[#allocation6 + $0x18] sm:$0xf] }
 0x583   :  { %4246 = vmatprep.subr.bf16.mxu0 %v7024_v61  ;;  %v4677_v61 = vrot.slane %v4634_v57, 4  ;;  %v5372_v57 = vld [vmem:[%s9428_s8 + $0x8] sm:$0xff] }
 0x586   :  { %4247 = vmatpush1.bf16.msra.mxu0 %v7022_v63  ;;  %v4678_v63 = vrot.slane %v4636_v58, 4  ;;  %v5373_v58 = vld [vmem:[%s9428_s8 + $0x10] sm:$0xff] }
 0x587   :  { %4248 = vmatprep.subr.bf16.mxu0 %v7027_v0  ;;  %v7127_v0 = vld [vmem:[%s9425_s5 + $0x1f0] ss:$8 sps:$4 sm:$0xff]  }
 0x58a   :  { %4249 = vmatpush1.bf16.msra.mxu0 %v7025_v4  ;;  %v4679_v4 = vsel %vm269_vm0, %v4677_v61, %v4678_v63  ;;  %v7133_v61 = vld [vmem:[%s9425_s5 + $0x10] ss:$8 sps:$4 sm:$0xff]  }
 0x58b   :  { %4250 = vmatprep.subr.bf16.mxu0 %v7030_v5  ;;  %v7132_v5 = vld [vmem:[%s9425_s5 + $0x4] ss:$8 sps:$4 sm:$0xff]   ;;  %4874 = vmatprep.mubr.bf16.mxu1 %v4679_v4 }
 0x58c   :  { %v7138_v4 = vld [vmem:[%s9425_s5 + $0x24] ss:$8 sps:$4 sm:$0xff]  }
 0x58e   :  { %4251 = vmatpush1.bf16.msra.mxu0 %v7028_v6  ;;  %v6066_v6 = vld [vmem:[%s9426_s6 + $0x3] ss:$8 sm:$0x3] }
 0x58f   :  { %4252 = vmatprep.subr.bf16.mxu0 %v7033_v11  ;;  %v6067_v11 = vld [vmem:[%s9427_s7 + $0x3] ss:$8 sm:$0x3] }
 0x592   :  { %4253 = vmatpush1.bf16.msra.mxu0 %v7031_v14  ;;  %v4537_v14 = vrot.slane %v6066_v6, %v7804_v31 }
 0x593   :  { %4470 = vmatprep.subr.bf16.mxu0 %v7036_v15  ;;  %v4541_v15 = vrot.slane %v6066_v6, %v7809_v18 }
 0x595   :  { %4255 = vmatmul.mubr.bf16.vlgmr.msra.gmra.mrb[64].mxu0 %v3754_v39  ;;  %v4562_v39 = vrot.slane %v6067_v11, %v7809_v18 }
 0x596   :  { %4471 = vmatpush1.bf16.msra.mxu0 %v7034_v59  ;;  %4264 = vmatprep.mubr.bf16.mxu0 %v8741_v1  ;;  %v4558_v59 = vrot.slane %v6067_v11, %v7804_v31  ;;  %v5375_v11 = vld [vmem:[%s9428_s8 + $0x20] sm:$0xff] }
 0x597   :  { %4472 = vmatprep.subr.bf16.mxu0 %v7039_v19 }
 0x59a   :  { %4473 = vmatpush1.bf16.msra.mxu0 %v7037_v42 }
 0x59b   :  { %4474 = vmatprep.subr.bf16.mxu0 %v7042_v21 }
 0x59d   :  { %4265 = vmatmul.mubr.bf16.gmra.mrb[68].mxu0 %v8839_v16 }
 0x59e   :  { %4475 = vmatpush1.bf16.msra.mxu0 %v7040_v20  ;;  %4502 = vmatprep.mubr.bf16.mxu0 %v8741_v1  ;;  %v7049_v1 = vld [vmem:[%s9424_s4 + $0x250] ss:$8 sps:$4 sm:$0xff]  }
 0x59f   :  { %4476 = vmatprep.subr.bf16.mxu0 %v7045_v47 }
 0x5a2   :  { %4477 = vmatpush1.bf16.msra.mxu0 %v7043_v43 }
 0x5a3   :  { %4478 = vmatprep.subr.bf16.mxu0 %v7048_v49 }
 0x5a6   :  { %4479 = vmatpush1.bf16.msra.mxu0 %v7046_v13 }
 0x5a7   :  { %4480 = vmatprep.subr.bf16.mxu0 %v7051_v10 }
 0x5aa   :  { %4481 = vmatpush1.bf16.msra.mxu0 %v7049_v1 }
 0x5ab   :  { %4482 = vmatprep.subr.bf16.mxu0 %v7054_v9 }
 0x5ae   :  { %4483 = vmatpush1.bf16.msra.mxu0 %v7052_v55 }
 0x5af   :  { %4484 = vmatprep.subr.bf16.mxu0 %v7057_v60 }
 0x5b2   :  { %4485 = vmatpush1.bf16.msra.mxu0 %v7055_v34 }
 0x5b3   :  { %4486 = vmatprep.subr.bf16.mxu0 %v7060_v3 }
 0x5b6   :  { %4487 = vmatpush1.bf16.msra.mxu0 %v7058_v41 }
 0x5b7   :  { %4488 = vmatprep.subr.bf16.mxu0 %v7063_v56 }
 0x5ba   :  { %4489 = vmatpush1.bf16.msra.mxu0 %v7061_v62 }
 0x5bb   :  { %4490 = vmatprep.subr.bf16.mxu0 %v7066_v25 }
 0x5be   :  { %4491 = vmatpush1.bf16.msra.mxu0 %v7064_v35 }
 0x5bf   :  { %4492 = vmatprep.subr.bf16.mxu0 %v7069_v8 }
 0x5c2   :  { %4493 = vmatpush1.bf16.msra.mxu0 %v7067_v30 }
 0x5c3   :  { %4494 = vmatprep.subr.bf16.mxu0 %v7072_v29 }
 0x5c6   :  { %4495 = vmatpush1.bf16.msra.mxu0 %v7070_v17 }
 0x5c7   :  { %4496 = vmatprep.subr.bf16.mxu0 %v7075_v38 }
 0x5ca   :  { %4497 = vmatpush1.bf16.msra.mxu0 %v7073_v23 }
 0x5cb   :  { %4498 = vmatprep.subr.bf16.mxu0 %v7078_v12 }
 0x5ce   :  { %4499 = vmatpush1.bf16.msra.mxu0 %v7076_v27 }
 0x5cf   :  { %4500 = vmatprep.subr.bf16.mxu0 %v7081_v32 }
 0x5d2   :  { %4501 = vmatpush1.bf16.msra.mxu0 %v7079_v33 }
 0x5d5   :  { %4503 = vmatmul.mubr.bf16.vlgmr.msra.gmra.mrb[64].mxu0 %v8839_v16  ;;  %v7106_v16 = vld [vmem:[%s9425_s5 + $0x180] ss:$8 sps:$4 sm:$0xff]  }
 0x5d6   :  { %4512 = vmatprep.mubr.bf16.mxu0 %v4276_v26  ;;  %4859 = vmatpush1.bf16.msra.mxu1 %v7106_v16 }
 0x5d7   :  { %4860 = vmatprep.subr.bf16.mxu1 %v7111_v24 }
 0x5da   :  { %4861 = vmatpush1.bf16.msra.mxu1 %v7109_v7 }
 0x5db   :  { %4862 = vmatprep.subr.bf16.mxu1 %v7114_v36 }
 0x5dd   :  { %4513 = vmatmul.mubr.bf16.gmra.mrb[68].mxu0 %v4275_v37 }
 0x5de   :  { %4863 = vmatpush1.bf16.msra.mxu1 %v7112_v28 }
 0x5df   :  { %4864 = vmatprep.subr.bf16.mxu1 %v7117_v50 }
 0x5e2   :  { %4865 = vmatpush1.bf16.msra.mxu1 %v7115_v51 }
 0x5e3   :  { %4866 = vmatprep.subr.bf16.mxu1 %v7120_v52  ;;  %v7130_v52 = vld [vmem:[%s9425_s5] ss:$8 sps:$4 sm:$0xff]  }
 0x5e6   :  { %4867 = vmatpush1.bf16.msra.mxu1 %v7118_v45 }
 0x5e7   :  { %4868 = vmatprep.subr.bf16.mxu1 %v7123_v53 }
 0x5ea   :  { %4869 = vmatpush1.bf16.msra.mxu1 %v7121_v54  ;;  %v7135_v54 = vld [vmem:[%s9425_s5 + $0x14] ss:$8 sps:$4 sm:$0xff]  }
 0x5eb   :  { %4870 = vmatprep.subr.bf16.mxu1 %v7126_v44 }
 0x5ee   :  { %4871 = vmatpush1.bf16.msra.mxu1 %v7124_v46  ;;  %v4600_v46 = vld [vmem:[#allocation6 + $0x8] sm:$0xff] }
 0x5ef   :  { %4872 = vmatprep.subr.bf16.mxu1 %v7129_v48  ;;  %v5371_v48 = vld [vmem:[%s9428_s8] sm:$0xff] }
 0x5f0   :  { %v6285_v63 = vpack.c.bf16 %v5372_v57, %v5371_v48  ;;  %v7199_v48 = vld [vmem:[%s9425_s5 + $0x270] ss:$8 sps:$4 sm:$0xff]   ;;  %v7204_v57 = vld [vmem:[%s9425_s5 + $0x284] ss:$8 sps:$4 sm:$0xff]  }
 0x5f2   :  { %4873 = vmatpush1.bf16.msra.mxu1 %v7127_v0  ;;  %v5374_v0 = vld [vmem:[%s9428_s8 + $0x18] sm:$0xff] }
 0x5f3   :  { %5045 = vmatprep.subr.bf16.mxu1 %v7132_v5  ;;  %v7273_v5 = vmov 0.0|0.0   ;;  %v6288_v6 = vpack.c.bf16 %v5374_v0, %v5373_v58  ;;  %v7202_v58 = vld [vmem:[%s9425_s5 + $0x280] ss:$8 sps:$4 sm:$0xff]   ;;  %v7210_v0 = vld [vmem:[%s9425_s5 + $0x2a4] ss:$8 sps:$4 sm:$0xff]  }
 0x5f4   :  { %6284 = vmatprep.subr.bf16.mxu0 %v7273_v5 }
 0x5f5   :  { %6286 = vmatpush3.bf16.msra.mxu0 %v6285_v63  ;;  %v7205_v63 = vld [vmem:[%s9425_s5 + $0x290] ss:$8 sps:$4 sm:$0xff]  }
 0x5f6   :  { %6287 = vmatprep.subr.bf16.mxu0 %v7273_v5 }
 0x5f9   :  { %6289 = vmatpush3.bf16.msra.mxu0 %v6288_v6  ;;  %v7213_v6 = vld [vmem:[%s9425_s5 + $0x2b4] ss:$8 sps:$4 sm:$0xff]  }
 0x5fa   :  { %6290 = vmatprep.subr.bf16.mxu0 %v7273_v5 }
 0x6a8   :  { %v4504_v19 = vpop.f32.mrb[64].mxu0 }
 0x6a9   :  { %v4544_v42 = vmul.f32 %v4537_v14, %v4504_v19  ;;  %v4506_v21 = vpop.f32.mrb[65].mxu0 }
 0x6aa   :  { %v4545_v20 = vmul.f32 %v4541_v15, %v4506_v21  ;;  %v4508_v47 = vpop.f32.mrb[66].mxu0  ;;  %v7139_v21 = vld [vmem:[%s9425_s5 + $0x30] ss:$8 sps:$4 sm:$0xff]  }
 0x6ab   :  { %v4565_v43 = vadd.f32 %v4558_v59, %v4544_v42  ;;  %v4546_v49 = vmul.f32 %v4537_v14, %v4508_v47  ;;  %v4510_v13 = vpop.f32.mrb[67].mxu0  ;;  %v5378_v42 = vld [vmem:[%s9428_s8 + $0x38] sm:$0xff] }
 0x6ac   :  { %v4566_v10 = vadd.f32 %v4562_v39, %v4545_v20  ;;  %v4547_v1 = vmul.f32 %v4541_v15, %v4510_v13  ;;  %v7144_v20 = vld [vmem:[%s9425_s5 + $0x44] ss:$8 sps:$4 sm:$0xff]   ;;  %v7142_v13 = vld [vmem:[%s9425_s5 + $0x40] ss:$8 sps:$4 sm:$0xff]  }
 0x6ad   :  { %v4573_v9 = vmax.f32 %v4565_v43, 0.0  ;;  %v4567_v55 = vadd.f32 %v4558_v59, %v4546_v49  ;;  %v5379_v43 = vld [vmem:[%s9428_s8 + $0x40] sm:$0xff]  ;;  %v5380_v49 = vld [vmem:[%s9428_s8 + $0x48] sm:$0xff] }
 0x6ae   :  { %v4574_v60 = vmax.f32 %v4566_v10, 0.0  ;;  %v4568_v34 = vadd.f32 %v4562_v39, %v4547_v1  ;;  %v7147_v10 = vld [vmem:[%s9425_s5 + $0x54] ss:$8 sps:$4 sm:$0xff]   ;;  %v6297_v1 = vpack.c.bf16 %v5380_v49, %v5379_v43 }
 0x6af   :  { %v4575_v3 = vmax.f32 %v4567_v55, 0.0  ;;  %v7150_v55 = vld [vmem:[%s9425_s5 + $0x64] ss:$8 sps:$4 sm:$0xff]   ;;  %v5381_v43 = vld [vmem:[%s9428_s8 + $0x50] sm:$0xff]  ;;  %v5382_v49 = vld [vmem:[%s9428_s8 + $0x58] sm:$0xff] }
 0x6b0   :  { %v4581_v41 = vmax.f32 %v4573_v9, %v4574_v60  ;;  %v4576_v56 = vmax.f32 %v4568_v34, 0.0  ;;  %v4514_v62 = vpop.f32.mrb[68].mxu0  ;;  %v7145_v9 = vld [vmem:[%s9425_s5 + $0x50] ss:$8 sps:$4 sm:$0xff]   ;;  %v7148_v60 = vld [vmem:[%s9425_s5 + $0x60] ss:$8 sps:$4 sm:$0xff]  }
 0x6b1   :  { %v4548_v25 = vmul.f32 %v4537_v14, %v4514_v62  ;;  %v4516_v35 = vpop.f32.mrb[69].mxu0  ;;  %v7153_v34 = vld [vmem:[%s9425_s5 + $0x74] ss:$8 sps:$4 sm:$0xff]  }
 0x6b2   :  { %v4582_v8 = vmax.f32 %v4575_v3, %v4576_v56  ;;  %v4549_v30 = vmul.f32 %v4541_v15, %v4516_v35  ;;  %v4518_v29 = vpop.f32.mrb[70].mxu0  ;;  %v7151_v3 = vld [vmem:[%s9425_s5 + $0x70] ss:$8 sps:$4 sm:$0xff]   ;;  %v7154_v56 = vld [vmem:[%s9425_s5 + $0x80] ss:$8 sps:$4 sm:$0xff]  }
 0x6b3   :  { %v4569_v17 = vadd.f32 %v4558_v59, %v4548_v25  ;;  %v4550_v38 = vmul.f32 %v4537_v14, %v4518_v29  ;;  %v4520_v23 = vpop.f32.mrb[71].mxu0  ;;  %v5376_v14 = vld [vmem:[%s9428_s8 + $0x28] sm:$0xff]  ;;  %v7159_v62 = vld [vmem:[%s9425_s5 + $0x94] ss:$8 sps:$4 sm:$0xff]   ;;  %v7157_v25 = vld [vmem:[%s9425_s5 + $0x90] ss:$8 sps:$4 sm:$0xff]  }
 0x6b4   :  { %v4585_v12 = vmax.f32 %v4581_v41, %v4582_v8  ;;  %v4570_v27 = vadd.f32 %v4562_v39, %v4549_v30  ;;  %v4551_v32 = vmul.f32 %v4541_v15, %v4520_v23  ;;  %v7136_v15 = vld [vmem:[%s9425_s5 + $0x20] ss:$8 sps:$4 sm:$0xff]   ;;  %v6291_v19 = vpack.c.bf16 %v5376_v14, %v5375_v11  ;;  %v7156_v41 = vld [vmem:[%s9425_s5 + $0x84] ss:$8 sps:$4 sm:$0xff]   ;;  %v7165_v30 = vld [vmem:[%s9425_s5 + $0xb4] ss:$8 sps:$4 sm:$0xff]  }
 0x6b5   :  { %v4577_v33 = vmax.f32 %v4569_v17, 0.0  ;;  %v4571_v26 = vadd.f32 %v4558_v59, %v4550_v38  ;;  %v7141_v59 = vld [vmem:[%s9425_s5 + $0x34] ss:$8 sps:$4 sm:$0xff]   ;;  %v7162_v35 = vld [vmem:[%s9425_s5 + $0xa4] ss:$8 sps:$4 sm:$0xff]  }
 0x6b6   :  { %v4578_v37 = vmax.f32 %v4570_v27, 0.0  ;;  %v4572_v2 = vadd.f32 %v4562_v39, %v4551_v32  ;;  %v5377_v39 = vld [vmem:[%s9428_s8 + $0x30] sm:$0xff]  ;;  %6292 = vmatpush3.bf16.msra.mxu0 %v6291_v19  ;;  %v7160_v8 = vld [vmem:[%s9425_s5 + $0xa0] ss:$8 sps:$4 sm:$0xff]   ;;  %v7168_v17 = vld [vmem:[%s9425_s5 + $0xc4] ss:$8 sps:$4 sm:$0xff]  }
 0x6b7   :  { %v4579_v40 = vmax.f32 %v4571_v26, 0.0  ;;  %v6294_v47 = vpack.c.bf16 %v5378_v42, %v5377_v39  ;;  %6293 = vmatprep.subr.bf16.mxu0 %v7273_v5  ;;  %v7163_v29 = vld [vmem:[%s9425_s5 + $0xb0] ss:$8 sps:$4 sm:$0xff]   ;;  %v7166_v38 = vld [vmem:[%s9425_s5 + $0xc0] ss:$8 sps:$4 sm:$0xff]  }
 0x6b8   :  { %v4583_v22 = vmax.f32 %v4577_v33, %v4578_v37  ;;  %v4580_v16 = vmax.f32 %v4572_v2, 0.0  ;;  %v7171_v23 = vld [vmem:[%s9425_s5 + $0xd4] ss:$8 sps:$4 sm:$0xff]   ;;  %v7174_v27 = vld [vmem:[%s9425_s5 + $0xe4] ss:$8 sps:$4 sm:$0xff]  }
 0x6b9   :  { %v7172_v32 = vld [vmem:[%s9425_s5 + $0xe0] ss:$8 sps:$4 sm:$0xff]   ;;  %v7177_v33 = vld [vmem:[%s9425_s5 + $0xf4] ss:$8 sps:$4 sm:$0xff]   ;;  %v7175_v26 = vld [vmem:[%s9425_s5 + $0xf0] ss:$8 sps:$4 sm:$0xff]  }
 0x6ba   :  { %v4584_v24 = vmax.f32 %v4579_v40, %v4580_v16  ;;  %6295 = vmatpush3.bf16.msra.mxu0 %v6294_v47  ;;  %v7180_v37 = vld [vmem:[%s9425_s5 + $0x204] ss:$8 sps:$4 sm:$0xff]   ;;  %v7178_v2 = vld [vmem:[%s9425_s5 + $0x200] ss:$8 sps:$4 sm:$0xff]   ;;  %v7183_v40 = vld [vmem:[%s9425_s5 + $0x214] ss:$8 sps:$4 sm:$0xff]  }
 0x6bb   :  { %6296 = vmatprep.subr.bf16.mxu0 %v7273_v5  ;;  %v7211_v11 = vld [vmem:[%s9425_s5 + $0x2b0] ss:$8 sps:$4 sm:$0xff]   ;;  %v7216_v14 = vld [vmem:[%s9425_s5 + $0x2c4] ss:$8 sps:$4 sm:$0xff]   ;;  %v7220_v42 = vld [vmem:[%s9425_s5 + $0x2e0] ss:$8 sps:$4 sm:$0xff]  }
 0x6bc   :  { %v4586_v7 = vmax.f32 %v4583_v22, %v4584_v24  ;;  %v5089_v22 = vld [vmem:[#allocation6 + $0x18] sm:$0xff]  ;;  %v7222_v39 = vld [vmem:[%s9425_s5 + $0x2e4] ss:$8 sps:$4 sm:$0xff]  }
 0x6bd   :  { %v7181_v24 = vld [vmem:[%s9425_s5 + $0x210] ss:$8 sps:$4 sm:$0xff]  }
 0x6be   :  { %v4591_v36 = vpack.c.bf16 %v4586_v7, %v4585_v12  ;;  %6298 = vmatpush3.bf16.msra.mxu0 %v6297_v1  ;;  %v7169_v12 = vld [vmem:[%s9425_s5 + $0xd0] ss:$8 sps:$4 sm:$0xff]   ;;  %v7186_v7 = vld [vmem:[%s9425_s5 + $0x224] ss:$8 sps:$4 sm:$0xff]  }
 0x6bf   :  { %6299 = vmatprep.subr.bf16.mxu0 %v7273_v5  ;;  %v7217_v19 = vld [vmem:[%s9425_s5 + $0x2d0] ss:$8 sps:$4 sm:$0xff]   ;;  %v5384_v1 = vld [vmem:[%s9428_s8 + $0x68] sm:$0xff] }
 0x6c0   :  { %v4593_v28 = vrot.slane %v4591_v36, 4  ;;  %v7184_v36 = vld [vmem:[%s9425_s5 + $0x220] ss:$8 sps:$4 sm:$0xff]  }
 0x6c2   :  { %4595 = vst [vmem:[#allocation6 + $0x10] ss:$-12 sps:$4 sm:$0xff] %v4593_v28   ;;  %v7189_v28 = vld [vmem:[%s9425_s5 + $0x234] ss:$8 sps:$4 sm:$0xff]  }
 0x6c9   :  { %v4633_v50 = vld [vmem:[#allocation6] sm:$0xf0]  ;;  %v4635_v51 = vld [vmem:[#allocation6 + $0x10] sm:$0xf] }
 0x6ca   :  { %v4674_v45 = vrot.slane %v4633_v50, 4  ;;  %v4675_v53 = vrot.slane %v4635_v51, 4  ;;  %v4599_v16 = vld [vmem:[#allocation6] sm:$0xff]  ;;  %v7192_v51 = vld [vmem:[%s9425_s5 + $0x244] ss:$8 sps:$4 sm:$0xff]  }
 0x6cb   :  { %v7187_v50 = vld [vmem:[%s9425_s5 + $0x230] ss:$8 sps:$4 sm:$0xff]   ;;  %v5088_v47 = vld [vmem:[#allocation6 + $0x10] sm:$0xff] }
 0x6cc   :  { %v4676_v44 = vsel %vm269_vm0, %v4674_v45, %v4675_v53  ;;  %v7195_v45 = vld [vmem:[%s9425_s5 + $0x254] ss:$8 sps:$4 sm:$0xff]   ;;  %v7193_v53 = vld [vmem:[%s9425_s5 + $0x250] ss:$8 sps:$4 sm:$0xff]  }
 0x6cd   :  { %4875 = vmatmul.mubr.bf16.vlgmr.msra.gmra.mrb[48].mxu1 %v4676_v44  ;;  %v7201_v44 = vld [vmem:[%s9425_s5 + $0x274] ss:$8 sps:$4 sm:$0xff]  }
 0x6ce   :  { %5046 = vmatpush1.bf16.msra.mxu1 %v7130_v52  ;;  %5077 = vmatprep.mubr.bf16.mxu1 %v4600_v46  ;;  %v7190_v52 = vld [vmem:[%s9425_s5 + $0x240] ss:$8 sps:$4 sm:$0xff]  }
 0x6cf   :  { %5047 = vmatprep.subr.bf16.mxu1 %v7135_v54  ;;  %v7198_v54 = vld [vmem:[%s9425_s5 + $0x264] ss:$8 sps:$4 sm:$0xff]   ;;  %v7196_v46 = vld [vmem:[%s9425_s5 + $0x260] ss:$8 sps:$4 sm:$0xff]  }
 0x6d2   :  { %5048 = vmatpush1.bf16.msra.mxu1 %v7133_v61  ;;  %v7207_v61 = vld [vmem:[%s9425_s5 + $0x294] ss:$8 sps:$4 sm:$0xff]  }
 0x6d3   :  { %5049 = vmatprep.subr.bf16.mxu1 %v7138_v4  ;;  %v7208_v4 = vld [vmem:[%s9425_s5 + $0x2a0] ss:$8 sps:$4 sm:$0xff]  }
 0x6d6   :  { %5050 = vmatpush1.bf16.msra.mxu1 %v7136_v15  ;;  %v7214_v15 = vld [vmem:[%s9425_s5 + $0x2c0] ss:$8 sps:$4 sm:$0xff]  }
 0x6d7   :  { %5051 = vmatprep.subr.bf16.mxu1 %v7141_v59  ;;  %v7219_v59 = vld [vmem:[%s9425_s5 + $0x2d4] ss:$8 sps:$4 sm:$0xff]  }
 0x6da   :  { %5052 = vmatpush1.bf16.msra.mxu1 %v7139_v21  ;;  %v7225_v21 = vld [vmem:[%s9425_s5 + $0x2f4] ss:$8 sps:$4 sm:$0xff]  }
 0x6db   :  { %5053 = vmatprep.subr.bf16.mxu1 %v7144_v20  ;;  %v7223_v20 = vld [vmem:[%s9425_s5 + $0x2f0] ss:$8 sps:$4 sm:$0xff]  }
 0x6de   :  { %5054 = vmatpush1.bf16.msra.mxu1 %v7142_v13  ;;  %v6300_v13 = vpack.c.bf16 %v5382_v49, %v5381_v43 }
 0x6df   :  { %5055 = vmatprep.subr.bf16.mxu1 %v7147_v10  ;;  %v5383_v10 = vld [vmem:[%s9428_s8 + $0x60] sm:$0xff] }
 0x6e0   :  { %6301 = vmatpush3.bf16.msra.mxu0 %v6300_v13 }
 0x6e1   :  { %6302 = vmatprep.subr.bf16.mxu0 %v7273_v5 }
 0x6e2   :  { %5056 = vmatpush1.bf16.msra.mxu1 %v7145_v9  ;;  %v6303_v9 = vpack.c.bf16 %v5384_v1, %v5383_v10 }
 0x6e3   :  { %5057 = vmatprep.subr.bf16.mxu1 %v7150_v55  ;;  %v5385_v55 = vld [vmem:[%s9428_s8 + $0x70] sm:$0xff] }
 0x6e4   :  { %6304 = vmatpush3.bf16.msra.mxu0 %v6303_v9 }
 0x6e5   :  { %6305 = vmatprep.subr.bf16.mxu0 %v7273_v5  ;;  %v6229_v5 = vld [vmem:[%s9427_s7 + $0x4] ss:$8 sm:$0x3] }
 0x6e6   :  { %5058 = vmatpush1.bf16.msra.mxu1 %v7148_v60  ;;  %v5386_v60 = vld [vmem:[%s9428_s8 + $0x78] sm:$0xff]  ;;  %s7276_s8 = smov [#allocation7]  }
 0x6e7   :  { %5059 = vmatprep.subr.bf16.mxu1 %v7153_v34  ;;  %v6306_v34 = vpack.c.bf16 %v5386_v60, %v5385_v55  ;;  %s5477_s19 = sshll.u32 %s7276_s8, 4  ;;  %s5478_s19 = int_to_ptr.vmem [resolvable:$true] %s5477_s19 }
 0x6e8   :  { %s7248_s1 = scalar_lea.vmem %s5478_s19, 128  ;;  %p7253_p1 = scmp.lt.s32.totalorder %s5478_s19, %s5478_s19 }
 0x6e9   :  { %6307 = vmatpush3.bf16.msra.mxu0 %v6306_v34  ;;  %p7249_p0 = scmp.ne.s32.totalorder %s5478_s19, %s7248_s1  ;;  %p7254_p2 = scmp.lt.s32.totalorder %s7248_s1, %s7248_s1 }
 0x6ea   :  { %5060 = vmatpush1.bf16.msra.mxu1 %v7151_v3  ;;  %v7275_v3 = vmov 0.0  }
 0x6eb   :  { %5061 = vmatprep.subr.bf16.mxu1 %v7156_v41  ;;  %6281 = vmatprep.mubr.msk.f32.mxu0 %vm7274_vm1, %v7275_v3  ;;  %v6228_v41 = vld [vmem:[%s9426_s6 + $0x4] ss:$8 sm:$0x3]  ;;  %p7255_p3 = por %p7254_p2, %p7253_p1 }
 0x6ed   :  { %p7256_p4 = pnand %p7255_p3, %p7249_p0 }
 0x6ee   :  { %5062 = vmatpush1.bf16.msra.mxu1 %v7154_v56  ;;  %v5336_v56 = vrot.slane %v6228_v41, %v7804_v31 }
 0x6ef   :  { %5063 = vmatprep.subr.bf16.mxu1 %v7159_v62  ;;  %v5340_v62 = vrot.slane %v6228_v41, %v7809_v18 }
 0x6f2   :  { %5064 = vmatpush1.bf16.msra.mxu1 %v7157_v25  ;;  %v5353_v25 = vrot.slane %v6229_v5, %v7804_v31 }
 0x6f3   :  { %5065 = vmatprep.subr.bf16.mxu1 %v7162_v35 }
 0x6f6   :  { %5066 = vmatpush1.bf16.msra.mxu1 %v7160_v8  ;;  %v5357_v8 = vrot.slane %v6229_v5, %v7809_v18  ;;  %v6230_v18 = vld [vmem:[%s9429_s9] ss:$0 sm:$0xff] }
 0x6f7   :  { %5067 = vmatprep.subr.bf16.mxu1 %v7165_v30 }
 0x6fa   :  { %5068 = vmatpush1.bf16.msra.mxu1 %v7163_v29 }
 0x6fb   :  { %5069 = vmatprep.subr.bf16.mxu1 %v7168_v17 }
 0x6fe   :  { %5070 = vmatpush1.bf16.msra.mxu1 %v7166_v38 }
 0x6ff   :  { %5071 = vmatprep.subr.bf16.mxu1 %v7171_v23 }
 0x702   :  { %5072 = vmatpush1.bf16.msra.mxu1 %v7169_v12 }
 0x703   :  { %5073 = vmatprep.subr.bf16.mxu1 %v7174_v27 }
 0x706   :  { %5074 = vmatpush1.bf16.msra.mxu1 %v7172_v32 }
 0x707   :  { %5075 = vmatprep.subr.bf16.mxu1 %v7177_v33 }
 0x70a   :  { %5076 = vmatpush1.bf16.msra.mxu1 %v7175_v26 }
 0x70b   :  { %5283 = vmatprep.subr.bf16.mxu1 %v7180_v37 }
 0x70d   :  { %5078 = vmatmul.mubr.bf16.vlgmr.msra.gmra.mrb[48].mxu1 %v4599_v16 }
 0x70e   :  { %5284 = vmatpush1.bf16.msra.mxu1 %v7178_v2  ;;  %5315 = vmatprep.mubr.bf16.mxu1 %v5089_v22 }
 0x70f   :  { %5285 = vmatprep.subr.bf16.mxu1 %v7183_v40 }
 0x712   :  { %5286 = vmatpush1.bf16.msra.mxu1 %v7181_v24 }
 0x713   :  { %5287 = vmatprep.subr.bf16.mxu1 %v7186_v7 }
 0x716   :  { %5288 = vmatpush1.bf16.msra.mxu1 %v7184_v36 }
 0x717   :  { %5289 = vmatprep.subr.bf16.mxu1 %v7189_v28 }
 0x71a   :  { %5290 = vmatpush1.bf16.msra.mxu1 %v7187_v50 }
 0x71b   :  { %5291 = vmatprep.subr.bf16.mxu1 %v7192_v51 }
 0x71e   :  { %5292 = vmatpush1.bf16.msra.mxu1 %v7190_v52 }
 0x71f   :  { %5293 = vmatprep.subr.bf16.mxu1 %v7195_v45 }
 0x722   :  { %5294 = vmatpush1.bf16.msra.mxu1 %v7193_v53 }
 0x723   :  { %5295 = vmatprep.subr.bf16.mxu1 %v7198_v54 }
 0x726   :  { %5296 = vmatpush1.bf16.msra.mxu1 %v7196_v46 }
 0x727   :  { %5297 = vmatprep.subr.bf16.mxu1 %v7201_v44 }
 0x72a   :  { %5298 = vmatpush1.bf16.msra.mxu1 %v7199_v48 }
 0x72b   :  { %5299 = vmatprep.subr.bf16.mxu1 %v7204_v57 }
 0x72e   :  { %5300 = vmatpush1.bf16.msra.mxu1 %v7202_v58 }
 0x72f   :  { %5301 = vmatprep.subr.bf16.mxu1 %v7207_v61 }
 0x732   :  { %5302 = vmatpush1.bf16.msra.mxu1 %v7205_v63 }
 0x733   :  { %5303 = vmatprep.subr.bf16.mxu1 %v7210_v0 }
 0x736   :  { %5304 = vmatpush1.bf16.msra.mxu1 %v7208_v4 }
 0x737   :  { %5305 = vmatprep.subr.bf16.mxu1 %v7213_v6 }
 0x73a   :  { %5306 = vmatpush1.bf16.msra.mxu1 %v7211_v11 }
 0x73b   :  { %5307 = vmatprep.subr.bf16.mxu1 %v7216_v14 }
 0x73e   :  { %5308 = vmatpush1.bf16.msra.mxu1 %v7214_v15 }
 0x73f   :  { %5309 = vmatprep.subr.bf16.mxu1 %v7219_v59 }
 0x742   :  { %5310 = vmatpush1.bf16.msra.mxu1 %v7217_v19 }
 0x743   :  { %5311 = vmatprep.subr.bf16.mxu1 %v7222_v39 }
 0x746   :  { %5312 = vmatpush1.bf16.msra.mxu1 %v7220_v42 }
 0x747   :  { %5313 = vmatprep.subr.bf16.mxu1 %v7225_v21 }
 0x74a   :  { %5314 = vmatpush1.bf16.msra.mxu1 %v7223_v20 }
 0x74d   :  { %5316 = vmatmul.mubr.bf16.vlgmr.msra.gmra.mrb[48].mxu1 %v5088_v47 }
 0x820   :  { %v5317_v35 = vpop.f32.mrb[48].mxu1 }
 0x821   :  { %v5343_v30 = vmul.f32 %v5336_v56, %v5317_v35  ;;  %v5319_v29 = vpop.f32.mrb[49].mxu1 }
 0x822   :  { %v5344_v17 = vmul.f32 %v5340_v62, %v5319_v29  ;;  %v5321_v38 = vpop.f32.mrb[50].mxu1 }
 0x823   :  { %v5360_v23 = vadd.f32 %v5353_v25, %v5343_v30  ;;  %v5345_v12 = vmul.f32 %v5336_v56, %v5321_v38  ;;  %v5323_v27 = vpop.f32.mrb[51].mxu1 }
 0x824   :  { %v5361_v32 = vadd.f32 %v5357_v8, %v5344_v17  ;;  %v5346_v33 = vmul.f32 %v5340_v62, %v5323_v27 }
 0x825   :  { %v5364_v26 = vmax.f32 %v5360_v23, 0.0  ;;  %v5362_v37 = vadd.f32 %v5353_v25, %v5345_v12 }
 0x826   :  { %v5365_v2 = vmax.f32 %v5361_v32, 0.0  ;;  %v5363_v40 = vadd.f32 %v5357_v8, %v5346_v33 }
 0x827   :  { %v5366_v22 = vmax.f32 %v5362_v37, 0.0 }
 0x828   :  { %v5368_v16 = vmax.f32 %v5364_v26, %v5365_v2  ;;  %v5367_v24 = vmax.f32 %v5363_v40, 0.0 }
 0x82a   :  { %v5369_v31 = vmax.f32 %v5366_v22, %v5367_v24 }
 0x82c   :  { %v5370_v7 = vmax.f32 %v5368_v16, %v5369_v31 }
 0x82e   :  { %6282 = vmatmul.mubr.f32.vlgmr.msra.gmra.mrb[72].mxu0 %v5370_v7 }
 0x901   :  { %v5460_v36 = vpop.f32.mrb[72].mxu0 }
 0x902   :  { %v5461_v28 = vadd.f32 %v6230_v18, %v5460_v36  ;;  %v6283_v50 = vpop.f32.mrb[73].mxu0 }
 0x904   :  { %v6231_v51 = vmul.f32 -1.442695, %v5461_v28 }
 0x906   :  { %7226 = vpow2.f32 %v6231_v51 }
 0x910   :  { %v7227_v52 = vpop.eup %7226 }
 0x911   :  { %v5467_v45 = vadd.f32 1.0, %v7227_v52 }
 0x913   :  { %7228 = vrcp.f32 %v5467_v45 }
 0x91d   :  { %v7229_v53 = vpop.eup %7228 }
 0x91e   :  { %5470 = vst [vmem:[#allocation7] sm:$0xff] %v7229_v53 }
 0x91f   :  { %7259 = shalt.err (!%p7256_p4)
}
 0x920   :  { %s7260_s20 = scalar_lea.hbm %s9430_s10, 128 }
 0x921   :  { %p7261_p5 = scmp.ne.s32.totalorder %s9430_s10, %s7260_s20  ;;  %p7264_p6 = scmp.lt.u32.totalorder %s7260_s20, %s9430_s10 }
 0x923   :  { %p7266_p7 = pnand %p7264_p6, %p7261_p5 }
 0x925   :  { %7269 = shalt.err (!%p7266_p7)
}
 0x926   :  { %5480 = dma.vmem_to_hbm [thread:$0]  %s5478_s19, 128, %s9430_s10, [#allocation8]  }
 0x927   :  { %7270 = dma.done.wait [#allocation8], 128  }
 0x928   :  { %7271 = vsyncadd [#allocation8], 4294967168 }
 0x929   :  { %5484 = vsyncpa [#allocation8], 1 }

</bundles_post_ra>
